<compile_context>
chip_gen: v7x
topology: tpu7x:2x2x1
jax: 0.10.0
libtpu: 0.0.40
codegen_flags: <defaults>
</compile_context>

<pallas_src>
import jax
import jax.numpy as jnp
from jax.experimental import pallas as pl
from jax.experimental.pallas import tpu as pltpu

# ----- synthetic "config" ---------------------------------------------------
EMBEDDING_DIM = 32
ENCODER_HIDDEN_SIZE = 32
ENCODER_LAYERS = 2
VOCAB_SIZE = 50
PADDING_IDX = 0


# ----- fused encoder kernel ---------------------------------------------------
def _make_encoder_kernel(num_layers, seq_len, batch, hidden):
    T, B, H = seq_len, batch, hidden

    def gru_step(gif, gib, whh, bhn, h_f, h_b):
        """One time step, both directions fused.

        gif/gib : (B, 3H) precomputed input gates [r|z|n]  (b_ih + b_hr/b_hz folded in)
        whh     : (2H, 6H) block-diagonal [[Whh_f, 0], [0, Whh_b]]
        bhn     : (1, 6H)  b_hn in each direction's n-columns, zeros elsewhere
        """
        h2 = jnp.concatenate([h_f, h_b], axis=-1)                           # (B, 2H)
        gh = jnp.dot(h2, whh, preferred_element_type=jnp.float32) + bhn     # (B, 6H)

        def gate(gi, gh3, h):
            r = jax.nn.sigmoid(gi[:, :H] + gh3[:, :H])
            z = jax.nn.sigmoid(gi[:, H:2 * H] + gh3[:, H:2 * H])
            n = jnp.tanh(gi[:, 2 * H:] + r * gh3[:, 2 * H:])   # b_hn already in gh3
            return (1.0 - z) * n + z * h

        return gate(gif, gh[:, :3 * H], h_f), gate(gib, gh[:, 3 * H:], h_b)

    def kernel(*refs):
        # refs = gi0_f, gi0_b, whh0, bhn0, (wih_l, bi_l, whh_l, bhn_l) * (L-1),
        #        out_ref, of_scr, ob_scr
        gi_f_ref, gi_b_ref = refs[0], refs[1]
        whh0_ref, bhn0_ref = refs[2], refs[3]
        cur = 4
        deep = []
        for _ in range(num_layers - 1):
            deep.append(refs[cur:cur + 4])
            cur += 4
        out_ref = refs[cur]
        of_scr, ob_scr = refs[cur + 1], refs[cur + 2]

        # ----- layer 0: input gates precomputed outside (one hoisted XLA GEMM) -----
        h_f = jnp.zeros((B, H), jnp.float32)   # PyTorch default: zero initial hidden
        h_b = jnp.zeros((B, H), jnp.float32)
        whh, bhn = whh0_ref[...], bhn0_ref[...]
        for t in range(T):                     # fully unrolled, static indices
            # backward direction reads its gates at time T-1-t (reversal by indexing)
            h_f, h_b = gru_step(gi_f_ref[t], gi_b_ref[T - 1 - t], whh, bhn, h_f, h_b)
            if num_layers > 1:                 # stage outputs for the next layer
                of_scr[pl.ds(t * B, B), :] = h_f
                ob_scr[pl.ds((T - 1 - t) * B, B), :] = h_b

        # ----- deeper layers: input GEMM in-kernel over the whole sequence -----
        for li, (wih_ref, bi_ref, whh_ref, bhn_ref) in enumerate(deep):
            wih = wih_ref[...]                 # (2H, 6H): rows 0:H hit fwd feats, H:2H bwd
            gi = (jnp.dot(of_scr[...], wih[:H], preferred_element_type=jnp.float32)
                  + jnp.dot(ob_scr[...], wih[H:], preferred_element_type=jnp.float32)
                  + bi_ref[...])               # (T*B, 6H), natural time order
            whh, bhn = whh_ref[...], bhn_ref[...]
            h_f = jnp.zeros((B, H), jnp.float32)
            h_b = jnp.zeros((B, H), jnp.float32)
            is_last = li == num_layers - 2
            for t in range(T):
                gif = gi[t * B:(t + 1) * B, :3 * H]
                gib = gi[(T - 1 - t) * B:(T - t) * B, 3 * H:]
                h_f, h_b = gru_step(gif, gib, whh, bhn, h_f, h_b)
                if not is_last:
                    of_scr[pl.ds(t * B, B), :] = h_f
                    ob_scr[pl.ds((T - 1 - t) * B, B), :] = h_b

        # hidden[-2] = last-layer fwd final (t = T-1); hidden[-1] = bwd final (t = 0)
        out_ref[...] = jnp.concatenate([h_f, h_b], axis=-1)

    return kernel


# ----- weight packing helpers (run once in XLA, outside the kernel) ----------
def _gi_bias(bih, bhh, H):
    """b_ih plus the hidden biases that add linearly (b_hr, b_hz); b_hn stays in-kernel."""
    return bih + jnp.concatenate([bhh[:, :2 * H], jnp.zeros((1, H), bhh.dtype)], axis=1)


def _pack_whh(whh_f, whh_b):
    """(H,3H) x2 -> block-diagonal (2H,6H): one MXU dot handles both directions."""
    z = jnp.zeros_like(whh_f)
    return jnp.concatenate(
        [jnp.concatenate([whh_f, z], axis=1),
         jnp.concatenate([z, whh_b], axis=1)], axis=0)


def _pack_bhn(bhh_f, bhh_b, H):
    """(1,6H) with b_hn in each direction's n-columns, zeros elsewhere."""
    z2 = jnp.zeros((1, 2 * H), bhh_f.dtype)
    return jnp.concatenate([z2, bhh_f[:, 2 * H:], z2, bhh_b[:, 2 * H:]], axis=1)


# ----- Encoder forward (matches the PyTorch module semantics) ----------------
def translation_encoder_forward(tokens, params):
    """tokens: (B, T) int32 -> (B, 2*H) float32."""
    H = ENCODER_HIDDEN_SIZE
    layers = params["gru"]
    L = len(layers)

    # Embedding gather, time-major (kept in XLA: a data-dependent gather + one GEMM).
    emb = jnp.take(params["embedding"], tokens.T, axis=0).astype(jnp.float32)  # (T, B, E)
    T, B, _ = emb.shape

    # Layer-0 input gates hoisted out of the recurrence (one batched GEMM per direction).
    wih_f, whh_f, bih_f, bhh_f = layers[0]["fwd"]
    wih_b, whh_b, bih_b, bhh_b = layers[0]["bwd"]
    gi0_f = jnp.einsum('tbd,dh->tbh', emb, wih_f) + _gi_bias(bih_f, bhh_f, H)   # (T, B, 3H)
    gi0_b = jnp.einsum('tbd,dh->tbh', emb, wih_b) + _gi_bias(bih_b, bhh_b, H)

    inputs = [gi0_f, gi0_b, _pack_whh(whh_f, whh_b), _pack_bhn(bhh_f, bhh_b, H)]
    for layer in layers[1:]:
        wih_f, whh_f, bih_f, bhh_f = layer["fwd"]
        wih_b, whh_b, bih_b, bhh_b = layer["bwd"]
        inputs += [
            jnp.concatenate([wih_f, wih_b], axis=1),                       # (2H, 6H)
            jnp.concatenate([_gi_bias(bih_f, bhh_f, H),
                             _gi_bias(bih_b, bhh_b, H)], axis=1),          # (1, 6H)
            _pack_whh(whh_f, whh_b),                                       # (2H, 6H)
            _pack_bhn(bhh_f, bhh_b, H),                                    # (1, 6H)
        ]

    kernel = _make_encoder_kernel(L, T, B, H)
    return pl.pallas_call(
        kernel,
        out_shape=jax.ShapeDtypeStruct((B, 2 * H), jnp.float32),
        in_specs=[pl.BlockSpec(memory_space=pltpu.MemorySpace.VMEM) for _ in inputs],
        out_specs=pl.BlockSpec(memory_space=pltpu.MemorySpace.VMEM),
        scratch_shapes=[pltpu.VMEM((T * B, H), jnp.float32),   # layer outputs, fwd
                        pltpu.VMEM((T * B, H), jnp.float32)],  # layer outputs, bwd
    )(*inputs)


# ----- pure-JAX reference (lax.scan) for a correctness check -----------------
def _gru_direction_ref(x_tbd, wih, whh, bih, bhh):
    H = whh.shape[0]

    def step(h, x):
        gi = x @ wih + bih[0]
        gh = h @ whh + bhh[0]
        r = jax.nn.sigmoid(gi[:, :H] + gh[:, :H])
        z = jax.nn.sigmoid(gi[:, H:2 * H] + gh[:, H:2 * H])
        n = jnp.tanh(gi[:, 2 * H:] + r * gh[:, 2 * H:])
        h_new = (1.0 - z) * n + z * h
        return h_new, h_new

    h0 = jnp.zeros((x_tbd.shape[1], H), jnp.float32)
    h_last, outs = jax.lax.scan(step, h0, x_tbd)
    return outs, h_last


def translation_encoder_ref(tokens, params):
    emb = jnp.take(params["embedding"], tokens, axis=0)
    layer_in = jnp.transpose(emb, (1, 0, 2)).astype(jnp.float32)
    h_f = h_b = None
    for layer in params["gru"]:
        out_f, h_f = _gru_direction_ref(layer_in, *layer["fwd"])
        out_b_rev, h_b = _gru_direction_ref(layer_in[::-1], *layer["bwd"])
        layer_in = jnp.concatenate([out_f, out_b_rev[::-1]], axis=-1)
    return jnp.concatenate([h_f, h_b], axis=-1)


# ----- deterministic parameter init ------------------------------------------
def init_params(key, vocab_size, emb_dim, hidden, num_layers):
    k_emb, k_gru = jax.random.split(key)
    embedding = jax.random.normal(k_emb, (vocab_size, emb_dim), jnp.float32)
    embedding = embedding.at[PADDING_IDX].set(0.0)           # padding_idx row is zero

    scale = 1.0 / jnp.sqrt(hidden)
    layers = []
    for l in range(num_layers):
        d_in = emb_dim if l == 0 else 2 * hidden
        layer = {}
        for d, name in enumerate(("fwd", "bwd")):
            kk = jax.random.fold_in(k_gru, 2 * l + d)
            k1, k2, k3, k4 = jax.random.split(kk, 4)
            wih = jax.random.uniform(k1, (d_in, 3 * hidden), jnp.float32, -scale, scale)
            whh = jax.random.uniform(k2, (hidden, 3 * hidden), jnp.float32, -scale, scale)
            bih = jax.random.uniform(k3, (1, 3 * hidden), jnp.float32, -scale, scale)
            bhh = jax.random.uniform(k4, (1, 3 * hidden), jnp.float32, -scale, scale)
            layer[name] = (wih, whh, bih, bhh)
        layers.append(layer)
    return {"embedding": embedding, "gru": layers}


if __name__ == "__main__":
    B, T = 2, 8
    key = jax.random.PRNGKey(0)
    k_params, k_tokens = jax.random.split(key)

    params = init_params(k_params, VOCAB_SIZE, EMBEDDING_DIM,
                         ENCODER_HIDDEN_SIZE, ENCODER_LAYERS)
    tokens = jax.random.randint(k_tokens, (B, T), 0, VOCAB_SIZE, dtype=jnp.int32)
    tokens = tokens.at[1, -2:].set(PADDING_IDX)   # include some padding tokens

    out = jax.block_until_ready(jax.jit(translation_encoder_forward)(tokens, params))
    ref = jax.block_until_ready(translation_encoder_ref(tokens, params))

    assert out.shape == (B, 2 * ENCODER_HIDDEN_SIZE), out.shape
    assert jnp.allclose(out, ref, rtol=1e-3, atol=1e-3), "mismatch vs JAX reference"
    print("KERNEL_OK")
</pallas_src>

<mosaic_0001>
module attributes {stable_mosaic.version = 11 : i64} {
  func.func @kernel(%arg0: memref<8x2x96xf32, #tpu.memory_space<vmem>>, %arg1: memref<8x2x96xf32, #tpu.memory_space<vmem>>, %arg2: memref<64x192xf32, #tpu.memory_space<vmem>>, %arg3: memref<1x192xf32, #tpu.memory_space<vmem>>, %arg4: memref<64x192xf32, #tpu.memory_space<vmem>>, %arg5: memref<1x192xf32, #tpu.memory_space<vmem>>, %arg6: memref<64x192xf32, #tpu.memory_space<vmem>>, %arg7: memref<1x192xf32, #tpu.memory_space<vmem>>, %arg8: memref<2x64xf32, #tpu.memory_space<vmem>>, %arg9: memref<16x32xf32, #tpu.memory_space<vmem>>, %arg10: memref<16x32xf32, #tpu.memory_space<vmem>>) attributes {dimension_semantics = [], scalar_prefetch = 0 : i64, scratch_operands = 2 : i64, tpu.core_type = #tpu.core_type<tc>} {
    %cst = arith.constant 0.000000e+00 : f32
    %0 = vector.broadcast %cst : f32 to vector<2x32xf32>
    %cst_0 = arith.constant 0.000000e+00 : f32
    %1 = vector.broadcast %cst_0 : f32 to vector<2x32xf32>
    %c0 = arith.constant 0 : index
    %c0_1 = arith.constant 0 : index
    %2 = vector.load %arg2[%c0, %c0_1] : memref<64x192xf32, #tpu.memory_space<vmem>>, vector<64x192xf32>
    %c0_2 = arith.constant 0 : index
    %c0_3 = arith.constant 0 : index
    %3 = vector.load %arg3[%c0_2, %c0_3] : memref<1x192xf32, #tpu.memory_space<vmem>>, vector<1x192xf32>
    %c0_4 = arith.constant 0 : index
    %c0_5 = arith.constant 0 : index
    %c0_6 = arith.constant 0 : index
    %4 = vector.load %arg0[%c0_4, %c0_5, %c0_6] : memref<8x2x96xf32, #tpu.memory_space<vmem>>, vector<1x2x96xf32>
    %5 = vector.shape_cast %4 : vector<1x2x96xf32> to vector<2x96xf32>
    %c7 = arith.constant 7 : index
    %c0_7 = arith.constant 0 : index
    %c0_8 = arith.constant 0 : index
    %6 = vector.load %arg1[%c7, %c0_7, %c0_8] : memref<8x2x96xf32, #tpu.memory_space<vmem>>, vector<1x2x96xf32>
    %7 = vector.shape_cast %6 : vector<1x2x96xf32> to vector<2x96xf32>
    %8 = tpu.concatenate %0, %1 in 1 : vector<2x32xf32>, vector<2x32xf32> -> vector<2x64xf32>
    %cst_9 = arith.constant dense<0.000000e+00> : vector<2x192xf32>
    %9 = tpu.matmul %8, %2, %cst_9 {dimension_numbers = #tpu.dot_dimension_numbers<[1], [0], [0], [1], [0, 0, 1, 1], [], []>} : vector<2x64xf32>, vector<64x192xf32>, vector<2x192xf32> -> vector<2x192xf32>
    %10 = vector.broadcast %3 : vector<1x192xf32> to vector<2x192xf32>
    %11 = arith.addf %9, %10 : vector<2x192xf32>
    %12 = vector.extract_strided_slice %11 {offsets = [0, 0], sizes = [2, 96], strides = [1, 1]} : vector<2x192xf32> to vector<2x96xf32>
    %13 = vector.extract_strided_slice %5 {offsets = [0, 0], sizes = [2, 32], strides = [1, 1]} : vector<2x96xf32> to vector<2x32xf32>
    %14 = vector.extract_strided_slice %12 {offsets = [0, 0], sizes = [2, 32], strides = [1, 1]} : vector<2x96xf32> to vector<2x32xf32>
    %15 = arith.addf %13, %14 : vector<2x32xf32>
    %16 = arith.negf %15 : vector<2x32xf32>
    %17 = math.exp %16 : vector<2x32xf32>
    %cst_10 = arith.constant 1.000000e+00 : f32
    %18 = vector.broadcast %cst_10 : f32 to vector<2x32xf32>
    %19 = arith.addf %18, %17 : vector<2x32xf32>
    %20 = arith.divf %18, %19 : vector<2x32xf32>
    %21 = vector.extract_strided_slice %5 {offsets = [0, 32], sizes = [2, 32], strides = [1, 1]} : vector<2x96xf32> to vector<2x32xf32>
    %22 = vector.extract_strided_slice %12 {offsets = [0, 32], sizes = [2, 32], strides = [1, 1]} : vector<2x96xf32> to vector<2x32xf32>
    %23 = arith.addf %21, %22 : vector<2x32xf32>
    %24 = arith.negf %23 : vector<2x32xf32>
    %25 = math.exp %24 : vector<2x32xf32>
    %cst_11 = arith.constant 1.000000e+00 : f32
    %26 = vector.broadcast %cst_11 : f32 to vector<2x32xf32>
    %27 = arith.addf %26, %25 : vector<2x32xf32>
    %28 = arith.divf %26, %27 : vector<2x32xf32>
    %29 = vector.extract_strided_slice %5 {offsets = [0, 64], sizes = [2, 32], strides = [1, 1]} : vector<2x96xf32> to vector<2x32xf32>
    %30 = vector.extract_strided_slice %12 {offsets = [0, 64], sizes = [2, 32], strides = [1, 1]} : vector<2x96xf32> to vector<2x32xf32>
    %31 = arith.mulf %20, %30 : vector<2x32xf32>
    %32 = arith.addf %29, %31 : vector<2x32xf32>
    %33 = math.tanh %32 : vector<2x32xf32>
    %cst_12 = arith.constant 1.000000e+00 : f32
    %34 = vector.broadcast %cst_12 : f32 to vector<2x32xf32>
    %35 = arith.subf %34, %28 : vector<2x32xf32>
    %36 = arith.mulf %35, %33 : vector<2x32xf32>
    %37 = arith.mulf %28, %0 : vector<2x32xf32>
    %38 = arith.addf %36, %37 : vector<2x32xf32>
    %39 = vector.extract_strided_slice %11 {offsets = [0, 96], sizes = [2, 96], strides = [1, 1]} : vector<2x192xf32> to vector<2x96xf32>
    %40 = vector.extract_strided_slice %7 {offsets = [0, 0], sizes = [2, 32], strides = [1, 1]} : vector<2x96xf32> to vector<2x32xf32>
    %41 = vector.extract_strided_slice %39 {offsets = [0, 0], sizes = [2, 32], strides = [1, 1]} : vector<2x96xf32> to vector<2x32xf32>
    %42 = arith.addf %40, %41 : vector<2x32xf32>
    %43 = arith.negf %42 : vector<2x32xf32>
    %44 = math.exp %43 : vector<2x32xf32>
    %cst_13 = arith.constant 1.000000e+00 : f32
    %45 = vector.broadcast %cst_13 : f32 to vector<2x32xf32>
    %46 = arith.addf %45, %44 : vector<2x32xf32>
    %47 = arith.divf %45, %46 : vector<2x32xf32>
    %48 = vector.extract_strided_slice %7 {offsets = [0, 32], sizes = [2, 32], strides = [1, 1]} : vector<2x96xf32> to vector<2x32xf32>
    %49 = vector.extract_strided_slice %39 {offsets = [0, 32], sizes = [2, 32], strides = [1, 1]} : vector<2x96xf32> to vector<2x32xf32>
    %50 = arith.addf %48, %49 : vector<2x32xf32>
    %51 = arith.negf %50 : vector<2x32xf32>
    %52 = math.exp %51 : vector<2x32xf32>
    %cst_14 = arith.constant 1.000000e+00 : f32
    %53 = vector.broadcast %cst_14 : f32 to vector<2x32xf32>
    %54 = arith.addf %53, %52 : vector<2x32xf32>
    %55 = arith.divf %53, %54 : vector<2x32xf32>
    %56 = vector.extract_strided_slice %7 {offsets = [0, 64], sizes = [2, 32], strides = [1, 1]} : vector<2x96xf32> to vector<2x32xf32>
    %57 = vector.extract_strided_slice %39 {offsets = [0, 64], sizes = [2, 32], strides = [1, 1]} : vector<2x96xf32> to vector<2x32xf32>
    %58 = arith.mulf %47, %57 : vector<2x32xf32>
    %59 = arith.addf %56, %58 : vector<2x32xf32>
    %60 = math.tanh %59 : vector<2x32xf32>
    %cst_15 = arith.constant 1.000000e+00 : f32
    %61 = vector.broadcast %cst_15 : f32 to vector<2x32xf32>
    %62 = arith.subf %61, %55 : vector<2x32xf32>
    %63 = arith.mulf %62, %60 : vector<2x32xf32>
    %64 = arith.mulf %55, %1 : vector<2x32xf32>
    %65 = arith.addf %63, %64 : vector<2x32xf32>
    %c0_16 = arith.constant 0 : index
    %c0_17 = arith.constant 0 : index
    %66 = vector.load %arg9[%c0_16, %c0_17] : memref<16x32xf32, #tpu.memory_space<vmem>>, vector<2x32xf32>
    tpu.vector_store %arg9[%c0_16, %c0_17], %38 {strides = array<i32>} : memref<16x32xf32, #tpu.memory_space<vmem>>, vector<2x32xf32>,
    %c14 = arith.constant 14 : index
    %c0_18 = arith.constant 0 : index
    %67 = vector.load %arg10[%c14, %c0_18] : memref<16x32xf32, #tpu.memory_space<vmem>>, vector<2x32xf32>
    tpu.vector_store %arg10[%c14, %c0_18], %65 {strides = array<i32>} : memref<16x32xf32, #tpu.memory_space<vmem>>, vector<2x32xf32>,
    %c1 = arith.constant 1 : index
    %c0_19 = arith.constant 0 : index
    %c0_20 = arith.constant 0 : index
    %68 = vector.load %arg0[%c1, %c0_19, %c0_20] : memref<8x2x96xf32, #tpu.memory_space<vmem>>, vector<1x2x96xf32>
    %69 = vector.shape_cast %68 : vector<1x2x96xf32> to vector<2x96xf32>
    %c6 = arith.constant 6 : index
    %c0_21 = arith.constant 0 : index
    %c0_22 = arith.constant 0 : index
    %70 = vector.load %arg1[%c6, %c0_21, %c0_22] : memref<8x2x96xf32, #tpu.memory_space<vmem>>, vector<1x2x96xf32>
    %71 = vector.shape_cast %70 : vector<1x2x96xf32> to vector<2x96xf32>
    %72 = tpu.concatenate %38, %65 in 1 : vector<2x32xf32>, vector<2x32xf32> -> vector<2x64xf32>
    %cst_23 = arith.constant dense<0.000000e+00> : vector<2x192xf32>
    %73 = tpu.matmul %72, %2, %cst_23 {dimension_numbers = #tpu.dot_dimension_numbers<[1], [0], [0], [1], [0, 0, 1, 1], [], []>} : vector<2x64xf32>, vector<64x192xf32>, vector<2x192xf32> -> vector<2x192xf32>
    %74 = vector.broadcast %3 : vector<1x192xf32> to vector<2x192xf32>
    %75 = arith.addf %73, %74 : vector<2x192xf32>
    %76 = vector.extract_strided_slice %75 {offsets = [0, 0], sizes = [2, 96], strides = [1, 1]} : vector<2x192xf32> to vector<2x96xf32>
    %77 = vector.extract_strided_slice %69 {offsets = [0, 0], sizes = [2, 32], strides = [1, 1]} : vector<2x96xf32> to vector<2x32xf32>
    %78 = vector.extract_strided_slice %76 {offsets = [0, 0], sizes = [2, 32], strides = [1, 1]} : vector<2x96xf32> to vector<2x32xf32>
    %79 = arith.addf %77, %78 : vector<2x32xf32>
    %80 = arith.negf %79 : vector<2x32xf32>
    %81 = math.exp %80 : vector<2x32xf32>
    %cst_24 = arith.constant 1.000000e+00 : f32
    %82 = vector.broadcast %cst_24 : f32 to vector<2x32xf32>
    %83 = arith.addf %82, %81 : vector<2x32xf32>
    %84 = arith.divf %82, %83 : vector<2x32xf32>
    %85 = vector.extract_strided_slice %69 {offsets = [0, 32], sizes = [2, 32], strides = [1, 1]} : vector<2x96xf32> to vector<2x32xf32>
    %86 = vector.extract_strided_slice %76 {offsets = [0, 32], sizes = [2, 32], strides = [1, 1]} : vector<2x96xf32> to vector<2x32xf32>
    %87 = arith.addf %85, %86 : vector<2x32xf32>
    %88 = arith.negf %87 : vector<2x32xf32>
    %89 = math.exp %88 : vector<2x32xf32>
    %cst_25 = arith.constant 1.000000e+00 : f32
    %90 = vector.broadcast %cst_25 : f32 to vector<2x32xf32>
    %91 = arith.addf %90, %89 : vector<2x32xf32>
    %92 = arith.divf %90, %91 : vector<2x32xf32>
    %93 = vector.extract_strided_slice %69 {offsets = [0, 64], sizes = [2, 32], strides = [1, 1]} : vector<2x96xf32> to vector<2x32xf32>
    %94 = vector.extract_strided_slice %76 {offsets = [0, 64], sizes = [2, 32], strides = [1, 1]} : vector<2x96xf32> to vector<2x32xf32>
    %95 = arith.mulf %84, %94 : vector<2x32xf32>
    %96 = arith.addf %93, %95 : vector<2x32xf32>
    %97 = math.tanh %96 : vector<2x32xf32>
    %cst_26 = arith.constant 1.000000e+00 : f32
    %98 = vector.broadcast %cst_26 : f32 to vector<2x32xf32>
    %99 = arith.subf %98, %92 : vector<2x32xf32>
    %100 = arith.mulf %99, %97 : vector<2x32xf32>
    %101 = arith.mulf %92, %38 : vector<2x32xf32>
    %102 = arith.addf %100, %101 : vector<2x32xf32>
    %103 = vector.extract_strided_slice %75 {offsets = [0, 96], sizes = [2, 96], strides = [1, 1]} : vector<2x192xf32> to vector<2x96xf32>
    %104 = vector.extract_strided_slice %71 {offsets = [0, 0], sizes = [2, 32], strides = [1, 1]} : vector<2x96xf32> to vector<2x32xf32>
    %105 = vector.extract_strided_slice %103 {offsets = [0, 0], sizes = [2, 32], strides = [1, 1]} : vector<2x96xf32> to vector<2x32xf32>
    %106 = arith.addf %104, %105 : vector<2x32xf32>
    %107 = arith.negf %106 : vector<2x32xf32>
    %108 = math.exp %107 : vector<2x32xf32>
    %cst_27 = arith.constant 1.000000e+00 : f32
    %109 = vector.broadcast %cst_27 : f32 to vector<2x32xf32>
    %110 = arith.addf %109, %108 : vector<2x32xf32>
    %111 = arith.divf %109, %110 : vector<2x32xf32>
    %112 = vector.extract_strided_slice %71 {offsets = [0, 32], sizes = [2, 32], strides = [1, 1]} : vector<2x96xf32> to vector<2x32xf32>
    %113 = vector.extract_strided_slice %103 {offsets = [0, 32], sizes = [2, 32], strides = [1, 1]} : vector<2x96xf32> to vector<2x32xf32>
    %114 = arith.addf %112, %113 : vector<2x32xf32>
    %115 = arith.negf %114 : vector<2x32xf32>
    %116 = math.exp %115 : vector<2x32xf32>
    %cst_28 = arith.constant 1.000000e+00 : f32
    %117 = vector.broadcast %cst_28 : f32 to vector<2x32xf32>
    %118 = arith.addf %117, %116 : vector<2x32xf32>
    %119 = arith.divf %117, %118 : vector<2x32xf32>
    %120 = vector.extract_strided_slice %71 {offsets = [0, 64], sizes = [2, 32], strides = [1, 1]} : vector<2x96xf32> to vector<2x32xf32>
    %121 = vector.extract_strided_slice %103 {offsets = [0, 64], sizes = [2, 32], strides = [1, 1]} : vector<2x96xf32> to vector<2x32xf32>
    %122 = arith.mulf %111, %121 : vector<2x32xf32>
    %123 = arith.addf %120, %122 : vector<2x32xf32>
    %124 = math.tanh %123 : vector<2x32xf32>
    %cst_29 = arith.constant 1.000000e+00 : f32
    %125 = vector.broadcast %cst_29 : f32 to vector<2x32xf32>
    %126 = arith.subf %125, %119 : vector<2x32xf32>
    %127 = arith.mulf %126, %124 : vector<2x32xf32>
    %128 = arith.mulf %119, %65 : vector<2x32xf32>
    %129 = arith.addf %127, %128 : vector<2x32xf32>
    %c2 = arith.constant 2 : index
    %c0_30 = arith.constant 0 : index
    %130 = vector.load %arg9[%c2, %c0_30] : memref<16x32xf32, #tpu.memory_space<vmem>>, vector<2x32xf32>
    tpu.vector_store %arg9[%c2, %c0_30], %102 {strides = array<i32>} : memref<16x32xf32, #tpu.memory_space<vmem>>, vector<2x32xf32>,
    %c12 = arith.constant 12 : index
    %c0_31 = arith.constant 0 : index
    %131 = vector.load %arg10[%c12, %c0_31] : memref<16x32xf32, #tpu.memory_space<vmem>>, vector<2x32xf32>
    tpu.vector_store %arg10[%c12, %c0_31], %129 {strides = array<i32>} : memref<16x32xf32, #tpu.memory_space<vmem>>, vector<2x32xf32>,
    %c2_32 = arith.constant 2 : index
    %c0_33 = arith.constant 0 : index
    %c0_34 = arith.constant 0 : index
    %132 = vector.load %arg0[%c2_32, %c0_33, %c0_34] : memref<8x2x96xf32, #tpu.memory_space<vmem>>, vector<1x2x96xf32>
    %133 = vector.shape_cast %132 : vector<1x2x96xf32> to vector<2x96xf32>
    %c5 = arith.constant 5 : index
    %c0_35 = arith.constant 0 : index
    %c0_36 = arith.constant 0 : index
    %134 = vector.load %arg1[%c5, %c0_35, %c0_36] : memref<8x2x96xf32, #tpu.memory_space<vmem>>, vector<1x2x96xf32>
    %135 = vector.shape_cast %134 : vector<1x2x96xf32> to vector<2x96xf32>
    %136 = tpu.concatenate %102, %129 in 1 : vector<2x32xf32>, vector<2x32xf32> -> vector<2x64xf32>
    %cst_37 = arith.constant dense<0.000000e+00> : vector<2x192xf32>
    %137 = tpu.matmul %136, %2, %cst_37 {dimension_numbers = #tpu.dot_dimension_numbers<[1], [0], [0], [1], [0, 0, 1, 1], [], []>} : vector<2x64xf32>, vector<64x192xf32>, vector<2x192xf32> -> vector<2x192xf32>
    %138 = vector.broadcast %3 : vector<1x192xf32> to vector<2x192xf32>
    %139 = arith.addf %137, %138 : vector<2x192xf32>
    %140 = vector.extract_strided_slice %139 {offsets = [0, 0], sizes = [2, 96], strides = [1, 1]} : vector<2x192xf32> to vector<2x96xf32>
    %141 = vector.extract_strided_slice %133 {offsets = [0, 0], sizes = [2, 32], strides = [1, 1]} : vector<2x96xf32> to vector<2x32xf32>
    %142 = vector.extract_strided_slice %140 {offsets = [0, 0], sizes = [2, 32], strides = [1, 1]} : vector<2x96xf32> to vector<2x32xf32>
    %143 = arith.addf %141, %142 : vector<2x32xf32>
    %144 = arith.negf %143 : vector<2x32xf32>
    %145 = math.exp %144 : vector<2x32xf32>
    %cst_38 = arith.constant 1.000000e+00 : f32
    %146 = vector.broadcast %cst_38 : f32 to vector<2x32xf32>
    %147 = arith.addf %146, %145 : vector<2x32xf32>
    %148 = arith.divf %146, %147 : vector<2x32xf32>
    %149 = vector.extract_strided_slice %133 {offsets = [0, 32], sizes = [2, 32], strides = [1, 1]} : vector<2x96xf32> to vector<2x32xf32>
    %150 = vector.extract_strided_slice %140 {offsets = [0, 32], sizes = [2, 32], strides = [1, 1]} : vector<2x96xf32> to vector<2x32xf32>
    %151 = arith.addf %149, %150 : vector<2x32xf32>
    %152 = arith.negf %151 : vector<2x32xf32>
    %153 = math.exp %152 : vector<2x32xf32>
    %cst_39 = arith.constant 1.000000e+00 : f32
    %154 = vector.broadcast %cst_39 : f32 to vector<2x32xf32>
    %155 = arith.addf %154, %153 : vector<2x32xf32>
    %156 = arith.divf %154, %155 : vector<2x32xf32>
    %157 = vector.extract_strided_slice %133 {offsets = [0, 64], sizes = [2, 32], strides = [1, 1]} : vector<2x96xf32> to vector<2x32xf32>
    %158 = vector.extract_strided_slice %140 {offsets = [0, 64], sizes = [2, 32], strides = [1, 1]} : vector<2x96xf32> to vector<2x32xf32>
    %159 = arith.mulf %148, %158 : vector<2x32xf32>
    %160 = arith.addf %157, %159 : vector<2x32xf32>
    %161 = math.tanh %160 : vector<2x32xf32>
    %cst_40 = arith.constant 1.000000e+00 : f32
    %162 = vector.broadcast %cst_40 : f32 to vector<2x32xf32>
    %163 = arith.subf %162, %156 : vector<2x32xf32>
    %164 = arith.mulf %163, %161 : vector<2x32xf32>
    %165 = arith.mulf %156, %102 : vector<2x32xf32>
    %166 = arith.addf %164, %165 : vector<2x32xf32>
    %167 = vector.extract_strided_slice %139 {offsets = [0, 96], sizes = [2, 96], strides = [1, 1]} : vector<2x192xf32> to vector<2x96xf32>
    %168 = vector.extract_strided_slice %135 {offsets = [0, 0], sizes = [2, 32], strides = [1, 1]} : vector<2x96xf32> to vector<2x32xf32>
    %169 = vector.extract_strided_slice %167 {offsets = [0, 0], sizes = [2, 32], strides = [1, 1]} : vector<2x96xf32> to vector<2x32xf32>
    %170 = arith.addf %168, %169 : vector<2x32xf32>
    %171 = arith.negf %170 : vector<2x32xf32>
    %172 = math.exp %171 : vector<2x32xf32>
    %cst_41 = arith.constant 1.000000e+00 : f32
    %173 = vector.broadcast %cst_41 : f32 to vector<2x32xf32>
    %174 = arith.addf %173, %172 : vector<2x32xf32>
    %175 = arith.divf %173, %174 : vector<2x32xf32>
    %176 = vector.extract_strided_slice %135 {offsets = [0, 32], sizes = [2, 32], strides = [1, 1]} : vector<2x96xf32> to vector<2x32xf32>
    %177 = vector.extract_strided_slice %167 {offsets = [0, 32], sizes = [2, 32], strides = [1, 1]} : vector<2x96xf32> to vector<2x32xf32>
    %178 = arith.addf %176, %177 : vector<2x32xf32>
    %179 = arith.negf %178 : vector<2x32xf32>
    %180 = math.exp %179 : vector<2x32xf32>
    %cst_42 = arith.constant 1.000000e+00 : f32
    %181 = vector.broadcast %cst_42 : f32 to vector<2x32xf32>
    %182 = arith.addf %181, %180 : vector<2x32xf32>
    %183 = arith.divf %181, %182 : vector<2x32xf32>
    %184 = vector.extract_strided_slice %135 {offsets = [0, 64], sizes = [2, 32], strides = [1, 1]} : vector<2x96xf32> to vector<2x32xf32>
    %185 = vector.extract_strided_slice %167 {offsets = [0, 64], sizes = [2, 32], strides = [1, 1]} : vector<2x96xf32> to vector<2x32xf32>
    %186 = arith.mulf %175, %185 : vector<2x32xf32>
    %187 = arith.addf %184, %186 : vector<2x32xf32>
    %188 = math.tanh %187 : vector<2x32xf32>
    %cst_43 = arith.constant 1.000000e+00 : f32
    %189 = vector.broadcast %cst_43 : f32 to vector<2x32xf32>
    %190 = arith.subf %189, %183 : vector<2x32xf32>
    %191 = arith.mulf %190, %188 : vector<2x32xf32>
    %192 = arith.mulf %183, %129 : vector<2x32xf32>
    %193 = arith.addf %191, %192 : vector<2x32xf32>
    %c4 = arith.constant 4 : index
    %c0_44 = arith.constant 0 : index
    %194 = vector.load %arg9[%c4, %c0_44] : memref<16x32xf32, #tpu.memory_space<vmem>>, vector<2x32xf32>
    tpu.vector_store %arg9[%c4, %c0_44], %166 {strides = array<i32>} : memref<16x32xf32, #tpu.memory_space<vmem>>, vector<2x32xf32>,
    %c10 = arith.constant 10 : index
    %c0_45 = arith.constant 0 : index
    %195 = vector.load %arg10[%c10, %c0_45] : memref<16x32xf32, #tpu.memory_space<vmem>>, vector<2x32xf32>
    tpu.vector_store %arg10[%c10, %c0_45], %193 {strides = array<i32>} : memref<16x32xf32, #tpu.memory_space<vmem>>, vector<2x32xf32>,
    %c3 = arith.constant 3 : index
    %c0_46 = arith.constant 0 : index
    %c0_47 = arith.constant 0 : index
    %196 = vector.load %arg0[%c3, %c0_46, %c0_47] : memref<8x2x96xf32, #tpu.memory_space<vmem>>, vector<1x2x96xf32>
    %197 = vector.shape_cast %196 : vector<1x2x96xf32> to vector<2x96xf32>
    %c4_48 = arith.constant 4 : index
    %c0_49 = arith.constant 0 : index
    %c0_50 = arith.constant 0 : index
    %198 = vector.load %arg1[%c4_48, %c0_49, %c0_50] : memref<8x2x96xf32, #tpu.memory_space<vmem>>, vector<1x2x96xf32>
    %199 = vector.shape_cast %198 : vector<1x2x96xf32> to vector<2x96xf32>
    %200 = tpu.concatenate %166, %193 in 1 : vector<2x32xf32>, vector<2x32xf32> -> vector<2x64xf32>
    %cst_51 = arith.constant dense<0.000000e+00> : vector<2x192xf32>
    %201 = tpu.matmul %200, %2, %cst_51 {dimension_numbers = #tpu.dot_dimension_numbers<[1], [0], [0], [1], [0, 0, 1, 1], [], []>} : vector<2x64xf32>, vector<64x192xf32>, vector<2x192xf32> -> vector<2x192xf32>
    %202 = vector.broadcast %3 : vector<1x192xf32> to vector<2x192xf32>
    %203 = arith.addf %201, %202 : vector<2x192xf32>
    %204 = vector.extract_strided_slice %203 {offsets = [0, 0], sizes = [2, 96], strides = [1, 1]} : vector<2x192xf32> to vector<2x96xf32>
    %205 = vector.extract_strided_slice %197 {offsets = [0, 0], sizes = [2, 32], strides = [1, 1]} : vector<2x96xf32> to vector<2x32xf32>
    %206 = vector.extract_strided_slice %204 {offsets = [0, 0], sizes = [2, 32], strides = [1, 1]} : vector<2x96xf32> to vector<2x32xf32>
    %207 = arith.addf %205, %206 : vector<2x32xf32>
    %208 = arith.negf %207 : vector<2x32xf32>
    %209 = math.exp %208 : vector<2x32xf32>
    %cst_52 = arith.constant 1.000000e+00 : f32
    %210 = vector.broadcast %cst_52 : f32 to vector<2x32xf32>
    %211 = arith.addf %210, %209 : vector<2x32xf32>
    %212 = arith.divf %210, %211 : vector<2x32xf32>
    %213 = vector.extract_strided_slice %197 {offsets = [0, 32], sizes = [2, 32], strides = [1, 1]} : vector<2x96xf32> to vector<2x32xf32>
    %214 = vector.extract_strided_slice %204 {offsets = [0, 32], sizes = [2, 32], strides = [1, 1]} : vector<2x96xf32> to vector<2x32xf32>
    %215 = arith.addf %213, %214 : vector<2x32xf32>
    %216 = arith.negf %215 : vector<2x32xf32>
    %217 = math.exp %216 : vector<2x32xf32>
    %cst_53 = arith.constant 1.000000e+00 : f32
    %218 = vector.broadcast %cst_53 : f32 to vector<2x32xf32>
    %219 = arith.addf %218, %217 : vector<2x32xf32>
    %220 = arith.divf %218, %219 : vector<2x32xf32>
    %221 = vector.extract_strided_slice %197 {offsets = [0, 64], sizes = [2, 32], strides = [1, 1]} : vector<2x96xf32> to vector<2x32xf32>
    %222 = vector.extract_strided_slice %204 {offsets = [0, 64], sizes = [2, 32], strides = [1, 1]} : vector<2x96xf32> to vector<2x32xf32>
    %223 = arith.mulf %212, %222 : vector<2x32xf32>
    %224 = arith.addf %221, %223 : vector<2x32xf32>
    %225 = math.tanh %224 : vector<2x32xf32>
    %cst_54 = arith.constant 1.000000e+00 : f32
    %226 = vector.broadcast %cst_54 : f32 to vector<2x32xf32>
    %227 = arith.subf %226, %220 : vector<2x32xf32>
    %228 = arith.mulf %227, %225 : vector<2x32xf32>
    %229 = arith.mulf %220, %166 : vector<2x32xf32>
    %230 = arith.addf %228, %229 : vector<2x32xf32>
    %231 = vector.extract_strided_slice %203 {offsets = [0, 96], sizes = [2, 96], strides = [1, 1]} : vector<2x192xf32> to vector<2x96xf32>
    %232 = vector.extract_strided_slice %199 {offsets = [0, 0], sizes = [2, 32], strides = [1, 1]} : vector<2x96xf32> to vector<2x32xf32>
    %233 = vector.extract_strided_slice %231 {offsets = [0, 0], sizes = [2, 32], strides = [1, 1]} : vector<2x96xf32> to vector<2x32xf32>
    %234 = arith.addf %232, %233 : vector<2x32xf32>
    %235 = arith.negf %234 : vector<2x32xf32>
    %236 = math.exp %235 : vector<2x32xf32>
    %cst_55 = arith.constant 1.000000e+00 : f32
    %237 = vector.broadcast %cst_55 : f32 to vector<2x32xf32>
    %238 = arith.addf %237, %236 : vector<2x32xf32>
    %239 = arith.divf %237, %238 : vector<2x32xf32>
    %240 = vector.extract_strided_slice %199 {offsets = [0, 32], sizes = [2, 32], strides = [1, 1]} : vector<2x96xf32> to vector<2x32xf32>
    %241 = vector.extract_strided_slice %231 {offsets = [0, 32], sizes = [2, 32], strides = [1, 1]} : vector<2x96xf32> to vector<2x32xf32>
    %242 = arith.addf %240, %241 : vector<2x32xf32>
    %243 = arith.negf %242 : vector<2x32xf32>
    %244 = math.exp %243 : vector<2x32xf32>
    %cst_56 = arith.constant 1.000000e+00 : f32
    %245 = vector.broadcast %cst_56 : f32 to vector<2x32xf32>
    %246 = arith.addf %245, %244 : vector<2x32xf32>
    %247 = arith.divf %245, %246 : vector<2x32xf32>
    %248 = vector.extract_strided_slice %199 {offsets = [0, 64], sizes = [2, 32], strides = [1, 1]} : vector<2x96xf32> to vector<2x32xf32>
    %249 = vector.extract_strided_slice %231 {offsets = [0, 64], sizes = [2, 32], strides = [1, 1]} : vector<2x96xf32> to vector<2x32xf32>
    %250 = arith.mulf %239, %249 : vector<2x32xf32>
    %251 = arith.addf %248, %250 : vector<2x32xf32>
    %252 = math.tanh %251 : vector<2x32xf32>
    %cst_57 = arith.constant 1.000000e+00 : f32
    %253 = vector.broadcast %cst_57 : f32 to vector<2x32xf32>
    %254 = arith.subf %253, %247 : vector<2x32xf32>
    %255 = arith.mulf %254, %252 : vector<2x32xf32>
    %256 = arith.mulf %247, %193 : vector<2x32xf32>
    %257 = arith.addf %255, %256 : vector<2x32xf32>
    %c6_58 = arith.constant 6 : index
    %c0_59 = arith.constant 0 : index
    %258 = vector.load %arg9[%c6_58, %c0_59] : memref<16x32xf32, #tpu.memory_space<vmem>>, vector<2x32xf32>
    tpu.vector_store %arg9[%c6_58, %c0_59], %230 {strides = array<i32>} : memref<16x32xf32, #tpu.memory_space<vmem>>, vector<2x32xf32>,
    %c8 = arith.constant 8 : index
    %c0_60 = arith.constant 0 : index
    %259 = vector.load %arg10[%c8, %c0_60] : memref<16x32xf32, #tpu.memory_space<vmem>>, vector<2x32xf32>
    tpu.vector_store %arg10[%c8, %c0_60], %257 {strides = array<i32>} : memref<16x32xf32, #tpu.memory_space<vmem>>, vector<2x32xf32>,
    %c4_61 = arith.constant 4 : index
    %c0_62 = arith.constant 0 : index
    %c0_63 = arith.constant 0 : index
    %260 = vector.load %arg0[%c4_61, %c0_62, %c0_63] : memref<8x2x96xf32, #tpu.memory_space<vmem>>, vector<1x2x96xf32>
    %261 = vector.shape_cast %260 : vector<1x2x96xf32> to vector<2x96xf32>
    %c3_64 = arith.constant 3 : index
    %c0_65 = arith.constant 0 : index
    %c0_66 = arith.constant 0 : index
    %262 = vector.load %arg1[%c3_64, %c0_65, %c0_66] : memref<8x2x96xf32, #tpu.memory_space<vmem>>, vector<1x2x96xf32>
    %263 = vector.shape_cast %262 : vector<1x2x96xf32> to vector<2x96xf32>
    %264 = tpu.concatenate %230, %257 in 1 : vector<2x32xf32>, vector<2x32xf32> -> vector<2x64xf32>
    %cst_67 = arith.constant dense<0.000000e+00> : vector<2x192xf32>
    %265 = tpu.matmul %264, %2, %cst_67 {dimension_numbers = #tpu.dot_dimension_numbers<[1], [0], [0], [1], [0, 0, 1, 1], [], []>} : vector<2x64xf32>, vector<64x192xf32>, vector<2x192xf32> -> vector<2x192xf32>
    %266 = vector.broadcast %3 : vector<1x192xf32> to vector<2x192xf32>
    %267 = arith.addf %265, %266 : vector<2x192xf32>
    %268 = vector.extract_strided_slice %267 {offsets = [0, 0], sizes = [2, 96], strides = [1, 1]} : vector<2x192xf32> to vector<2x96xf32>
    %269 = vector.extract_strided_slice %261 {offsets = [0, 0], sizes = [2, 32], strides = [1, 1]} : vector<2x96xf32> to vector<2x32xf32>
    %270 = vector.extract_strided_slice %268 {offsets = [0, 0], sizes = [2, 32], strides = [1, 1]} : vector<2x96xf32> to vector<2x32xf32>
    %271 = arith.addf %269, %270 : vector<2x32xf32>
    %272 = arith.negf %271 : vector<2x32xf32>
    %273 = math.exp %272 : vector<2x32xf32>
    %cst_68 = arith.constant 1.000000e+00 : f32
    %274 = vector.broadcast %cst_68 : f32 to vector<2x32xf32>
    %275 = arith.addf %274, %273 : vector<2x32xf32>
    %276 = arith.divf %274, %275 : vector<2x32xf32>
    %277 = vector.extract_strided_slice %261 {offsets = [0, 32], sizes = [2, 32], strides = [1, 1]} : vector<2x96xf32> to vector<2x32xf32>
    %278 = vector.extract_strided_slice %268 {offsets = [0, 32], sizes = [2, 32], strides = [1, 1]} : vector<2x96xf32> to vector<2x32xf32>
    %279 = arith.addf %277, %278 : vector<2x32xf32>
    %280 = arith.negf %279 : vector<2x32xf32>
    %281 = math.exp %280 : vector<2x32xf32>
    %cst_69 = arith.constant 1.000000e+00 : f32
    %282 = vector.broadcast %cst_69 : f32 to vector<2x32xf32>
    %283 = arith.addf %282, %281 : vector<2x32xf32>
    %284 = arith.divf %282, %283 : vector<2x32xf32>
    %285 = vector.extract_strided_slice %261 {offsets = [0, 64], sizes = [2, 32], strides = [1, 1]} : vector<2x96xf32> to vector<2x32xf32>
    %286 = vector.extract_strided_slice %268 {offsets = [0, 64], sizes = [2, 32], strides = [1, 1]} : vector<2x96xf32> to vector<2x32xf32>
    %287 = arith.mulf %276, %286 : vector<2x32xf32>
    %288 = arith.addf %285, %287 : vector<2x32xf32>
    %289 = math.tanh %288 : vector<2x32xf32>
    %cst_70 = arith.constant 1.000000e+00 : f32
    %290 = vector.broadcast %cst_70 : f32 to vector<2x32xf32>
    %291 = arith.subf %290, %284 : vector<2x32xf32>
    %292 = arith.mulf %291, %289 : vector<2x32xf32>
    %293 = arith.mulf %284, %230 : vector<2x32xf32>
    %294 = arith.addf %292, %293 : vector<2x32xf32>
    %295 = vector.extract_strided_slice %267 {offsets = [0, 96], sizes = [2, 96], strides = [1, 1]} : vector<2x192xf32> to vector<2x96xf32>
    %296 = vector.extract_strided_slice %263 {offsets = [0, 0], sizes = [2, 32], strides = [1, 1]} : vector<2x96xf32> to vector<2x32xf32>
    %297 = vector.extract_strided_slice %295 {offsets = [0, 0], sizes = [2, 32], strides = [1, 1]} : vector<2x96xf32> to vector<2x32xf32>
    %298 = arith.addf %296, %297 : vector<2x32xf32>
    %299 = arith.negf %298 : vector<2x32xf32>
    %300 = math.exp %299 : vector<2x32xf32>
    %cst_71 = arith.constant 1.000000e+00 : f32
    %301 = vector.broadcast %cst_71 : f32 to vector<2x32xf32>
    %302 = arith.addf %301, %300 : vector<2x32xf32>
    %303 = arith.divf %301, %302 : vector<2x32xf32>
    %304 = vector.extract_strided_slice %263 {offsets = [0, 32], sizes = [2, 32], strides = [1, 1]} : vector<2x96xf32> to vector<2x32xf32>
    %305 = vector.extract_strided_slice %295 {offsets = [0, 32], sizes = [2, 32], strides = [1, 1]} : vector<2x96xf32> to vector<2x32xf32>
    %306 = arith.addf %304, %305 : vector<2x32xf32>
    %307 = arith.negf %306 : vector<2x32xf32>
    %308 = math.exp %307 : vector<2x32xf32>
    %cst_72 = arith.constant 1.000000e+00 : f32
    %309 = vector.broadcast %cst_72 : f32 to vector<2x32xf32>
    %310 = arith.addf %309, %308 : vector<2x32xf32>
    %311 = arith.divf %309, %310 : vector<2x32xf32>
    %312 = vector.extract_strided_slice %263 {offsets = [0, 64], sizes = [2, 32], strides = [1, 1]} : vector<2x96xf32> to vector<2x32xf32>
    %313 = vector.extract_strided_slice %295 {offsets = [0, 64], sizes = [2, 32], strides = [1, 1]} : vector<2x96xf32> to vector<2x32xf32>
    %314 = arith.mulf %303, %313 : vector<2x32xf32>
    %315 = arith.addf %312, %314 : vector<2x32xf32>
    %316 = math.tanh %315 : vector<2x32xf32>
    %cst_73 = arith.constant 1.000000e+00 : f32
    %317 = vector.broadcast %cst_73 : f32 to vector<2x32xf32>
    %318 = arith.subf %317, %311 : vector<2x32xf32>
    %319 = arith.mulf %318, %316 : vector<2x32xf32>
    %320 = arith.mulf %311, %257 : vector<2x32xf32>
    %321 = arith.addf %319, %320 : vector<2x32xf32>
    %c8_74 = arith.constant 8 : index
    %c0_75 = arith.constant 0 : index
    %322 = vector.load %arg9[%c8_74, %c0_75] : memref<16x32xf32, #tpu.memory_space<vmem>>, vector<2x32xf32>
    tpu.vector_store %arg9[%c8_74, %c0_75], %294 {strides = array<i32>} : memref<16x32xf32, #tpu.memory_space<vmem>>, vector<2x32xf32>,
    %c6_76 = arith.constant 6 : index
    %c0_77 = arith.constant 0 : index
    %323 = vector.load %arg10[%c6_76, %c0_77] : memref<16x32xf32, #tpu.memory_space<vmem>>, vector<2x32xf32>
    tpu.vector_store %arg10[%c6_76, %c0_77], %321 {strides = array<i32>} : memref<16x32xf32, #tpu.memory_space<vmem>>, vector<2x32xf32>,
    %c5_78 = arith.constant 5 : index
    %c0_79 = arith.constant 0 : index
    %c0_80 = arith.constant 0 : index
    %324 = vector.load %arg0[%c5_78, %c0_79, %c0_80] : memref<8x2x96xf32, #tpu.memory_space<vmem>>, vector<1x2x96xf32>
    %325 = vector.shape_cast %324 : vector<1x2x96xf32> to vector<2x96xf32>
    %c2_81 = arith.constant 2 : index
    %c0_82 = arith.constant 0 : index
    %c0_83 = arith.constant 0 : index
    %326 = vector.load %arg1[%c2_81, %c0_82, %c0_83] : memref<8x2x96xf32, #tpu.memory_space<vmem>>, vector<1x2x96xf32>
    %327 = vector.shape_cast %326 : vector<1x2x96xf32> to vector<2x96xf32>
    %328 = tpu.concatenate %294, %321 in 1 : vector<2x32xf32>, vector<2x32xf32> -> vector<2x64xf32>
    %cst_84 = arith.constant dense<0.000000e+00> : vector<2x192xf32>
    %329 = tpu.matmul %328, %2, %cst_84 {dimension_numbers = #tpu.dot_dimension_numbers<[1], [0], [0], [1], [0, 0, 1, 1], [], []>} : vector<2x64xf32>, vector<64x192xf32>, vector<2x192xf32> -> vector<2x192xf32>
    %330 = vector.broadcast %3 : vector<1x192xf32> to vector<2x192xf32>
    %331 = arith.addf %329, %330 : vector<2x192xf32>
    %332 = vector.extract_strided_slice %331 {offsets = [0, 0], sizes = [2, 96], strides = [1, 1]} : vector<2x192xf32> to vector<2x96xf32>
    %333 = vector.extract_strided_slice %325 {offsets = [0, 0], sizes = [2, 32], strides = [1, 1]} : vector<2x96xf32> to vector<2x32xf32>
    %334 = vector.extract_strided_slice %332 {offsets = [0, 0], sizes = [2, 32], strides = [1, 1]} : vector<2x96xf32> to vector<2x32xf32>
    %335 = arith.addf %333, %334 : vector<2x32xf32>
    %336 = arith.negf %335 : vector<2x32xf32>
    %337 = math.exp %336 : vector<2x32xf32>
    %cst_85 = arith.constant 1.000000e+00 : f32
    %338 = vector.broadcast %cst_85 : f32 to vector<2x32xf32>
    %339 = arith.addf %338, %337 : vector<2x32xf32>
    %340 = arith.divf %338, %339 : vector<2x32xf32>
    %341 = vector.extract_strided_slice %325 {offsets = [0, 32], sizes = [2, 32], strides = [1, 1]} : vector<2x96xf32> to vector<2x32xf32>
    %342 = vector.extract_strided_slice %332 {offsets = [0, 32], sizes = [2, 32], strides = [1, 1]} : vector<2x96xf32> to vector<2x32xf32>
    %343 = arith.addf %341, %342 : vector<2x32xf32>
    %344 = arith.negf %343 : vector<2x32xf32>
    %345 = math.exp %344 : vector<2x32xf32>
    %cst_86 = arith.constant 1.000000e+00 : f32
    %346 = vector.broadcast %cst_86 : f32 to vector<2x32xf32>
    %347 = arith.addf %346, %345 : vector<2x32xf32>
    %348 = arith.divf %346, %347 : vector<2x32xf32>
    %349 = vector.extract_strided_slice %325 {offsets = [0, 64], sizes = [2, 32], strides = [1, 1]} : vector<2x96xf32> to vector<2x32xf32>
    %350 = vector.extract_strided_slice %332 {offsets = [0, 64], sizes = [2, 32], strides = [1, 1]} : vector<2x96xf32> to vector<2x32xf32>
    %351 = arith.mulf %340, %350 : vector<2x32xf32>
    %352 = arith.addf %349, %351 : vector<2x32xf32>
    %353 = math.tanh %352 : vector<2x32xf32>
    %cst_87 = arith.constant 1.000000e+00 : f32
    %354 = vector.broadcast %cst_87 : f32 to vector<2x32xf32>
    %355 = arith.subf %354, %348 : vector<2x32xf32>
    %356 = arith.mulf %355, %353 : vector<2x32xf32>
    %357 = arith.mulf %348, %294 : vector<2x32xf32>
    %358 = arith.addf %356, %357 : vector<2x32xf32>
    %359 = vector.extract_strided_slice %331 {offsets = [0, 96], sizes = [2, 96], strides = [1, 1]} : vector<2x192xf32> to vector<2x96xf32>
    %360 = vector.extract_strided_slice %327 {offsets = [0, 0], sizes = [2, 32], strides = [1, 1]} : vector<2x96xf32> to vector<2x32xf32>
    %361 = vector.extract_strided_slice %359 {offsets = [0, 0], sizes = [2, 32], strides = [1, 1]} : vector<2x96xf32> to vector<2x32xf32>
    %362 = arith.addf %360, %361 : vector<2x32xf32>
    %363 = arith.negf %362 : vector<2x32xf32>
    %364 = math.exp %363 : vector<2x32xf32>
    %cst_88 = arith.constant 1.000000e+00 : f32
    %365 = vector.broadcast %cst_88 : f32 to vector<2x32xf32>
    %366 = arith.addf %365, %364 : vector<2x32xf32>
    %367 = arith.divf %365, %366 : vector<2x32xf32>
    %368 = vector.extract_strided_slice %327 {offsets = [0, 32], sizes = [2, 32], strides = [1, 1]} : vector<2x96xf32> to vector<2x32xf32>
    %369 = vector.extract_strided_slice %359 {offsets = [0, 32], sizes = [2, 32], strides = [1, 1]} : vector<2x96xf32> to vector<2x32xf32>
    %370 = arith.addf %368, %369 : vector<2x32xf32>
    %371 = arith.negf %370 : vector<2x32xf32>
    %372 = math.exp %371 : vector<2x32xf32>
    %cst_89 = arith.constant 1.000000e+00 : f32
    %373 = vector.broadcast %cst_89 : f32 to vector<2x32xf32>
    %374 = arith.addf %373, %372 : vector<2x32xf32>
    %375 = arith.divf %373, %374 : vector<2x32xf32>
    %376 = vector.extract_strided_slice %327 {offsets = [0, 64], sizes = [2, 32], strides = [1, 1]} : vector<2x96xf32> to vector<2x32xf32>
    %377 = vector.extract_strided_slice %359 {offsets = [0, 64], sizes = [2, 32], strides = [1, 1]} : vector<2x96xf32> to vector<2x32xf32>
    %378 = arith.mulf %367, %377 : vector<2x32xf32>
    %379 = arith.addf %376, %378 : vector<2x32xf32>
    %380 = math.tanh %379 : vector<2x32xf32>
    %cst_90 = arith.constant 1.000000e+00 : f32
    %381 = vector.broadcast %cst_90 : f32 to vector<2x32xf32>
    %382 = arith.subf %381, %375 : vector<2x32xf32>
    %383 = arith.mulf %382, %380 : vector<2x32xf32>
    %384 = arith.mulf %375, %321 : vector<2x32xf32>
    %385 = arith.addf %383, %384 : vector<2x32xf32>
    %c10_91 = arith.constant 10 : index
    %c0_92 = arith.constant 0 : index
    %386 = vector.load %arg9[%c10_91, %c0_92] : memref<16x32xf32, #tpu.memory_space<vmem>>, vector<2x32xf32>
    tpu.vector_store %arg9[%c10_91, %c0_92], %358 {strides = array<i32>} : memref<16x32xf32, #tpu.memory_space<vmem>>, vector<2x32xf32>,
    %c4_93 = arith.constant 4 : index
    %c0_94 = arith.constant 0 : index
    %387 = vector.load %arg10[%c4_93, %c0_94] : memref<16x32xf32, #tpu.memory_space<vmem>>, vector<2x32xf32>
    tpu.vector_store %arg10[%c4_93, %c0_94], %385 {strides = array<i32>} : memref<16x32xf32, #tpu.memory_space<vmem>>, vector<2x32xf32>,
    %c6_95 = arith.constant 6 : index
    %c0_96 = arith.constant 0 : index
    %c0_97 = arith.constant 0 : index
    %388 = vector.load %arg0[%c6_95, %c0_96, %c0_97] : memref<8x2x96xf32, #tpu.memory_space<vmem>>, vector<1x2x96xf32>
    %389 = vector.shape_cast %388 : vector<1x2x96xf32> to vector<2x96xf32>
    %c1_98 = arith.constant 1 : index
    %c0_99 = arith.constant 0 : index
    %c0_100 = arith.constant 0 : index
    %390 = vector.load %arg1[%c1_98, %c0_99, %c0_100] : memref<8x2x96xf32, #tpu.memory_space<vmem>>, vector<1x2x96xf32>
    %391 = vector.shape_cast %390 : vector<1x2x96xf32> to vector<2x96xf32>
    %392 = tpu.concatenate %358, %385 in 1 : vector<2x32xf32>, vector<2x32xf32> -> vector<2x64xf32>
    %cst_101 = arith.constant dense<0.000000e+00> : vector<2x192xf32>
    %393 = tpu.matmul %392, %2, %cst_101 {dimension_numbers = #tpu.dot_dimension_numbers<[1], [0], [0], [1], [0, 0, 1, 1], [], []>} : vector<2x64xf32>, vector<64x192xf32>, vector<2x192xf32> -> vector<2x192xf32>
    %394 = vector.broadcast %3 : vector<1x192xf32> to vector<2x192xf32>
    %395 = arith.addf %393, %394 : vector<2x192xf32>
    %396 = vector.extract_strided_slice %395 {offsets = [0, 0], sizes = [2, 96], strides = [1, 1]} : vector<2x192xf32> to vector<2x96xf32>
    %397 = vector.extract_strided_slice %389 {offsets = [0, 0], sizes = [2, 32], strides = [1, 1]} : vector<2x96xf32> to vector<2x32xf32>
    %398 = vector.extract_strided_slice %396 {offsets = [0, 0], sizes = [2, 32], strides = [1, 1]} : vector<2x96xf32> to vector<2x32xf32>
    %399 = arith.addf %397, %398 : vector<2x32xf32>
    %400 = arith.negf %399 : vector<2x32xf32>
    %401 = math.exp %400 : vector<2x32xf32>
    %cst_102 = arith.constant 1.000000e+00 : f32
    %402 = vector.broadcast %cst_102 : f32 to vector<2x32xf32>
    %403 = arith.addf %402, %401 : vector<2x32xf32>
    %404 = arith.divf %402, %403 : vector<2x32xf32>
    %405 = vector.extract_strided_slice %389 {offsets = [0, 32], sizes = [2, 32], strides = [1, 1]} : vector<2x96xf32> to vector<2x32xf32>
    %406 = vector.extract_strided_slice %396 {offsets = [0, 32], sizes = [2, 32], strides = [1, 1]} : vector<2x96xf32> to vector<2x32xf32>
    %407 = arith.addf %405, %406 : vector<2x32xf32>
    %408 = arith.negf %407 : vector<2x32xf32>
    %409 = math.exp %408 : vector<2x32xf32>
    %cst_103 = arith.constant 1.000000e+00 : f32
    %410 = vector.broadcast %cst_103 : f32 to vector<2x32xf32>
    %411 = arith.addf %410, %409 : vector<2x32xf32>
    %412 = arith.divf %410, %411 : vector<2x32xf32>
    %413 = vector.extract_strided_slice %389 {offsets = [0, 64], sizes = [2, 32], strides = [1, 1]} : vector<2x96xf32> to vector<2x32xf32>
    %414 = vector.extract_strided_slice %396 {offsets = [0, 64], sizes = [2, 32], strides = [1, 1]} : vector<2x96xf32> to vector<2x32xf32>
    %415 = arith.mulf %404, %414 : vector<2x32xf32>
    %416 = arith.addf %413, %415 : vector<2x32xf32>
    %417 = math.tanh %416 : vector<2x32xf32>
    %cst_104 = arith.constant 1.000000e+00 : f32
    %418 = vector.broadcast %cst_104 : f32 to vector<2x32xf32>
    %419 = arith.subf %418, %412 : vector<2x32xf32>
    %420 = arith.mulf %419, %417 : vector<2x32xf32>
    %421 = arith.mulf %412, %358 : vector<2x32xf32>
    %422 = arith.addf %420, %421 : vector<2x32xf32>
    %423 = vector.extract_strided_slice %395 {offsets = [0, 96], sizes = [2, 96], strides = [1, 1]} : vector<2x192xf32> to vector<2x96xf32>
    %424 = vector.extract_strided_slice %391 {offsets = [0, 0], sizes = [2, 32], strides = [1, 1]} : vector<2x96xf32> to vector<2x32xf32>
    %425 = vector.extract_strided_slice %423 {offsets = [0, 0], sizes = [2, 32], strides = [1, 1]} : vector<2x96xf32> to vector<2x32xf32>
    %426 = arith.addf %424, %425 : vector<2x32xf32>
    %427 = arith.negf %426 : vector<2x32xf32>
    %428 = math.exp %427 : vector<2x32xf32>
    %cst_105 = arith.constant 1.000000e+00 : f32
    %429 = vector.broadcast %cst_105 : f32 to vector<2x32xf32>
    %430 = arith.addf %429, %428 : vector<2x32xf32>
    %431 = arith.divf %429, %430 : vector<2x32xf32>
    %432 = vector.extract_strided_slice %391 {offsets = [0, 32], sizes = [2, 32], strides = [1, 1]} : vector<2x96xf32> to vector<2x32xf32>
    %433 = vector.extract_strided_slice %423 {offsets = [0, 32], sizes = [2, 32], strides = [1, 1]} : vector<2x96xf32> to vector<2x32xf32>
    %434 = arith.addf %432, %433 : vector<2x32xf32>
    %435 = arith.negf %434 : vector<2x32xf32>
    %436 = math.exp %435 : vector<2x32xf32>
    %cst_106 = arith.constant 1.000000e+00 : f32
    %437 = vector.broadcast %cst_106 : f32 to vector<2x32xf32>
    %438 = arith.addf %437, %436 : vector<2x32xf32>
    %439 = arith.divf %437, %438 : vector<2x32xf32>
    %440 = vector.extract_strided_slice %391 {offsets = [0, 64], sizes = [2, 32], strides = [1, 1]} : vector<2x96xf32> to vector<2x32xf32>
    %441 = vector.extract_strided_slice %423 {offsets = [0, 64], sizes = [2, 32], strides = [1, 1]} : vector<2x96xf32> to vector<2x32xf32>
    %442 = arith.mulf %431, %441 : vector<2x32xf32>
    %443 = arith.addf %440, %442 : vector<2x32xf32>
    %444 = math.tanh %443 : vector<2x32xf32>
    %cst_107 = arith.constant 1.000000e+00 : f32
    %445 = vector.broadcast %cst_107 : f32 to vector<2x32xf32>
    %446 = arith.subf %445, %439 : vector<2x32xf32>
    %447 = arith.mulf %446, %444 : vector<2x32xf32>
    %448 = arith.mulf %439, %385 : vector<2x32xf32>
    %449 = arith.addf %447, %448 : vector<2x32xf32>
    %c12_108 = arith.constant 12 : index
    %c0_109 = arith.constant 0 : index
    %450 = vector.load %arg9[%c12_108, %c0_109] : memref<16x32xf32, #tpu.memory_space<vmem>>, vector<2x32xf32>
    tpu.vector_store %arg9[%c12_108, %c0_109], %422 {strides = array<i32>} : memref<16x32xf32, #tpu.memory_space<vmem>>, vector<2x32xf32>,
    %c2_110 = arith.constant 2 : index
    %c0_111 = arith.constant 0 : index
    %451 = vector.load %arg10[%c2_110, %c0_111] : memref<16x32xf32, #tpu.memory_space<vmem>>, vector<2x32xf32>
    tpu.vector_store %arg10[%c2_110, %c0_111], %449 {strides = array<i32>} : memref<16x32xf32, #tpu.memory_space<vmem>>, vector<2x32xf32>,
    %c7_112 = arith.constant 7 : index
    %c0_113 = arith.constant 0 : index
    %c0_114 = arith.constant 0 : index
    %452 = vector.load %arg0[%c7_112, %c0_113, %c0_114] : memref<8x2x96xf32, #tpu.memory_space<vmem>>, vector<1x2x96xf32>
    %453 = vector.shape_cast %452 : vector<1x2x96xf32> to vector<2x96xf32>
    %c0_115 = arith.constant 0 : index
    %c0_116 = arith.constant 0 : index
    %c0_117 = arith.constant 0 : index
    %454 = vector.load %arg1[%c0_115, %c0_116, %c0_117] : memref<8x2x96xf32, #tpu.memory_space<vmem>>, vector<1x2x96xf32>
    %455 = vector.shape_cast %454 : vector<1x2x96xf32> to vector<2x96xf32>
    %456 = tpu.concatenate %422, %449 in 1 : vector<2x32xf32>, vector<2x32xf32> -> vector<2x64xf32>
    %cst_118 = arith.constant dense<0.000000e+00> : vector<2x192xf32>
    %457 = tpu.matmul %456, %2, %cst_118 {dimension_numbers = #tpu.dot_dimension_numbers<[1], [0], [0], [1], [0, 0, 1, 1], [], []>} : vector<2x64xf32>, vector<64x192xf32>, vector<2x192xf32> -> vector<2x192xf32>
    %458 = vector.broadcast %3 : vector<1x192xf32> to vector<2x192xf32>
    %459 = arith.addf %457, %458 : vector<2x192xf32>
    %460 = vector.extract_strided_slice %459 {offsets = [0, 0], sizes = [2, 96], strides = [1, 1]} : vector<2x192xf32> to vector<2x96xf32>
    %461 = vector.extract_strided_slice %453 {offsets = [0, 0], sizes = [2, 32], strides = [1, 1]} : vector<2x96xf32> to vector<2x32xf32>
    %462 = vector.extract_strided_slice %460 {offsets = [0, 0], sizes = [2, 32], strides = [1, 1]} : vector<2x96xf32> to vector<2x32xf32>
    %463 = arith.addf %461, %462 : vector<2x32xf32>
    %464 = arith.negf %463 : vector<2x32xf32>
    %465 = math.exp %464 : vector<2x32xf32>
    %cst_119 = arith.constant 1.000000e+00 : f32
    %466 = vector.broadcast %cst_119 : f32 to vector<2x32xf32>
    %467 = arith.addf %466, %465 : vector<2x32xf32>
    %468 = arith.divf %466, %467 : vector<2x32xf32>
    %469 = vector.extract_strided_slice %453 {offsets = [0, 32], sizes = [2, 32], strides = [1, 1]} : vector<2x96xf32> to vector<2x32xf32>
    %470 = vector.extract_strided_slice %460 {offsets = [0, 32], sizes = [2, 32], strides = [1, 1]} : vector<2x96xf32> to vector<2x32xf32>
    %471 = arith.addf %469, %470 : vector<2x32xf32>
    %472 = arith.negf %471 : vector<2x32xf32>
    %473 = math.exp %472 : vector<2x32xf32>
    %cst_120 = arith.constant 1.000000e+00 : f32
    %474 = vector.broadcast %cst_120 : f32 to vector<2x32xf32>
    %475 = arith.addf %474, %473 : vector<2x32xf32>
    %476 = arith.divf %474, %475 : vector<2x32xf32>
    %477 = vector.extract_strided_slice %453 {offsets = [0, 64], sizes = [2, 32], strides = [1, 1]} : vector<2x96xf32> to vector<2x32xf32>
    %478 = vector.extract_strided_slice %460 {offsets = [0, 64], sizes = [2, 32], strides = [1, 1]} : vector<2x96xf32> to vector<2x32xf32>
    %479 = arith.mulf %468, %478 : vector<2x32xf32>
    %480 = arith.addf %477, %479 : vector<2x32xf32>
    %481 = math.tanh %480 : vector<2x32xf32>
    %cst_121 = arith.constant 1.000000e+00 : f32
    %482 = vector.broadcast %cst_121 : f32 to vector<2x32xf32>
    %483 = arith.subf %482, %476 : vector<2x32xf32>
    %484 = arith.mulf %483, %481 : vector<2x32xf32>
    %485 = arith.mulf %476, %422 : vector<2x32xf32>
    %486 = arith.addf %484, %485 : vector<2x32xf32>
    %487 = vector.extract_strided_slice %459 {offsets = [0, 96], sizes = [2, 96], strides = [1, 1]} : vector<2x192xf32> to vector<2x96xf32>
    %488 = vector.extract_strided_slice %455 {offsets = [0, 0], sizes = [2, 32], strides = [1, 1]} : vector<2x96xf32> to vector<2x32xf32>
    %489 = vector.extract_strided_slice %487 {offsets = [0, 0], sizes = [2, 32], strides = [1, 1]} : vector<2x96xf32> to vector<2x32xf32>
    %490 = arith.addf %488, %489 : vector<2x32xf32>
    %491 = arith.negf %490 : vector<2x32xf32>
    %492 = math.exp %491 : vector<2x32xf32>
    %cst_122 = arith.constant 1.000000e+00 : f32
    %493 = vector.broadcast %cst_122 : f32 to vector<2x32xf32>
    %494 = arith.addf %493, %492 : vector<2x32xf32>
    %495 = arith.divf %493, %494 : vector<2x32xf32>
    %496 = vector.extract_strided_slice %455 {offsets = [0, 32], sizes = [2, 32], strides = [1, 1]} : vector<2x96xf32> to vector<2x32xf32>
    %497 = vector.extract_strided_slice %487 {offsets = [0, 32], sizes = [2, 32], strides = [1, 1]} : vector<2x96xf32> to vector<2x32xf32>
    %498 = arith.addf %496, %497 : vector<2x32xf32>
    %499 = arith.negf %498 : vector<2x32xf32>
    %500 = math.exp %499 : vector<2x32xf32>
    %cst_123 = arith.constant 1.000000e+00 : f32
    %501 = vector.broadcast %cst_123 : f32 to vector<2x32xf32>
    %502 = arith.addf %501, %500 : vector<2x32xf32>
    %503 = arith.divf %501, %502 : vector<2x32xf32>
    %504 = vector.extract_strided_slice %455 {offsets = [0, 64], sizes = [2, 32], strides = [1, 1]} : vector<2x96xf32> to vector<2x32xf32>
    %505 = vector.extract_strided_slice %487 {offsets = [0, 64], sizes = [2, 32], strides = [1, 1]} : vector<2x96xf32> to vector<2x32xf32>
    %506 = arith.mulf %495, %505 : vector<2x32xf32>
    %507 = arith.addf %504, %506 : vector<2x32xf32>
    %508 = math.tanh %507 : vector<2x32xf32>
    %cst_124 = arith.constant 1.000000e+00 : f32
    %509 = vector.broadcast %cst_124 : f32 to vector<2x32xf32>
    %510 = arith.subf %509, %503 : vector<2x32xf32>
    %511 = arith.mulf %510, %508 : vector<2x32xf32>
    %512 = arith.mulf %503, %449 : vector<2x32xf32>
    %513 = arith.addf %511, %512 : vector<2x32xf32>
    %c14_125 = arith.constant 14 : index
    %c0_126 = arith.constant 0 : index
    %514 = vector.load %arg9[%c14_125, %c0_126] : memref<16x32xf32, #tpu.memory_space<vmem>>, vector<2x32xf32>
    tpu.vector_store %arg9[%c14_125, %c0_126], %486 {strides = array<i32>} : memref<16x32xf32, #tpu.memory_space<vmem>>, vector<2x32xf32>,
    %c0_127 = arith.constant 0 : index
    %c0_128 = arith.constant 0 : index
    %515 = vector.load %arg10[%c0_127, %c0_128] : memref<16x32xf32, #tpu.memory_space<vmem>>, vector<2x32xf32>
    tpu.vector_store %arg10[%c0_127, %c0_128], %513 {strides = array<i32>} : memref<16x32xf32, #tpu.memory_space<vmem>>, vector<2x32xf32>,
    %c0_129 = arith.constant 0 : index
    %c0_130 = arith.constant 0 : index
    %516 = vector.load %arg4[%c0_129, %c0_130] : memref<64x192xf32, #tpu.memory_space<vmem>>, vector<64x192xf32>
    %c0_131 = arith.constant 0 : index
    %c0_132 = arith.constant 0 : index
    %517 = vector.load %arg9[%c0_131, %c0_132] : memref<16x32xf32, #tpu.memory_space<vmem>>, vector<16x32xf32>
    %518 = vector.extract_strided_slice %516 {offsets = [0, 0], sizes = [32, 192], strides = [1, 1]} : vector<64x192xf32> to vector<32x192xf32>
    %cst_133 = arith.constant dense<0.000000e+00> : vector<16x192xf32>
    %519 = tpu.matmul %517, %518, %cst_133 {dimension_numbers = #tpu.dot_dimension_numbers<[1], [0], [0], [1], [0, 0, 1, 1], [], []>} : vector<16x32xf32>, vector<32x192xf32>, vector<16x192xf32> -> vector<16x192xf32>
    %c0_134 = arith.constant 0 : index
    %c0_135 = arith.constant 0 : index
    %520 = vector.load %arg10[%c0_134, %c0_135] : memref<16x32xf32, #tpu.memory_space<vmem>>, vector<16x32xf32>
    %521 = vector.extract_strided_slice %516 {offsets = [32, 0], sizes = [32, 192], strides = [1, 1]} : vector<64x192xf32> to vector<32x192xf32>
    %cst_136 = arith.constant dense<0.000000e+00> : vector<16x192xf32>
    %522 = tpu.matmul %520, %521, %cst_136 {dimension_numbers = #tpu.dot_dimension_numbers<[1], [0], [0], [1], [0, 0, 1, 1], [], []>} : vector<16x32xf32>, vector<32x192xf32>, vector<16x192xf32> -> vector<16x192xf32>
    %523 = arith.addf %519, %522 : vector<16x192xf32>
    %c0_137 = arith.constant 0 : index
    %c0_138 = arith.constant 0 : index
    %524 = vector.load %arg5[%c0_137, %c0_138] : memref<1x192xf32, #tpu.memory_space<vmem>>, vector<1x192xf32>
    %525 = vector.broadcast %524 : vector<1x192xf32> to vector<16x192xf32>
    %526 = arith.addf %523, %525 : vector<16x192xf32>
    %c0_139 = arith.constant 0 : index
    %c0_140 = arith.constant 0 : index
    %527 = vector.load %arg6[%c0_139, %c0_140] : memref<64x192xf32, #tpu.memory_space<vmem>>, vector<64x192xf32>
    %c0_141 = arith.constant 0 : index
    %c0_142 = arith.constant 0 : index
    %528 = vector.load %arg7[%c0_141, %c0_142] : memref<1x192xf32, #tpu.memory_space<vmem>>, vector<1x192xf32>
    %cst_143 = arith.constant 0.000000e+00 : f32
    %529 = vector.broadcast %cst_143 : f32 to vector<2x32xf32>
    %cst_144 = arith.constant 0.000000e+00 : f32
    %530 = vector.broadcast %cst_144 : f32 to vector<2x32xf32>
    %531 = vector.extract_strided_slice %526 {offsets = [0, 0], sizes = [2, 96], strides = [1, 1]} : vector<16x192xf32> to vector<2x96xf32>
    %532 = vector.extract_strided_slice %526 {offsets = [14, 96], sizes = [2, 96], strides = [1, 1]} : vector<16x192xf32> to vector<2x96xf32>
    %533 = tpu.concatenate %529, %530 in 1 : vector<2x32xf32>, vector<2x32xf32> -> vector<2x64xf32>
    %cst_145 = arith.constant dense<0.000000e+00> : vector<2x192xf32>
    %534 = tpu.matmul %533, %527, %cst_145 {dimension_numbers = #tpu.dot_dimension_numbers<[1], [0], [0], [1], [0, 0, 1, 1], [], []>} : vector<2x64xf32>, vector<64x192xf32>, vector<2x192xf32> -> vector<2x192xf32>
    %535 = vector.broadcast %528 : vector<1x192xf32> to vector<2x192xf32>
    %536 = arith.addf %534, %535 : vector<2x192xf32>
    %537 = vector.extract_strided_slice %536 {offsets = [0, 0], sizes = [2, 96], strides = [1, 1]} : vector<2x192xf32> to vector<2x96xf32>
    %538 = vector.extract_strided_slice %531 {offsets = [0, 0], sizes = [2, 32], strides = [1, 1]} : vector<2x96xf32> to vector<2x32xf32>
    %539 = vector.extract_strided_slice %537 {offsets = [0, 0], sizes = [2, 32], strides = [1, 1]} : vector<2x96xf32> to vector<2x32xf32>
    %540 = arith.addf %538, %539 : vector<2x32xf32>
    %541 = arith.negf %540 : vector<2x32xf32>
    %542 = math.exp %541 : vector<2x32xf32>
    %cst_146 = arith.constant 1.000000e+00 : f32
    %543 = vector.broadcast %cst_146 : f32 to vector<2x32xf32>
    %544 = arith.addf %543, %542 : vector<2x32xf32>
    %545 = arith.divf %543, %544 : vector<2x32xf32>
    %546 = vector.extract_strided_slice %531 {offsets = [0, 32], sizes = [2, 32], strides = [1, 1]} : vector<2x96xf32> to vector<2x32xf32>
    %547 = vector.extract_strided_slice %537 {offsets = [0, 32], sizes = [2, 32], strides = [1, 1]} : vector<2x96xf32> to vector<2x32xf32>
    %548 = arith.addf %546, %547 : vector<2x32xf32>
    %549 = arith.negf %548 : vector<2x32xf32>
    %550 = math.exp %549 : vector<2x32xf32>
    %cst_147 = arith.constant 1.000000e+00 : f32
    %551 = vector.broadcast %cst_147 : f32 to vector<2x32xf32>
    %552 = arith.addf %551, %550 : vector<2x32xf32>
    %553 = arith.divf %551, %552 : vector<2x32xf32>
    %554 = vector.extract_strided_slice %531 {offsets = [0, 64], sizes = [2, 32], strides = [1, 1]} : vector<2x96xf32> to vector<2x32xf32>
    %555 = vector.extract_strided_slice %537 {offsets = [0, 64], sizes = [2, 32], strides = [1, 1]} : vector<2x96xf32> to vector<2x32xf32>
    %556 = arith.mulf %545, %555 : vector<2x32xf32>
    %557 = arith.addf %554, %556 : vector<2x32xf32>
    %558 = math.tanh %557 : vector<2x32xf32>
    %cst_148 = arith.constant 1.000000e+00 : f32
    %559 = vector.broadcast %cst_148 : f32 to vector<2x32xf32>
    %560 = arith.subf %559, %553 : vector<2x32xf32>
    %561 = arith.mulf %560, %558 : vector<2x32xf32>
    %562 = arith.mulf %553, %529 : vector<2x32xf32>
    %563 = arith.addf %561, %562 : vector<2x32xf32>
    %564 = vector.extract_strided_slice %536 {offsets = [0, 96], sizes = [2, 96], strides = [1, 1]} : vector<2x192xf32> to vector<2x96xf32>
    %565 = vector.extract_strided_slice %532 {offsets = [0, 0], sizes = [2, 32], strides = [1, 1]} : vector<2x96xf32> to vector<2x32xf32>
    %566 = vector.extract_strided_slice %564 {offsets = [0, 0], sizes = [2, 32], strides = [1, 1]} : vector<2x96xf32> to vector<2x32xf32>
    %567 = arith.addf %565, %566 : vector<2x32xf32>
    %568 = arith.negf %567 : vector<2x32xf32>
    %569 = math.exp %568 : vector<2x32xf32>
    %cst_149 = arith.constant 1.000000e+00 : f32
    %570 = vector.broadcast %cst_149 : f32 to vector<2x32xf32>
    %571 = arith.addf %570, %569 : vector<2x32xf32>
    %572 = arith.divf %570, %571 : vector<2x32xf32>
    %573 = vector.extract_strided_slice %532 {offsets = [0, 32], sizes = [2, 32], strides = [1, 1]} : vector<2x96xf32> to vector<2x32xf32>
    %574 = vector.extract_strided_slice %564 {offsets = [0, 32], sizes = [2, 32], strides = [1, 1]} : vector<2x96xf32> to vector<2x32xf32>
    %575 = arith.addf %573, %574 : vector<2x32xf32>
    %576 = arith.negf %575 : vector<2x32xf32>
    %577 = math.exp %576 : vector<2x32xf32>
    %cst_150 = arith.constant 1.000000e+00 : f32
    %578 = vector.broadcast %cst_150 : f32 to vector<2x32xf32>
    %579 = arith.addf %578, %577 : vector<2x32xf32>
    %580 = arith.divf %578, %579 : vector<2x32xf32>
    %581 = vector.extract_strided_slice %532 {offsets = [0, 64], sizes = [2, 32], strides = [1, 1]} : vector<2x96xf32> to vector<2x32xf32>
    %582 = vector.extract_strided_slice %564 {offsets = [0, 64], sizes = [2, 32], strides = [1, 1]} : vector<2x96xf32> to vector<2x32xf32>
    %583 = arith.mulf %572, %582 : vector<2x32xf32>
    %584 = arith.addf %581, %583 : vector<2x32xf32>
    %585 = math.tanh %584 : vector<2x32xf32>
    %cst_151 = arith.constant 1.000000e+00 : f32
    %586 = vector.broadcast %cst_151 : f32 to vector<2x32xf32>
    %587 = arith.subf %586, %580 : vector<2x32xf32>
    %588 = arith.mulf %587, %585 : vector<2x32xf32>
    %589 = arith.mulf %580, %530 : vector<2x32xf32>
    %590 = arith.addf %588, %589 : vector<2x32xf32>
    %591 = vector.extract_strided_slice %526 {offsets = [2, 0], sizes = [2, 96], strides = [1, 1]} : vector<16x192xf32> to vector<2x96xf32>
    %592 = vector.extract_strided_slice %526 {offsets = [12, 96], sizes = [2, 96], strides = [1, 1]} : vector<16x192xf32> to vector<2x96xf32>
    %593 = tpu.concatenate %563, %590 in 1 : vector<2x32xf32>, vector<2x32xf32> -> vector<2x64xf32>
    %cst_152 = arith.constant dense<0.000000e+00> : vector<2x192xf32>
    %594 = tpu.matmul %593, %527, %cst_152 {dimension_numbers = #tpu.dot_dimension_numbers<[1], [0], [0], [1], [0, 0, 1, 1], [], []>} : vector<2x64xf32>, vector<64x192xf32>, vector<2x192xf32> -> vector<2x192xf32>
    %595 = vector.broadcast %528 : vector<1x192xf32> to vector<2x192xf32>
    %596 = arith.addf %594, %595 : vector<2x192xf32>
    %597 = vector.extract_strided_slice %596 {offsets = [0, 0], sizes = [2, 96], strides = [1, 1]} : vector<2x192xf32> to vector<2x96xf32>
    %598 = vector.extract_strided_slice %591 {offsets = [0, 0], sizes = [2, 32], strides = [1, 1]} : vector<2x96xf32> to vector<2x32xf32>
    %599 = vector.extract_strided_slice %597 {offsets = [0, 0], sizes = [2, 32], strides = [1, 1]} : vector<2x96xf32> to vector<2x32xf32>
    %600 = arith.addf %598, %599 : vector<2x32xf32>
    %601 = arith.negf %600 : vector<2x32xf32>
    %602 = math.exp %601 : vector<2x32xf32>
    %cst_153 = arith.constant 1.000000e+00 : f32
    %603 = vector.broadcast %cst_153 : f32 to vector<2x32xf32>
    %604 = arith.addf %603, %602 : vector<2x32xf32>
    %605 = arith.divf %603, %604 : vector<2x32xf32>
    %606 = vector.extract_strided_slice %591 {offsets = [0, 32], sizes = [2, 32], strides = [1, 1]} : vector<2x96xf32> to vector<2x32xf32>
    %607 = vector.extract_strided_slice %597 {offsets = [0, 32], sizes = [2, 32], strides = [1, 1]} : vector<2x96xf32> to vector<2x32xf32>
    %608 = arith.addf %606, %607 : vector<2x32xf32>
    %609 = arith.negf %608 : vector<2x32xf32>
    %610 = math.exp %609 : vector<2x32xf32>
    %cst_154 = arith.constant 1.000000e+00 : f32
    %611 = vector.broadcast %cst_154 : f32 to vector<2x32xf32>
    %612 = arith.addf %611, %610 : vector<2x32xf32>
    %613 = arith.divf %611, %612 : vector<2x32xf32>
    %614 = vector.extract_strided_slice %591 {offsets = [0, 64], sizes = [2, 32], strides = [1, 1]} : vector<2x96xf32> to vector<2x32xf32>
    %615 = vector.extract_strided_slice %597 {offsets = [0, 64], sizes = [2, 32], strides = [1, 1]} : vector<2x96xf32> to vector<2x32xf32>
    %616 = arith.mulf %605, %615 : vector<2x32xf32>
    %617 = arith.addf %614, %616 : vector<2x32xf32>
    %618 = math.tanh %617 : vector<2x32xf32>
    %cst_155 = arith.constant 1.000000e+00 : f32
    %619 = vector.broadcast %cst_155 : f32 to vector<2x32xf32>
    %620 = arith.subf %619, %613 : vector<2x32xf32>
    %621 = arith.mulf %620, %618 : vector<2x32xf32>
    %622 = arith.mulf %613, %563 : vector<2x32xf32>
    %623 = arith.addf %621, %622 : vector<2x32xf32>
    %624 = vector.extract_strided_slice %596 {offsets = [0, 96], sizes = [2, 96], strides = [1, 1]} : vector<2x192xf32> to vector<2x96xf32>
    %625 = vector.extract_strided_slice %592 {offsets = [0, 0], sizes = [2, 32], strides = [1, 1]} : vector<2x96xf32> to vector<2x32xf32>
    %626 = vector.extract_strided_slice %624 {offsets = [0, 0], sizes = [2, 32], strides = [1, 1]} : vector<2x96xf32> to vector<2x32xf32>
    %627 = arith.addf %625, %626 : vector<2x32xf32>
    %628 = arith.negf %627 : vector<2x32xf32>
    %629 = math.exp %628 : vector<2x32xf32>
    %cst_156 = arith.constant 1.000000e+00 : f32
    %630 = vector.broadcast %cst_156 : f32 to vector<2x32xf32>
    %631 = arith.addf %630, %629 : vector<2x32xf32>
    %632 = arith.divf %630, %631 : vector<2x32xf32>
    %633 = vector.extract_strided_slice %592 {offsets = [0, 32], sizes = [2, 32], strides = [1, 1]} : vector<2x96xf32> to vector<2x32xf32>
    %634 = vector.extract_strided_slice %624 {offsets = [0, 32], sizes = [2, 32], strides = [1, 1]} : vector<2x96xf32> to vector<2x32xf32>
    %635 = arith.addf %633, %634 : vector<2x32xf32>
    %636 = arith.negf %635 : vector<2x32xf32>
    %637 = math.exp %636 : vector<2x32xf32>
    %cst_157 = arith.constant 1.000000e+00 : f32
    %638 = vector.broadcast %cst_157 : f32 to vector<2x32xf32>
    %639 = arith.addf %638, %637 : vector<2x32xf32>
    %640 = arith.divf %638, %639 : vector<2x32xf32>
    %641 = vector.extract_strided_slice %592 {offsets = [0, 64], sizes = [2, 32], strides = [1, 1]} : vector<2x96xf32> to vector<2x32xf32>
    %642 = vector.extract_strided_slice %624 {offsets = [0, 64], sizes = [2, 32], strides = [1, 1]} : vector<2x96xf32> to vector<2x32xf32>
    %643 = arith.mulf %632, %642 : vector<2x32xf32>
    %644 = arith.addf %641, %643 : vector<2x32xf32>
    %645 = math.tanh %644 : vector<2x32xf32>
    %cst_158 = arith.constant 1.000000e+00 : f32
    %646 = vector.broadcast %cst_158 : f32 to vector<2x32xf32>
    %647 = arith.subf %646, %640 : vector<2x32xf32>
    %648 = arith.mulf %647, %645 : vector<2x32xf32>
    %649 = arith.mulf %640, %590 : vector<2x32xf32>
    %650 = arith.addf %648, %649 : vector<2x32xf32>
    %651 = vector.extract_strided_slice %526 {offsets = [4, 0], sizes = [2, 96], strides = [1, 1]} : vector<16x192xf32> to vector<2x96xf32>
    %652 = vector.extract_strided_slice %526 {offsets = [10, 96], sizes = [2, 96], strides = [1, 1]} : vector<16x192xf32> to vector<2x96xf32>
    %653 = tpu.concatenate %623, %650 in 1 : vector<2x32xf32>, vector<2x32xf32> -> vector<2x64xf32>
    %cst_159 = arith.constant dense<0.000000e+00> : vector<2x192xf32>
    %654 = tpu.matmul %653, %527, %cst_159 {dimension_numbers = #tpu.dot_dimension_numbers<[1], [0], [0], [1], [0, 0, 1, 1], [], []>} : vector<2x64xf32>, vector<64x192xf32>, vector<2x192xf32> -> vector<2x192xf32>
    %655 = vector.broadcast %528 : vector<1x192xf32> to vector<2x192xf32>
    %656 = arith.addf %654, %655 : vector<2x192xf32>
    %657 = vector.extract_strided_slice %656 {offsets = [0, 0], sizes = [2, 96], strides = [1, 1]} : vector<2x192xf32> to vector<2x96xf32>
    %658 = vector.extract_strided_slice %651 {offsets = [0, 0], sizes = [2, 32], strides = [1, 1]} : vector<2x96xf32> to vector<2x32xf32>
    %659 = vector.extract_strided_slice %657 {offsets = [0, 0], sizes = [2, 32], strides = [1, 1]} : vector<2x96xf32> to vector<2x32xf32>
    %660 = arith.addf %658, %659 : vector<2x32xf32>
    %661 = arith.negf %660 : vector<2x32xf32>
    %662 = math.exp %661 : vector<2x32xf32>
    %cst_160 = arith.constant 1.000000e+00 : f32
    %663 = vector.broadcast %cst_160 : f32 to vector<2x32xf32>
    %664 = arith.addf %663, %662 : vector<2x32xf32>
    %665 = arith.divf %663, %664 : vector<2x32xf32>
    %666 = vector.extract_strided_slice %651 {offsets = [0, 32], sizes = [2, 32], strides = [1, 1]} : vector<2x96xf32> to vector<2x32xf32>
    %667 = vector.extract_strided_slice %657 {offsets = [0, 32], sizes = [2, 32], strides = [1, 1]} : vector<2x96xf32> to vector<2x32xf32>
    %668 = arith.addf %666, %667 : vector<2x32xf32>
    %669 = arith.negf %668 : vector<2x32xf32>
    %670 = math.exp %669 : vector<2x32xf32>
    %cst_161 = arith.constant 1.000000e+00 : f32
    %671 = vector.broadcast %cst_161 : f32 to vector<2x32xf32>
    %672 = arith.addf %671, %670 : vector<2x32xf32>
    %673 = arith.divf %671, %672 : vector<2x32xf32>
    %674 = vector.extract_strided_slice %651 {offsets = [0, 64], sizes = [2, 32], strides = [1, 1]} : vector<2x96xf32> to vector<2x32xf32>
    %675 = vector.extract_strided_slice %657 {offsets = [0, 64], sizes = [2, 32], strides = [1, 1]} : vector<2x96xf32> to vector<2x32xf32>
    %676 = arith.mulf %665, %675 : vector<2x32xf32>
    %677 = arith.addf %674, %676 : vector<2x32xf32>
    %678 = math.tanh %677 : vector<2x32xf32>
    %cst_162 = arith.constant 1.000000e+00 : f32
    %679 = vector.broadcast %cst_162 : f32 to vector<2x32xf32>
    %680 = arith.subf %679, %673 : vector<2x32xf32>
    %681 = arith.mulf %680, %678 : vector<2x32xf32>
    %682 = arith.mulf %673, %623 : vector<2x32xf32>
    %683 = arith.addf %681, %682 : vector<2x32xf32>
    %684 = vector.extract_strided_slice %656 {offsets = [0, 96], sizes = [2, 96], strides = [1, 1]} : vector<2x192xf32> to vector<2x96xf32>
    %685 = vector.extract_strided_slice %652 {offsets = [0, 0], sizes = [2, 32], strides = [1, 1]} : vector<2x96xf32> to vector<2x32xf32>
    %686 = vector.extract_strided_slice %684 {offsets = [0, 0], sizes = [2, 32], strides = [1, 1]} : vector<2x96xf32> to vector<2x32xf32>
    %687 = arith.addf %685, %686 : vector<2x32xf32>
    %688 = arith.negf %687 : vector<2x32xf32>
    %689 = math.exp %688 : vector<2x32xf32>
    %cst_163 = arith.constant 1.000000e+00 : f32
    %690 = vector.broadcast %cst_163 : f32 to vector<2x32xf32>
    %691 = arith.addf %690, %689 : vector<2x32xf32>
    %692 = arith.divf %690, %691 : vector<2x32xf32>
    %693 = vector.extract_strided_slice %652 {offsets = [0, 32], sizes = [2, 32], strides = [1, 1]} : vector<2x96xf32> to vector<2x32xf32>
    %694 = vector.extract_strided_slice %684 {offsets = [0, 32], sizes = [2, 32], strides = [1, 1]} : vector<2x96xf32> to vector<2x32xf32>
    %695 = arith.addf %693, %694 : vector<2x32xf32>
    %696 = arith.negf %695 : vector<2x32xf32>
    %697 = math.exp %696 : vector<2x32xf32>
    %cst_164 = arith.constant 1.000000e+00 : f32
    %698 = vector.broadcast %cst_164 : f32 to vector<2x32xf32>
    %699 = arith.addf %698, %697 : vector<2x32xf32>
    %700 = arith.divf %698, %699 : vector<2x32xf32>
    %701 = vector.extract_strided_slice %652 {offsets = [0, 64], sizes = [2, 32], strides = [1, 1]} : vector<2x96xf32> to vector<2x32xf32>
    %702 = vector.extract_strided_slice %684 {offsets = [0, 64], sizes = [2, 32], strides = [1, 1]} : vector<2x96xf32> to vector<2x32xf32>
    %703 = arith.mulf %692, %702 : vector<2x32xf32>
    %704 = arith.addf %701, %703 : vector<2x32xf32>
    %705 = math.tanh %704 : vector<2x32xf32>
    %cst_165 = arith.constant 1.000000e+00 : f32
    %706 = vector.broadcast %cst_165 : f32 to vector<2x32xf32>
    %707 = arith.subf %706, %700 : vector<2x32xf32>
    %708 = arith.mulf %707, %705 : vector<2x32xf32>
    %709 = arith.mulf %700, %650 : vector<2x32xf32>
    %710 = arith.addf %708, %709 : vector<2x32xf32>
    %711 = vector.extract_strided_slice %526 {offsets = [6, 0], sizes = [2, 96], strides = [1, 1]} : vector<16x192xf32> to vector<2x96xf32>
    %712 = vector.extract_strided_slice %526 {offsets = [8, 96], sizes = [2, 96], strides = [1, 1]} : vector<16x192xf32> to vector<2x96xf32>
    %713 = tpu.concatenate %683, %710 in 1 : vector<2x32xf32>, vector<2x32xf32> -> vector<2x64xf32>
    %cst_166 = arith.constant dense<0.000000e+00> : vector<2x192xf32>
    %714 = tpu.matmul %713, %527, %cst_166 {dimension_numbers = #tpu.dot_dimension_numbers<[1], [0], [0], [1], [0, 0, 1, 1], [], []>} : vector<2x64xf32>, vector<64x192xf32>, vector<2x192xf32> -> vector<2x192xf32>
    %715 = vector.broadcast %528 : vector<1x192xf32> to vector<2x192xf32>
    %716 = arith.addf %714, %715 : vector<2x192xf32>
    %717 = vector.extract_strided_slice %716 {offsets = [0, 0], sizes = [2, 96], strides = [1, 1]} : vector<2x192xf32> to vector<2x96xf32>
    %718 = vector.extract_strided_slice %711 {offsets = [0, 0], sizes = [2, 32], strides = [1, 1]} : vector<2x96xf32> to vector<2x32xf32>
    %719 = vector.extract_strided_slice %717 {offsets = [0, 0], sizes = [2, 32], strides = [1, 1]} : vector<2x96xf32> to vector<2x32xf32>
    %720 = arith.addf %718, %719 : vector<2x32xf32>
    %721 = arith.negf %720 : vector<2x32xf32>
    %722 = math.exp %721 : vector<2x32xf32>
    %cst_167 = arith.constant 1.000000e+00 : f32
    %723 = vector.broadcast %cst_167 : f32 to vector<2x32xf32>
    %724 = arith.addf %723, %722 : vector<2x32xf32>
    %725 = arith.divf %723, %724 : vector<2x32xf32>
    %726 = vector.extract_strided_slice %711 {offsets = [0, 32], sizes = [2, 32], strides = [1, 1]} : vector<2x96xf32> to vector<2x32xf32>
    %727 = vector.extract_strided_slice %717 {offsets = [0, 32], sizes = [2, 32], strides = [1, 1]} : vector<2x96xf32> to vector<2x32xf32>
    %728 = arith.addf %726, %727 : vector<2x32xf32>
    %729 = arith.negf %728 : vector<2x32xf32>
    %730 = math.exp %729 : vector<2x32xf32>
    %cst_168 = arith.constant 1.000000e+00 : f32
    %731 = vector.broadcast %cst_168 : f32 to vector<2x32xf32>
    %732 = arith.addf %731, %730 : vector<2x32xf32>
    %733 = arith.divf %731, %732 : vector<2x32xf32>
    %734 = vector.extract_strided_slice %711 {offsets = [0, 64], sizes = [2, 32], strides = [1, 1]} : vector<2x96xf32> to vector<2x32xf32>
    %735 = vector.extract_strided_slice %717 {offsets = [0, 64], sizes = [2, 32], strides = [1, 1]} : vector<2x96xf32> to vector<2x32xf32>
    %736 = arith.mulf %725, %735 : vector<2x32xf32>
    %737 = arith.addf %734, %736 : vector<2x32xf32>
    %738 = math.tanh %737 : vector<2x32xf32>
    %cst_169 = arith.constant 1.000000e+00 : f32
    %739 = vector.broadcast %cst_169 : f32 to vector<2x32xf32>
    %740 = arith.subf %739, %733 : vector<2x32xf32>
    %741 = arith.mulf %740, %738 : vector<2x32xf32>
    %742 = arith.mulf %733, %683 : vector<2x32xf32>
    %743 = arith.addf %741, %742 : vector<2x32xf32>
    %744 = vector.extract_strided_slice %716 {offsets = [0, 96], sizes = [2, 96], strides = [1, 1]} : vector<2x192xf32> to vector<2x96xf32>
    %745 = vector.extract_strided_slice %712 {offsets = [0, 0], sizes = [2, 32], strides = [1, 1]} : vector<2x96xf32> to vector<2x32xf32>
    %746 = vector.extract_strided_slice %744 {offsets = [0, 0], sizes = [2, 32], strides = [1, 1]} : vector<2x96xf32> to vector<2x32xf32>
    %747 = arith.addf %745, %746 : vector<2x32xf32>
    %748 = arith.negf %747 : vector<2x32xf32>
    %749 = math.exp %748 : vector<2x32xf32>
    %cst_170 = arith.constant 1.000000e+00 : f32
    %750 = vector.broadcast %cst_170 : f32 to vector<2x32xf32>
    %751 = arith.addf %750, %749 : vector<2x32xf32>
    %752 = arith.divf %750, %751 : vector<2x32xf32>
    %753 = vector.extract_strided_slice %712 {offsets = [0, 32], sizes = [2, 32], strides = [1, 1]} : vector<2x96xf32> to vector<2x32xf32>
    %754 = vector.extract_strided_slice %744 {offsets = [0, 32], sizes = [2, 32], strides = [1, 1]} : vector<2x96xf32> to vector<2x32xf32>
    %755 = arith.addf %753, %754 : vector<2x32xf32>
    %756 = arith.negf %755 : vector<2x32xf32>
    %757 = math.exp %756 : vector<2x32xf32>
    %cst_171 = arith.constant 1.000000e+00 : f32
    %758 = vector.broadcast %cst_171 : f32 to vector<2x32xf32>
    %759 = arith.addf %758, %757 : vector<2x32xf32>
    %760 = arith.divf %758, %759 : vector<2x32xf32>
    %761 = vector.extract_strided_slice %712 {offsets = [0, 64], sizes = [2, 32], strides = [1, 1]} : vector<2x96xf32> to vector<2x32xf32>
    %762 = vector.extract_strided_slice %744 {offsets = [0, 64], sizes = [2, 32], strides = [1, 1]} : vector<2x96xf32> to vector<2x32xf32>
    %763 = arith.mulf %752, %762 : vector<2x32xf32>
    %764 = arith.addf %761, %763 : vector<2x32xf32>
    %765 = math.tanh %764 : vector<2x32xf32>
    %cst_172 = arith.constant 1.000000e+00 : f32
    %766 = vector.broadcast %cst_172 : f32 to vector<2x32xf32>
    %767 = arith.subf %766, %760 : vector<2x32xf32>
    %768 = arith.mulf %767, %765 : vector<2x32xf32>
    %769 = arith.mulf %760, %710 : vector<2x32xf32>
    %770 = arith.addf %768, %769 : vector<2x32xf32>
    %771 = vector.extract_strided_slice %526 {offsets = [8, 0], sizes = [2, 96], strides = [1, 1]} : vector<16x192xf32> to vector<2x96xf32>
    %772 = vector.extract_strided_slice %526 {offsets = [6, 96], sizes = [2, 96], strides = [1, 1]} : vector<16x192xf32> to vector<2x96xf32>
    %773 = tpu.concatenate %743, %770 in 1 : vector<2x32xf32>, vector<2x32xf32> -> vector<2x64xf32>
    %cst_173 = arith.constant dense<0.000000e+00> : vector<2x192xf32>
    %774 = tpu.matmul %773, %527, %cst_173 {dimension_numbers = #tpu.dot_dimension_numbers<[1], [0], [0], [1], [0, 0, 1, 1], [], []>} : vector<2x64xf32>, vector<64x192xf32>, vector<2x192xf32> -> vector<2x192xf32>
    %775 = vector.broadcast %528 : vector<1x192xf32> to vector<2x192xf32>
    %776 = arith.addf %774, %775 : vector<2x192xf32>
    %777 = vector.extract_strided_slice %776 {offsets = [0, 0], sizes = [2, 96], strides = [1, 1]} : vector<2x192xf32> to vector<2x96xf32>
    %778 = vector.extract_strided_slice %771 {offsets = [0, 0], sizes = [2, 32], strides = [1, 1]} : vector<2x96xf32> to vector<2x32xf32>
    %779 = vector.extract_strided_slice %777 {offsets = [0, 0], sizes = [2, 32], strides = [1, 1]} : vector<2x96xf32> to vector<2x32xf32>
    %780 = arith.addf %778, %779 : vector<2x32xf32>
    %781 = arith.negf %780 : vector<2x32xf32>
    %782 = math.exp %781 : vector<2x32xf32>
    %cst_174 = arith.constant 1.000000e+00 : f32
    %783 = vector.broadcast %cst_174 : f32 to vector<2x32xf32>
    %784 = arith.addf %783, %782 : vector<2x32xf32>
    %785 = arith.divf %783, %784 : vector<2x32xf32>
    %786 = vector.extract_strided_slice %771 {offsets = [0, 32], sizes = [2, 32], strides = [1, 1]} : vector<2x96xf32> to vector<2x32xf32>
    %787 = vector.extract_strided_slice %777 {offsets = [0, 32], sizes = [2, 32], strides = [1, 1]} : vector<2x96xf32> to vector<2x32xf32>
    %788 = arith.addf %786, %787 : vector<2x32xf32>
    %789 = arith.negf %788 : vector<2x32xf32>
    %790 = math.exp %789 : vector<2x32xf32>
    %cst_175 = arith.constant 1.000000e+00 : f32
    %791 = vector.broadcast %cst_175 : f32 to vector<2x32xf32>
    %792 = arith.addf %791, %790 : vector<2x32xf32>
    %793 = arith.divf %791, %792 : vector<2x32xf32>
    %794 = vector.extract_strided_slice %771 {offsets = [0, 64], sizes = [2, 32], strides = [1, 1]} : vector<2x96xf32> to vector<2x32xf32>
    %795 = vector.extract_strided_slice %777 {offsets = [0, 64], sizes = [2, 32], strides = [1, 1]} : vector<2x96xf32> to vector<2x32xf32>
    %796 = arith.mulf %785, %795 : vector<2x32xf32>
    %797 = arith.addf %794, %796 : vector<2x32xf32>
    %798 = math.tanh %797 : vector<2x32xf32>
    %cst_176 = arith.constant 1.000000e+00 : f32
    %799 = vector.broadcast %cst_176 : f32 to vector<2x32xf32>
    %800 = arith.subf %799, %793 : vector<2x32xf32>
    %801 = arith.mulf %800, %798 : vector<2x32xf32>
    %802 = arith.mulf %793, %743 : vector<2x32xf32>
    %803 = arith.addf %801, %802 : vector<2x32xf32>
    %804 = vector.extract_strided_slice %776 {offsets = [0, 96], sizes = [2, 96], strides = [1, 1]} : vector<2x192xf32> to vector<2x96xf32>
    %805 = vector.extract_strided_slice %772 {offsets = [0, 0], sizes = [2, 32], strides = [1, 1]} : vector<2x96xf32> to vector<2x32xf32>
    %806 = vector.extract_strided_slice %804 {offsets = [0, 0], sizes = [2, 32], strides = [1, 1]} : vector<2x96xf32> to vector<2x32xf32>
    %807 = arith.addf %805, %806 : vector<2x32xf32>
    %808 = arith.negf %807 : vector<2x32xf32>
    %809 = math.exp %808 : vector<2x32xf32>
    %cst_177 = arith.constant 1.000000e+00 : f32
    %810 = vector.broadcast %cst_177 : f32 to vector<2x32xf32>
    %811 = arith.addf %810, %809 : vector<2x32xf32>
    %812 = arith.divf %810, %811 : vector<2x32xf32>
    %813 = vector.extract_strided_slice %772 {offsets = [0, 32], sizes = [2, 32], strides = [1, 1]} : vector<2x96xf32> to vector<2x32xf32>
    %814 = vector.extract_strided_slice %804 {offsets = [0, 32], sizes = [2, 32], strides = [1, 1]} : vector<2x96xf32> to vector<2x32xf32>
    %815 = arith.addf %813, %814 : vector<2x32xf32>
    %816 = arith.negf %815 : vector<2x32xf32>
    %817 = math.exp %816 : vector<2x32xf32>
    %cst_178 = arith.constant 1.000000e+00 : f32
    %818 = vector.broadcast %cst_178 : f32 to vector<2x32xf32>
    %819 = arith.addf %818, %817 : vector<2x32xf32>
    %820 = arith.divf %818, %819 : vector<2x32xf32>
    %821 = vector.extract_strided_slice %772 {offsets = [0, 64], sizes = [2, 32], strides = [1, 1]} : vector<2x96xf32> to vector<2x32xf32>
    %822 = vector.extract_strided_slice %804 {offsets = [0, 64], sizes = [2, 32], strides = [1, 1]} : vector<2x96xf32> to vector<2x32xf32>
    %823 = arith.mulf %812, %822 : vector<2x32xf32>
    %824 = arith.addf %821, %823 : vector<2x32xf32>
    %825 = math.tanh %824 : vector<2x32xf32>
    %cst_179 = arith.constant 1.000000e+00 : f32
    %826 = vector.broadcast %cst_179 : f32 to vector<2x32xf32>
    %827 = arith.subf %826, %820 : vector<2x32xf32>
    %828 = arith.mulf %827, %825 : vector<2x32xf32>
    %829 = arith.mulf %820, %770 : vector<2x32xf32>
    %830 = arith.addf %828, %829 : vector<2x32xf32>
    %831 = vector.extract_strided_slice %526 {offsets = [10, 0], sizes = [2, 96], strides = [1, 1]} : vector<16x192xf32> to vector<2x96xf32>
    %832 = vector.extract_strided_slice %526 {offsets = [4, 96], sizes = [2, 96], strides = [1, 1]} : vector<16x192xf32> to vector<2x96xf32>
    %833 = tpu.concatenate %803, %830 in 1 : vector<2x32xf32>, vector<2x32xf32> -> vector<2x64xf32>
    %cst_180 = arith.constant dense<0.000000e+00> : vector<2x192xf32>
    %834 = tpu.matmul %833, %527, %cst_180 {dimension_numbers = #tpu.dot_dimension_numbers<[1], [0], [0], [1], [0, 0, 1, 1], [], []>} : vector<2x64xf32>, vector<64x192xf32>, vector<2x192xf32> -> vector<2x192xf32>
    %835 = vector.broadcast %528 : vector<1x192xf32> to vector<2x192xf32>
    %836 = arith.addf %834, %835 : vector<2x192xf32>
    %837 = vector.extract_strided_slice %836 {offsets = [0, 0], sizes = [2, 96], strides = [1, 1]} : vector<2x192xf32> to vector<2x96xf32>
    %838 = vector.extract_strided_slice %831 {offsets = [0, 0], sizes = [2, 32], strides = [1, 1]} : vector<2x96xf32> to vector<2x32xf32>
    %839 = vector.extract_strided_slice %837 {offsets = [0, 0], sizes = [2, 32], strides = [1, 1]} : vector<2x96xf32> to vector<2x32xf32>
    %840 = arith.addf %838, %839 : vector<2x32xf32>
    %841 = arith.negf %840 : vector<2x32xf32>
    %842 = math.exp %841 : vector<2x32xf32>
    %cst_181 = arith.constant 1.000000e+00 : f32
    %843 = vector.broadcast %cst_181 : f32 to vector<2x32xf32>
    %844 = arith.addf %843, %842 : vector<2x32xf32>
    %845 = arith.divf %843, %844 : vector<2x32xf32>
    %846 = vector.extract_strided_slice %831 {offsets = [0, 32], sizes = [2, 32], strides = [1, 1]} : vector<2x96xf32> to vector<2x32xf32>
    %847 = vector.extract_strided_slice %837 {offsets = [0, 32], sizes = [2, 32], strides = [1, 1]} : vector<2x96xf32> to vector<2x32xf32>
    %848 = arith.addf %846, %847 : vector<2x32xf32>
    %849 = arith.negf %848 : vector<2x32xf32>
    %850 = math.exp %849 : vector<2x32xf32>
    %cst_182 = arith.constant 1.000000e+00 : f32
    %851 = vector.broadcast %cst_182 : f32 to vector<2x32xf32>
    %852 = arith.addf %851, %850 : vector<2x32xf32>
    %853 = arith.divf %851, %852 : vector<2x32xf32>
    %854 = vector.extract_strided_slice %831 {offsets = [0, 64], sizes = [2, 32], strides = [1, 1]} : vector<2x96xf32> to vector<2x32xf32>
    %855 = vector.extract_strided_slice %837 {offsets = [0, 64], sizes = [2, 32], strides = [1, 1]} : vector<2x96xf32> to vector<2x32xf32>
    %856 = arith.mulf %845, %855 : vector<2x32xf32>
    %857 = arith.addf %854, %856 : vector<2x32xf32>
    %858 = math.tanh %857 : vector<2x32xf32>
    %cst_183 = arith.constant 1.000000e+00 : f32
    %859 = vector.broadcast %cst_183 : f32 to vector<2x32xf32>
    %860 = arith.subf %859, %853 : vector<2x32xf32>
    %861 = arith.mulf %860, %858 : vector<2x32xf32>
    %862 = arith.mulf %853, %803 : vector<2x32xf32>
    %863 = arith.addf %861, %862 : vector<2x32xf32>
    %864 = vector.extract_strided_slice %836 {offsets = [0, 96], sizes = [2, 96], strides = [1, 1]} : vector<2x192xf32> to vector<2x96xf32>
    %865 = vector.extract_strided_slice %832 {offsets = [0, 0], sizes = [2, 32], strides = [1, 1]} : vector<2x96xf32> to vector<2x32xf32>
    %866 = vector.extract_strided_slice %864 {offsets = [0, 0], sizes = [2, 32], strides = [1, 1]} : vector<2x96xf32> to vector<2x32xf32>
    %867 = arith.addf %865, %866 : vector<2x32xf32>
    %868 = arith.negf %867 : vector<2x32xf32>
    %869 = math.exp %868 : vector<2x32xf32>
    %cst_184 = arith.constant 1.000000e+00 : f32
    %870 = vector.broadcast %cst_184 : f32 to vector<2x32xf32>
    %871 = arith.addf %870, %869 : vector<2x32xf32>
    %872 = arith.divf %870, %871 : vector<2x32xf32>
    %873 = vector.extract_strided_slice %832 {offsets = [0, 32], sizes = [2, 32], strides = [1, 1]} : vector<2x96xf32> to vector<2x32xf32>
    %874 = vector.extract_strided_slice %864 {offsets = [0, 32], sizes = [2, 32], strides = [1, 1]} : vector<2x96xf32> to vector<2x32xf32>
    %875 = arith.addf %873, %874 : vector<2x32xf32>
    %876 = arith.negf %875 : vector<2x32xf32>
    %877 = math.exp %876 : vector<2x32xf32>
    %cst_185 = arith.constant 1.000000e+00 : f32
    %878 = vector.broadcast %cst_185 : f32 to vector<2x32xf32>
    %879 = arith.addf %878, %877 : vector<2x32xf32>
    %880 = arith.divf %878, %879 : vector<2x32xf32>
    %881 = vector.extract_strided_slice %832 {offsets = [0, 64], sizes = [2, 32], strides = [1, 1]} : vector<2x96xf32> to vector<2x32xf32>
    %882 = vector.extract_strided_slice %864 {offsets = [0, 64], sizes = [2, 32], strides = [1, 1]} : vector<2x96xf32> to vector<2x32xf32>
    %883 = arith.mulf %872, %882 : vector<2x32xf32>
    %884 = arith.addf %881, %883 : vector<2x32xf32>
    %885 = math.tanh %884 : vector<2x32xf32>
    %cst_186 = arith.constant 1.000000e+00 : f32
    %886 = vector.broadcast %cst_186 : f32 to vector<2x32xf32>
    %887 = arith.subf %886, %880 : vector<2x32xf32>
    %888 = arith.mulf %887, %885 : vector<2x32xf32>
    %889 = arith.mulf %880, %830 : vector<2x32xf32>
    %890 = arith.addf %888, %889 : vector<2x32xf32>
    %891 = vector.extract_strided_slice %526 {offsets = [12, 0], sizes = [2, 96], strides = [1, 1]} : vector<16x192xf32> to vector<2x96xf32>
    %892 = vector.extract_strided_slice %526 {offsets = [2, 96], sizes = [2, 96], strides = [1, 1]} : vector<16x192xf32> to vector<2x96xf32>
    %893 = tpu.concatenate %863, %890 in 1 : vector<2x32xf32>, vector<2x32xf32> -> vector<2x64xf32>
    %cst_187 = arith.constant dense<0.000000e+00> : vector<2x192xf32>
    %894 = tpu.matmul %893, %527, %cst_187 {dimension_numbers = #tpu.dot_dimension_numbers<[1], [0], [0], [1], [0, 0, 1, 1], [], []>} : vector<2x64xf32>, vector<64x192xf32>, vector<2x192xf32> -> vector<2x192xf32>
    %895 = vector.broadcast %528 : vector<1x192xf32> to vector<2x192xf32>
    %896 = arith.addf %894, %895 : vector<2x192xf32>
    %897 = vector.extract_strided_slice %896 {offsets = [0, 0], sizes = [2, 96], strides = [1, 1]} : vector<2x192xf32> to vector<2x96xf32>
    %898 = vector.extract_strided_slice %891 {offsets = [0, 0], sizes = [2, 32], strides = [1, 1]} : vector<2x96xf32> to vector<2x32xf32>
    %899 = vector.extract_strided_slice %897 {offsets = [0, 0], sizes = [2, 32], strides = [1, 1]} : vector<2x96xf32> to vector<2x32xf32>
    %900 = arith.addf %898, %899 : vector<2x32xf32>
    %901 = arith.negf %900 : vector<2x32xf32>
    %902 = math.exp %901 : vector<2x32xf32>
    %cst_188 = arith.constant 1.000000e+00 : f32
    %903 = vector.broadcast %cst_188 : f32 to vector<2x32xf32>
    %904 = arith.addf %903, %902 : vector<2x32xf32>
    %905 = arith.divf %903, %904 : vector<2x32xf32>
    %906 = vector.extract_strided_slice %891 {offsets = [0, 32], sizes = [2, 32], strides = [1, 1]} : vector<2x96xf32> to vector<2x32xf32>
    %907 = vector.extract_strided_slice %897 {offsets = [0, 32], sizes = [2, 32], strides = [1, 1]} : vector<2x96xf32> to vector<2x32xf32>
    %908 = arith.addf %906, %907 : vector<2x32xf32>
    %909 = arith.negf %908 : vector<2x32xf32>
    %910 = math.exp %909 : vector<2x32xf32>
    %cst_189 = arith.constant 1.000000e+00 : f32
    %911 = vector.broadcast %cst_189 : f32 to vector<2x32xf32>
    %912 = arith.addf %911, %910 : vector<2x32xf32>
    %913 = arith.divf %911, %912 : vector<2x32xf32>
    %914 = vector.extract_strided_slice %891 {offsets = [0, 64], sizes = [2, 32], strides = [1, 1]} : vector<2x96xf32> to vector<2x32xf32>
    %915 = vector.extract_strided_slice %897 {offsets = [0, 64], sizes = [2, 32], strides = [1, 1]} : vector<2x96xf32> to vector<2x32xf32>
    %916 = arith.mulf %905, %915 : vector<2x32xf32>
    %917 = arith.addf %914, %916 : vector<2x32xf32>
    %918 = math.tanh %917 : vector<2x32xf32>
    %cst_190 = arith.constant 1.000000e+00 : f32
    %919 = vector.broadcast %cst_190 : f32 to vector<2x32xf32>
    %920 = arith.subf %919, %913 : vector<2x32xf32>
    %921 = arith.mulf %920, %918 : vector<2x32xf32>
    %922 = arith.mulf %913, %863 : vector<2x32xf32>
    %923 = arith.addf %921, %922 : vector<2x32xf32>
    %924 = vector.extract_strided_slice %896 {offsets = [0, 96], sizes = [2, 96], strides = [1, 1]} : vector<2x192xf32> to vector<2x96xf32>
    %925 = vector.extract_strided_slice %892 {offsets = [0, 0], sizes = [2, 32], strides = [1, 1]} : vector<2x96xf32> to vector<2x32xf32>
    %926 = vector.extract_strided_slice %924 {offsets = [0, 0], sizes = [2, 32], strides = [1, 1]} : vector<2x96xf32> to vector<2x32xf32>
    %927 = arith.addf %925, %926 : vector<2x32xf32>
    %928 = arith.negf %927 : vector<2x32xf32>
    %929 = math.exp %928 : vector<2x32xf32>
    %cst_191 = arith.constant 1.000000e+00 : f32
    %930 = vector.broadcast %cst_191 : f32 to vector<2x32xf32>
    %931 = arith.addf %930, %929 : vector<2x32xf32>
    %932 = arith.divf %930, %931 : vector<2x32xf32>
    %933 = vector.extract_strided_slice %892 {offsets = [0, 32], sizes = [2, 32], strides = [1, 1]} : vector<2x96xf32> to vector<2x32xf32>
    %934 = vector.extract_strided_slice %924 {offsets = [0, 32], sizes = [2, 32], strides = [1, 1]} : vector<2x96xf32> to vector<2x32xf32>
    %935 = arith.addf %933, %934 : vector<2x32xf32>
    %936 = arith.negf %935 : vector<2x32xf32>
    %937 = math.exp %936 : vector<2x32xf32>
    %cst_192 = arith.constant 1.000000e+00 : f32
    %938 = vector.broadcast %cst_192 : f32 to vector<2x32xf32>
    %939 = arith.addf %938, %937 : vector<2x32xf32>
    %940 = arith.divf %938, %939 : vector<2x32xf32>
    %941 = vector.extract_strided_slice %892 {offsets = [0, 64], sizes = [2, 32], strides = [1, 1]} : vector<2x96xf32> to vector<2x32xf32>
    %942 = vector.extract_strided_slice %924 {offsets = [0, 64], sizes = [2, 32], strides = [1, 1]} : vector<2x96xf32> to vector<2x32xf32>
    %943 = arith.mulf %932, %942 : vector<2x32xf32>
    %944 = arith.addf %941, %943 : vector<2x32xf32>
    %945 = math.tanh %944 : vector<2x32xf32>
    %cst_193 = arith.constant 1.000000e+00 : f32
    %946 = vector.broadcast %cst_193 : f32 to vector<2x32xf32>
    %947 = arith.subf %946, %940 : vector<2x32xf32>
    %948 = arith.mulf %947, %945 : vector<2x32xf32>
    %949 = arith.mulf %940, %890 : vector<2x32xf32>
    %950 = arith.addf %948, %949 : vector<2x32xf32>
    %951 = vector.extract_strided_slice %526 {offsets = [14, 0], sizes = [2, 96], strides = [1, 1]} : vector<16x192xf32> to vector<2x96xf32>
    %952 = vector.extract_strided_slice %526 {offsets = [0, 96], sizes = [2, 96], strides = [1, 1]} : vector<16x192xf32> to vector<2x96xf32>
    %953 = tpu.concatenate %923, %950 in 1 : vector<2x32xf32>, vector<2x32xf32> -> vector<2x64xf32>
    %cst_194 = arith.constant dense<0.000000e+00> : vector<2x192xf32>
    %954 = tpu.matmul %953, %527, %cst_194 {dimension_numbers = #tpu.dot_dimension_numbers<[1], [0], [0], [1], [0, 0, 1, 1], [], []>} : vector<2x64xf32>, vector<64x192xf32>, vector<2x192xf32> -> vector<2x192xf32>
    %955 = vector.broadcast %528 : vector<1x192xf32> to vector<2x192xf32>
    %956 = arith.addf %954, %955 : vector<2x192xf32>
    %957 = vector.extract_strided_slice %956 {offsets = [0, 0], sizes = [2, 96], strides = [1, 1]} : vector<2x192xf32> to vector<2x96xf32>
    %958 = vector.extract_strided_slice %951 {offsets = [0, 0], sizes = [2, 32], strides = [1, 1]} : vector<2x96xf32> to vector<2x32xf32>
    %959 = vector.extract_strided_slice %957 {offsets = [0, 0], sizes = [2, 32], strides = [1, 1]} : vector<2x96xf32> to vector<2x32xf32>
    %960 = arith.addf %958, %959 : vector<2x32xf32>
    %961 = arith.negf %960 : vector<2x32xf32>
    %962 = math.exp %961 : vector<2x32xf32>
    %cst_195 = arith.constant 1.000000e+00 : f32
    %963 = vector.broadcast %cst_195 : f32 to vector<2x32xf32>
    %964 = arith.addf %963, %962 : vector<2x32xf32>
    %965 = arith.divf %963, %964 : vector<2x32xf32>
    %966 = vector.extract_strided_slice %951 {offsets = [0, 32], sizes = [2, 32], strides = [1, 1]} : vector<2x96xf32> to vector<2x32xf32>
    %967 = vector.extract_strided_slice %957 {offsets = [0, 32], sizes = [2, 32], strides = [1, 1]} : vector<2x96xf32> to vector<2x32xf32>
    %968 = arith.addf %966, %967 : vector<2x32xf32>
    %969 = arith.negf %968 : vector<2x32xf32>
    %970 = math.exp %969 : vector<2x32xf32>
    %cst_196 = arith.constant 1.000000e+00 : f32
    %971 = vector.broadcast %cst_196 : f32 to vector<2x32xf32>
    %972 = arith.addf %971, %970 : vector<2x32xf32>
    %973 = arith.divf %971, %972 : vector<2x32xf32>
    %974 = vector.extract_strided_slice %951 {offsets = [0, 64], sizes = [2, 32], strides = [1, 1]} : vector<2x96xf32> to vector<2x32xf32>
    %975 = vector.extract_strided_slice %957 {offsets = [0, 64], sizes = [2, 32], strides = [1, 1]} : vector<2x96xf32> to vector<2x32xf32>
    %976 = arith.mulf %965, %975 : vector<2x32xf32>
    %977 = arith.addf %974, %976 : vector<2x32xf32>
    %978 = math.tanh %977 : vector<2x32xf32>
    %cst_197 = arith.constant 1.000000e+00 : f32
    %979 = vector.broadcast %cst_197 : f32 to vector<2x32xf32>
    %980 = arith.subf %979, %973 : vector<2x32xf32>
    %981 = arith.mulf %980, %978 : vector<2x32xf32>
    %982 = arith.mulf %973, %923 : vector<2x32xf32>
    %983 = arith.addf %981, %982 : vector<2x32xf32>
    %984 = vector.extract_strided_slice %956 {offsets = [0, 96], sizes = [2, 96], strides = [1, 1]} : vector<2x192xf32> to vector<2x96xf32>
    %985 = vector.extract_strided_slice %952 {offsets = [0, 0], sizes = [2, 32], strides = [1, 1]} : vector<2x96xf32> to vector<2x32xf32>
    %986 = vector.extract_strided_slice %984 {offsets = [0, 0], sizes = [2, 32], strides = [1, 1]} : vector<2x96xf32> to vector<2x32xf32>
    %987 = arith.addf %985, %986 : vector<2x32xf32>
    %988 = arith.negf %987 : vector<2x32xf32>
    %989 = math.exp %988 : vector<2x32xf32>
    %cst_198 = arith.constant 1.000000e+00 : f32
    %990 = vector.broadcast %cst_198 : f32 to vector<2x32xf32>
    %991 = arith.addf %990, %989 : vector<2x32xf32>
    %992 = arith.divf %990, %991 : vector<2x32xf32>
    %993 = vector.extract_strided_slice %952 {offsets = [0, 32], sizes = [2, 32], strides = [1, 1]} : vector<2x96xf32> to vector<2x32xf32>
    %994 = vector.extract_strided_slice %984 {offsets = [0, 32], sizes = [2, 32], strides = [1, 1]} : vector<2x96xf32> to vector<2x32xf32>
    %995 = arith.addf %993, %994 : vector<2x32xf32>
    %996 = arith.negf %995 : vector<2x32xf32>
    %997 = math.exp %996 : vector<2x32xf32>
    %cst_199 = arith.constant 1.000000e+00 : f32
    %998 = vector.broadcast %cst_199 : f32 to vector<2x32xf32>
    %999 = arith.addf %998, %997 : vector<2x32xf32>
    %1000 = arith.divf %998, %999 : vector<2x32xf32>
    %1001 = vector.extract_strided_slice %952 {offsets = [0, 64], sizes = [2, 32], strides = [1, 1]} : vector<2x96xf32> to vector<2x32xf32>
    %1002 = vector.extract_strided_slice %984 {offsets = [0, 64], sizes = [2, 32], strides = [1, 1]} : vector<2x96xf32> to vector<2x32xf32>
    %1003 = arith.mulf %992, %1002 : vector<2x32xf32>
    %1004 = arith.addf %1001, %1003 : vector<2x32xf32>
    %1005 = math.tanh %1004 : vector<2x32xf32>
    %cst_200 = arith.constant 1.000000e+00 : f32
    %1006 = vector.broadcast %cst_200 : f32 to vector<2x32xf32>
    %1007 = arith.subf %1006, %1000 : vector<2x32xf32>
    %1008 = arith.mulf %1007, %1005 : vector<2x32xf32>
    %1009 = arith.mulf %1000, %950 : vector<2x32xf32>
    %1010 = arith.addf %1008, %1009 : vector<2x32xf32>
    %1011 = tpu.concatenate %983, %1010 in 1 : vector<2x32xf32>, vector<2x32xf32> -> vector<2x64xf32>
    %c0_201 = arith.constant 0 : index
    %c0_202 = arith.constant 0 : index
    %1012 = vector.load %arg8[%c0_201, %c0_202] : memref<2x64xf32, #tpu.memory_space<vmem>>, vector<2x64xf32>
    tpu.vector_store %arg8[%c0_201, %c0_202], %1011 {strides = array<i32>} : memref<2x64xf32, #tpu.memory_space<vmem>>, vector<2x64xf32>,
    return
  }
}

</mosaic_0001>

<bundles_post_ra>
// kernel: translation_encoder_forward.1
= control target key start
LH: loop header
LB: loop body
LE: loop exit
PB: predicated region body
PF: predicated region fallthrough
CT: control target
= control target key end

     0   :  { %v3384_v7 = vmov 0.0   ;;  %s4235_s0 = inlined_call_operand.vmem [shape: f32[8,2,96], index: 0, kind: input, shape index: {}]   ;;  %s4236_s1 = inlined_call_operand.vmem [shape: f32[8,2,96], index: 1, kind: input, shape index: {}]   ;;  %s4237_s2 = inlined_call_operand.vmem [shape: f32[64,192], index: 2, kind: input, shape index: {}]   ;;  %s4238_s3 = inlined_call_operand.vmem [shape: f32[1,192], index: 3, kind: input, shape index: {}]   ;;  %s4239_s4 = inlined_call_operand.vmem [shape: f32[64,192], index: 4, kind: input, shape index: {}]   ;;  %s4240_s5 = inlined_call_operand.vmem [shape: f32[1,192], index: 5, kind: input, shape index: {}]   ;;  %s4241_s6 = inlined_call_operand.vmem [shape: f32[64,192], index: 6, kind: input, shape index: {}]   ;;  %s4242_s7 = inlined_call_operand.vmem [shape: f32[1,192], index: 7, kind: input, shape index: {}]   ;;  %s4243_s8 = inlined_call_operand.hbm [shape: f32[2,64], index: 8, kind: output, shape index: {}]  }
   0x1   :  { %v31_v0 = vld [vmem:[%s4237_s2 + $0x8] sm:$0xff]  ;;  %v33_v1 = vld [vmem:[%s4237_s2 + $0x18] sm:$0xff]  ;;  %v30_v2 = vld [vmem:[%s4237_s2] sm:$0xff]  ;;  %129 = vmatprep.mubr.f32.mxu0 %v3384_v7  ;;  %285 = vmatprep.mubr.f32.mxu1 %v3384_v7 }
   0x2   :  { %v3443_v3 = vpack.c.bf16 %v33_v1, %v31_v0  ;;  %v32_v4 = vld [vmem:[%s4237_s2 + $0x10] sm:$0xff]  ;;  %v35_v5 = vld [vmem:[%s4237_s2 + $0x28] sm:$0xff]  ;;  %v37_v6 = vld [vmem:[%s4237_s2 + $0x38] sm:$0xff] }
   0x3   :  { %v3456_v8 = vpack.c.bf16 %v32_v4, %v30_v2  ;;  %v3458_v9 = vpack.c.bf16 %v37_v6, %v35_v5  ;;  %v34_v10 = vld [vmem:[%s4237_s2 + $0x20] sm:$0xff]  ;;  %v36_v11 = vld [vmem:[%s4237_s2 + $0x30] sm:$0xff]  ;;  %v39_v12 = vld [vmem:[%s4237_s2 + $0x48] sm:$0xff] }
   0x4   :  { %2824 = vmatprep.subr.bf16.mxu0 %v3443_v3  ;;  %v41_v13 = vld [vmem:[%s4237_s2 + $0x58] sm:$0xff]  ;;  %2840 = vmatprep.subr.bf16.mxu1 %v3443_v3  ;;  %v3475_v14 = vpack.c.bf16 %v36_v11, %v34_v10  ;;  %v38_v16 = vld [vmem:[%s4237_s2 + $0x40] sm:$0xff]  ;;  %v40_v17 = vld [vmem:[%s4237_s2 + $0x50] sm:$0xff] }
   0x5   :  { %2826 = vmatpush1.bf16.msra.mxu0 %v3456_v8  ;;  %2842 = vmatpush1.bf16.msra.mxu1 %v3456_v8  ;;  %v3479_v15 = vpack.c.bf16 %v41_v13, %v39_v12  ;;  %v43_v18 = vld [vmem:[%s4237_s2 + $0x68] sm:$0xff]  ;;  %v45_v19 = vld [vmem:[%s4237_s2 + $0x78] sm:$0xff] }
   0x6   :  { %2828 = vmatprep.subr.bf16.mxu0 %v3458_v9  ;;  %2844 = vmatprep.subr.bf16.mxu1 %v3458_v9 }
   0x7   :  { %13 = vsyncpa [#allocation5], 0  ;;  %v3495_v20 = vpack.c.bf16 %v40_v17, %v38_v16  ;;  %v3499_v21 = vpack.c.bf16 %v45_v19, %v43_v18  ;;  %v42_v22 = vld [vmem:[%s4237_s2 + $0x60] sm:$0xff]  ;;  %v44_v23 = vld [vmem:[%s4237_s2 + $0x70] sm:$0xff]  ;;  %v51_v25 = vlaneseq  ;;  %s3385_s16 = smov 64   ;;  %s3386_s17 = smov 96  }
   0x8   :  { %v3509_v24 = vpack.c.bf16 %v44_v23, %v42_v22  ;;  %v46_v28 = vld [vmem:[%s4238_s3] sm:$0x3]  ;;  %s3387_s3 = smov 32   ;;  %v2743_v44 = vld [vmem:[%s4236_s1 + $0xe] sm:$0x3]  ;;  %vm205_vm0 = vcmask 254976  }
   0x9   :  { %2830 = vmatpush1.bf16.msra.mxu0 %v3475_v14  ;;  %2846 = vmatpush1.bf16.msra.mxu1 %v3475_v14  ;;  %v52_v26 = vshrl.u32 %v51_v25, 7  ;;  %v47_v36 = vld [vmem:[%s4235_s0] sm:$0x3]  ;;  %vm216_vm1 = vcmask 261120   ;;  %vm61_vm2 = vcmask 523264   ;;  %vm2727_vm3 = vcmask 523270  }
   0xa   :  { %2832 = vmatprep.subr.bf16.mxu0 %v3479_v15  ;;  %2848 = vmatprep.subr.bf16.mxu1 %v3479_v15 }
   0xb   :  { %v3528_v27 = vsub.s32 0, %v52_v26  ;;  %v3533_v29 = vsub.s32 1, %v52_v26  ;;  %v2747_v26 = vld [vmem:[%s4235_s0 + $0x2] sm:$0x3] }
   0xd   :  { %2834 = vmatpush1.bf16.msra.mxu0 %v3495_v20  ;;  %2850 = vmatpush1.bf16.msra.mxu1 %v3495_v20  ;;  %v3536_v30 = vrot.slane %v46_v28, %v3528_v27  ;;  %v3539_v31 = vrot.slane %v46_v28, %v3533_v29 }
   0xe   :  { %2836 = vmatprep.subr.bf16.mxu0 %v3499_v21  ;;  %2852 = vmatprep.subr.bf16.mxu1 %v3499_v21 }
  0x11   :  { %2838 = vmatpush1.bf16.msra.mxu0 %v3509_v24  ;;  %2854 = vmatpush1.bf16.msra.mxu1 %v3509_v24 }
  0x12   :  { %2856 = vmatprep.subr.bf16.mxu0 %v3443_v3  ;;  %2872 = vmatprep.subr.bf16.mxu1 %v3443_v3 }
  0x14   :  { %130 = vmatmul.mubr.f32.vlgmr.msra.gmra.mrb[0].mxu0 %v3384_v7 }
  0x15   :  { %2858 = vmatpush1.bf16.msra.mxu0 %v3456_v8  ;;  %439 = vmatprep.mubr.f32.mxu0 %v3384_v7 }
  0x16   :  { %2860 = vmatprep.subr.bf16.mxu0 %v3458_v9 }
  0x19   :  { %2862 = vmatpush1.bf16.msra.mxu0 %v3475_v14 }
  0x1a   :  { %2864 = vmatprep.subr.bf16.mxu0 %v3479_v15 }
  0x1d   :  { %2866 = vmatpush1.bf16.msra.mxu0 %v3495_v20 }
  0x1e   :  { %2868 = vmatprep.subr.bf16.mxu0 %v3499_v21 }
  0x21   :  { %2870 = vmatpush1.bf16.msra.mxu0 %v3509_v24 }
  0x22   :  { %2888 = vmatprep.subr.bf16.mxu0 %v3443_v3 }
  0xe7   :  { %v131_v32 = vpop.f32.mrb[0].mxu0 }
  0xe8   :  { %v132_v33 = vadd.f32 %v131_v32, %v3536_v30  ;;  %v133_v34 = vpop.f32.mrb[1].mxu0 }
  0xe9   :  { %v134_v35 = vadd.f32 %v133_v34, %v3539_v31 }
  0xea   :  { %144 = vrot.lane.b32.xlu0 %v132_v33, %s3385_s16  ;;  %v136_v37 = vadd.f32 %v132_v33, %v47_v36 }
  0xeb   :  { %183 = vrot.lane.b32.xlu1 %v134_v35, %s3386_s17 }
  0xec   :  { %v2744_v38 = vmul.f32 -1.442695, %v136_v37 }
  0xee   :  { %162 = vrot.lane.b32.xlu0 %v132_v33, %s3387_s3  ;;  %3104 = vpow2.f32 %v2744_v38 }
  0xf8   :  { %v3105_v39 = vpop.eup %3104 }
  0xf9   :  { %v140_v40 = vadd.f32 1.0, %v3105_v39 }
  0xfb   :  { %3106 = vrcp.f32 %v140_v40 }
 0x105   :  { %v3107_v41 = vpop.eup %3106 }
 0x106   :  { %v154_v59 = vsub.f32 1.0, %v3107_v41  ;;  %v160_v61 = vmul.f32 0.0, %v3107_v41 }
 0x15c   :  { %v145_v42 = vpop.permute.xlu0 %144 }
 0x15d   :  { %v147_v43 = vmul.f32 %v3107_v41, %v145_v42  ;;  %v184_v51 = vpop.permute.xlu1 %183 }
 0x15f   :  { %149 = vrot.lane.b32.xlu1 %v147_v43, %s3385_s16 }
 0x160   :  { %v163_v45 = vpop.permute.xlu0 %162 }
 0x161   :  { %v165_v46 = vadd.f32 %v2743_v44, %v163_v45 }
 0x163   :  { %v2745_v47 = vmul.f32 -1.442695, %v165_v46 }
 0x165   :  { %3108 = vpow2.f32 %v2745_v47 }
 0x16f   :  { %v3109_v48 = vpop.eup %3108 }
 0x170   :  { %v169_v49 = vadd.f32 1.0, %v3109_v48 }
 0x172   :  { %3110 = vrcp.f32 %v169_v49 }
 0x17c   :  { %v3111_v50 = vpop.eup %3110 }
 0x17d   :  { %v186_v52 = vmul.f32 %v3111_v50, %v184_v51 }
 0x17f   :  { %188 = vrot.lane.b32.xlu0 %v186_v52, %s3385_s16 }
 0x183   :  { %173 = vrot.lane.b32.xlu0 %v134_v35, %s3387_s3  ;;  %v2748_v35 = vld [vmem:[%s4236_s1 + $0xc] sm:$0x3] }
 0x1d1   :  { %v150_v53 = vpop.permute.xlu1 %149 }
 0x1d2   :  { %v152_v54 = vadd.f32 %v150_v53, %v47_v36 }
 0x1d4   :  { %3112 = vtanh.f32 %v152_v54 }
 0x1de   :  { %v3113_v55 = vpop.eup %3112 }
 0x1df   :  { %156 = vrot.lane.b32.xlu1 %v3113_v55, %s3386_s17 }
 0x1f1   :  { %v189_v56 = vpop.permute.xlu0 %188 }
 0x1f2   :  { %v191_v57 = vadd.f32 %v2743_v44, %v189_v56 }
 0x1f4   :  { %3114 = vtanh.f32 %v191_v57 }
 0x1f5   :  { %v174_v0 = vpop.permute.xlu0 %173 }
 0x1f6   :  { %v176_v1 = vadd.f32 %v2743_v44, %v174_v0 }
 0x1f8   :  { %v2746_v2 = vmul.f32 -1.442695, %v176_v1 }
 0x1fa   :  { %3116 = vpow2.f32 %v2746_v2 }
 0x1fe   :  { %v3115_v58 = vpop.eup %3114 }
 0x1ff   :  { %195 = vrot.lane.b32.xlu1 %v3115_v58, %s3386_s17 }
 0x204   :  { %v3117_v4 = vpop.eup %3116 }
 0x205   :  { %v180_v5 = vadd.f32 1.0, %v3117_v4 }
 0x207   :  { %3118 = vrcp.f32 %v180_v5 }
 0x211   :  { %v3119_v6 = vpop.eup %3118 }
 0x212   :  { %v193_v11 = vsub.f32 1.0, %v3119_v6  ;;  %v199_v13 = vmul.f32 0.0, %v3119_v6 }
 0x251   :  { %v157_v60 = vpop.permute.xlu1 %156 }
 0x252   :  { %v159_v62 = vmul.f32 %v157_v60, %v154_v59 }
 0x254   :  { %v3557_v63 = vadd.f32 %v160_v61, %v159_v62 }
 0x256   :  { %202 = vrot.lane.b32.xlu0 %v3557_v63, %s3386_s17 }
 0x271   :  { %v196_v10 = vpop.permute.xlu1 %195 }
 0x272   :  { %v198_v12 = vmul.f32 %v196_v10, %v193_v11 }
 0x274   :  { %v3561_v16 = vadd.f32 %v199_v13, %v198_v12 }
 0x2c8   :  { %v203_v17 = vpop.permute.xlu0 %202 }
 0x2c9   :  { %206 = vst.msk [vmem:[#allocation2] sm:$0x3] %vm205_vm0, %v203_v17  ;;  %v217_v18 = vsel %vm216_vm1, %v203_v17, %v3561_v16 }
 0x2ca   :  { %2749 = vmatmul.mubr.msk.f32.vlgmr.msra.gmra.mrb[0].mxu1 %vm61_vm2, %v217_v18  ;;  %v2753_v18 = vld [vmem:[%s4235_s0 + $0x4] sm:$0x3] }
 0x2cb   :  { %2874 = vmatpush1.bf16.msra.mxu1 %v3456_v8  ;;  %593 = vmatprep.mubr.f32.mxu1 %v3384_v7 }
 0x2cc   :  { %2876 = vmatprep.subr.bf16.mxu1 %v3458_v9 }
 0x2cf   :  { %2878 = vmatpush1.bf16.msra.mxu1 %v3475_v14 }
 0x2d0   :  { %2880 = vmatprep.subr.bf16.mxu1 %v3479_v15 }
 0x2d3   :  { %2882 = vmatpush1.bf16.msra.mxu1 %v3495_v20 }
 0x2d4   :  { %2884 = vmatprep.subr.bf16.mxu1 %v3499_v21 }
 0x2d7   :  { %2886 = vmatpush1.bf16.msra.mxu1 %v3509_v24 }
 0x2d8   :  { %2904 = vmatprep.subr.bf16.mxu1 %v3443_v3 }
 0x39d   :  { %v287_v19 = vpop.f32.mrb[0].mxu1 }
 0x39e   :  { %v288_v22 = vadd.f32 %v287_v19, %v3536_v30  ;;  %v289_v23 = vpop.f32.mrb[1].mxu1 }
 0x39f   :  { %v290_v25 = vadd.f32 %v289_v23, %v3539_v31 }
 0x3a0   :  { %318 = vrot.lane.b32.xlu0 %v288_v22, %s3387_s3  ;;  %300 = vrot.lane.b32.xlu1 %v288_v22, %s3385_s16  ;;  %v292_v28 = vadd.f32 %v2747_v26, %v288_v22 }
 0x3a2   :  { %v2750_v32 = vmul.f32 -1.442695, %v292_v28 }
 0x3a4   :  { %339 = vrot.lane.b32.xlu1 %v290_v25, %s3386_s17  ;;  %3120 = vpow2.f32 %v2750_v32 }
 0x3ae   :  { %v3121_v33 = vpop.eup %3120 }
 0x3af   :  { %v296_v34 = vadd.f32 1.0, %v3121_v33 }
 0x3b1   :  { %3122 = vrcp.f32 %v296_v34 }
 0x3bb   :  { %v3123_v36 = vpop.eup %3122 }
 0x3bc   :  { %v310_v53 = vsub.f32 1.0, %v3123_v36  ;;  %v316_v55 = vmul.f32 %v3123_v36, %v3557_v63 }
 0x412   :  { %v319_v37 = vpop.permute.xlu0 %318  ;;  %v301_v38 = vpop.permute.xlu1 %300 }
 0x413   :  { %v321_v39 = vadd.f32 %v2748_v35, %v319_v37  ;;  %v303_v40 = vmul.f32 %v3123_v36, %v301_v38 }
 0x415   :  { %v2751_v41 = vmul.f32 -1.442695, %v321_v39  ;;  %305 = vrot.lane.b32.xlu0 %v303_v40, %s3385_s16 }
 0x416   :  { %v340_v45 = vpop.permute.xlu1 %339 }
 0x417   :  { %3124 = vpow2.f32 %v2751_v41 }
 0x421   :  { %v3125_v42 = vpop.eup %3124 }
 0x422   :  { %v325_v43 = vadd.f32 1.0, %v3125_v42 }
 0x424   :  { %3126 = vrcp.f32 %v325_v43 }
 0x42e   :  { %v3127_v44 = vpop.eup %3126 }
 0x42f   :  { %v342_v46 = vmul.f32 %v3127_v44, %v340_v45 }
 0x431   :  { %344 = vrot.lane.b32.xlu1 %v342_v46, %s3385_s16 }
 0x435   :  { %329 = vrot.lane.b32.xlu1 %v290_v25, %s3387_s3 }
 0x487   :  { %v306_v47 = vpop.permute.xlu0 %305 }
 0x488   :  { %v308_v48 = vadd.f32 %v2747_v26, %v306_v47  ;;  %v2754_v26 = vld [vmem:[%s4236_s1 + $0xa] sm:$0x3] }
 0x48a   :  { %3128 = vtanh.f32 %v308_v48 }
 0x494   :  { %v3129_v49 = vpop.eup %3128 }
 0x495   :  { %312 = vrot.lane.b32.xlu0 %v3129_v49, %s3386_s17 }
 0x4a3   :  { %v345_v50 = vpop.permute.xlu1 %344 }
 0x4a4   :  { %v347_v51 = vadd.f32 %v2748_v35, %v345_v50 }
 0x4a6   :  { %3130 = vtanh.f32 %v347_v51 }
 0x4a7   :  { %v330_v58 = vpop.permute.xlu1 %329 }
 0x4a8   :  { %v332_v59 = vadd.f32 %v2748_v35, %v330_v58 }
 0x4aa   :  { %v2752_v60 = vmul.f32 -1.442695, %v332_v59 }
 0x4ac   :  { %3132 = vpow2.f32 %v2752_v60 }
 0x4b0   :  { %v3131_v52 = vpop.eup %3130 }
 0x4b1   :  { %351 = vrot.lane.b32.xlu0 %v3131_v52, %s3386_s17 }
 0x4b6   :  { %v3133_v61 = vpop.eup %3132 }
 0x4b7   :  { %v336_v62 = vadd.f32 1.0, %v3133_v61 }
 0x4b9   :  { %3134 = vrcp.f32 %v336_v62 }
 0x4c3   :  { %v3135_v0 = vpop.eup %3134 }
 0x4c4   :  { %v349_v2 = vsub.f32 1.0, %v3135_v0  ;;  %v355_v5 = vmul.f32 %v3135_v0, %v3561_v16 }
 0x507   :  { %v313_v54 = vpop.permute.xlu0 %312 }
 0x508   :  { %v315_v56 = vmul.f32 %v313_v54, %v310_v53 }
 0x50a   :  { %v3593_v57 = vadd.f32 %v316_v55, %v315_v56 }
 0x50c   :  { %358 = vrot.lane.b32.xlu1 %v3593_v57, %s3386_s17 }
 0x523   :  { %v352_v1 = vpop.permute.xlu0 %351 }
 0x524   :  { %v354_v4 = vmul.f32 %v352_v1, %v349_v2 }
 0x526   :  { %v3598_v63 = vadd.f32 %v355_v5, %v354_v4 }
 0x57e   :  { %v359_v6 = vpop.permute.xlu1 %358 }
 0x57f   :  { %361 = vst.msk [vmem:[#allocation2 + $0x2] sm:$0x3] %vm205_vm0, %v359_v6  ;;  %v371_v10 = vsel %vm216_vm1, %v359_v6, %v3598_v63 }
 0x580   :  { %2755 = vmatmul.mubr.msk.f32.vlgmr.msra.gmra.mrb[2].mxu0 %vm61_vm2, %v371_v10 }
 0x581   :  { %2890 = vmatpush1.bf16.msra.mxu0 %v3456_v8  ;;  %747 = vmatprep.mubr.f32.mxu0 %v3384_v7 }
 0x582   :  { %2892 = vmatprep.subr.bf16.mxu0 %v3458_v9 }
 0x585   :  { %2894 = vmatpush1.bf16.msra.mxu0 %v3475_v14 }
 0x586   :  { %2896 = vmatprep.subr.bf16.mxu0 %v3479_v15 }
 0x589   :  { %2898 = vmatpush1.bf16.msra.mxu0 %v3495_v20 }
 0x58a   :  { %2900 = vmatprep.subr.bf16.mxu0 %v3499_v21 }
 0x58d   :  { %2902 = vmatpush1.bf16.msra.mxu0 %v3509_v24 }
 0x58e   :  { %2920 = vmatprep.subr.bf16.mxu0 %v3443_v3 }
 0x653   :  { %v441_v11 = vpop.f32.mrb[2].mxu0 }
 0x654   :  { %v442_v12 = vadd.f32 %v441_v11, %v3536_v30  ;;  %v443_v13 = vpop.f32.mrb[3].mxu0  ;;  %v2759_v11 = vld [vmem:[%s4235_s0 + $0x6] sm:$0x3] }
 0x655   :  { %v444_v17 = vadd.f32 %v443_v13, %v3539_v31 }
 0x656   :  { %472 = vrot.lane.b32.xlu1 %v442_v12, %s3387_s3  ;;  %454 = vrot.lane.b32.xlu0 %v442_v12, %s3385_s16  ;;  %v446_v19 = vadd.f32 %v2753_v18, %v442_v12 }
 0x658   :  { %v2756_v22 = vmul.f32 -1.442695, %v446_v19 }
 0x65a   :  { %493 = vrot.lane.b32.xlu0 %v444_v17, %s3386_s17  ;;  %3136 = vpow2.f32 %v2756_v22 }
 0x664   :  { %v3137_v23 = vpop.eup %3136 }
 0x665   :  { %v450_v25 = vadd.f32 1.0, %v3137_v23 }
 0x667   :  { %3138 = vrcp.f32 %v450_v25 }
 0x671   :  { %v3139_v28 = vpop.eup %3138 }
 0x672   :  { %v464_v48 = vsub.f32 1.0, %v3139_v28  ;;  %v470_v50 = vmul.f32 %v3139_v28, %v3593_v57 }
 0x6c8   :  { %v473_v32 = vpop.permute.xlu1 %472  ;;  %v455_v33 = vpop.permute.xlu0 %454 }
 0x6c9   :  { %v475_v34 = vadd.f32 %v2754_v26, %v473_v32  ;;  %v457_v35 = vmul.f32 %v3139_v28, %v455_v33 }
 0x6cb   :  { %v2757_v36 = vmul.f32 -1.442695, %v475_v34  ;;  %459 = vrot.lane.b32.xlu1 %v457_v35, %s3385_s16 }
 0x6cc   :  { %v494_v40 = vpop.permute.xlu0 %493 }
 0x6cd   :  { %3140 = vpow2.f32 %v2757_v36 }
 0x6d7   :  { %v3141_v37 = vpop.eup %3140 }
 0x6d8   :  { %v479_v38 = vadd.f32 1.0, %v3141_v37 }
 0x6da   :  { %3142 = vrcp.f32 %v479_v38 }
 0x6e4   :  { %v3143_v39 = vpop.eup %3142 }
 0x6e5   :  { %v496_v41 = vmul.f32 %v3143_v39, %v494_v40 }
 0x6e7   :  { %498 = vrot.lane.b32.xlu0 %v496_v41, %s3385_s16 }
 0x6eb   :  { %483 = vrot.lane.b32.xlu0 %v444_v17, %s3387_s3 }
 0x73d   :  { %v460_v42 = vpop.permute.xlu1 %459 }
 0x73e   :  { %v462_v43 = vadd.f32 %v2753_v18, %v460_v42  ;;  %v2760_v18 = vld [vmem:[%s4236_s1 + $0x8] sm:$0x3] }
 0x740   :  { %3144 = vtanh.f32 %v462_v43 }
 0x74a   :  { %v3145_v44 = vpop.eup %3144 }
 0x74b   :  { %466 = vrot.lane.b32.xlu1 %v3145_v44, %s3386_s17 }
 0x759   :  { %v499_v45 = vpop.permute.xlu0 %498 }
 0x75a   :  { %v501_v46 = vadd.f32 %v2754_v26, %v499_v45 }
 0x75c   :  { %3146 = vtanh.f32 %v501_v46 }
 0x75d   :  { %v484_v53 = vpop.permute.xlu0 %483 }
 0x75e   :  { %v486_v54 = vadd.f32 %v2754_v26, %v484_v53 }
 0x760   :  { %v2758_v55 = vmul.f32 -1.442695, %v486_v54 }
 0x762   :  { %3148 = vpow2.f32 %v2758_v55 }
 0x766   :  { %v3147_v47 = vpop.eup %3146 }
 0x767   :  { %505 = vrot.lane.b32.xlu1 %v3147_v47, %s3386_s17 }
 0x76c   :  { %v3149_v56 = vpop.eup %3148 }
 0x76d   :  { %v490_v58 = vadd.f32 1.0, %v3149_v56 }
 0x76f   :  { %3150 = vrcp.f32 %v490_v58 }
 0x779   :  { %v3151_v59 = vpop.eup %3150 }
 0x77a   :  { %v503_v61 = vsub.f32 1.0, %v3151_v59  ;;  %v509_v0 = vmul.f32 %v3151_v59, %v3598_v63 }
 0x7bd   :  { %v467_v49 = vpop.permute.xlu1 %466 }
 0x7be   :  { %v469_v51 = vmul.f32 %v467_v49, %v464_v48 }
 0x7c0   :  { %v3630_v52 = vadd.f32 %v470_v50, %v469_v51 }
 0x7c2   :  { %512 = vrot.lane.b32.xlu0 %v3630_v52, %s3386_s17 }
 0x7d9   :  { %v506_v60 = vpop.permute.xlu1 %505 }
 0x7da   :  { %v508_v62 = vmul.f32 %v506_v60, %v503_v61 }
 0x7dc   :  { %v3635_v57 = vadd.f32 %v509_v0, %v508_v62 }
 0x834   :  { %v513_v1 = vpop.permute.xlu0 %512 }
 0x835   :  { %515 = vst.msk [vmem:[#allocation2 + $0x4] sm:$0x3] %vm205_vm0, %v513_v1  ;;  %v525_v2 = vsel %vm216_vm1, %v513_v1, %v3635_v57 }
 0x836   :  { %2761 = vmatmul.mubr.msk.f32.vlgmr.msra.gmra.mrb[2].mxu1 %vm61_vm2, %v525_v2 }
 0x837   :  { %2906 = vmatpush1.bf16.msra.mxu1 %v3456_v8  ;;  %901 = vmatprep.mubr.f32.mxu1 %v3384_v7 }
 0x838   :  { %2908 = vmatprep.subr.bf16.mxu1 %v3458_v9 }
 0x83b   :  { %2910 = vmatpush1.bf16.msra.mxu1 %v3475_v14 }
 0x83c   :  { %2912 = vmatprep.subr.bf16.mxu1 %v3479_v15 }
 0x83f   :  { %2914 = vmatpush1.bf16.msra.mxu1 %v3495_v20 }
 0x840   :  { %2916 = vmatprep.subr.bf16.mxu1 %v3499_v21 }
 0x843   :  { %2918 = vmatpush1.bf16.msra.mxu1 %v3509_v24 }
 0x844   :  { %2936 = vmatprep.subr.bf16.mxu1 %v3443_v3 }
 0x909   :  { %v595_v4 = vpop.f32.mrb[2].mxu1 }
 0x90a   :  { %v596_v5 = vadd.f32 %v595_v4, %v3536_v30  ;;  %v597_v6 = vpop.f32.mrb[3].mxu1  ;;  %v2765_v4 = vld [vmem:[%s4235_s0 + $0x8] sm:$0x3] }
 0x90b   :  { %v598_v10 = vadd.f32 %v597_v6, %v3539_v31 }
 0x90c   :  { %626 = vrot.lane.b32.xlu0 %v596_v5, %s3387_s3  ;;  %608 = vrot.lane.b32.xlu1 %v596_v5, %s3385_s16  ;;  %v600_v12 = vadd.f32 %v2759_v11, %v596_v5 }
 0x90e   :  { %v2762_v13 = vmul.f32 -1.442695, %v600_v12  ;;  %v2766_v12 = vld [vmem:[%s4236_s1 + $0x6] sm:$0x3] }
 0x910   :  { %647 = vrot.lane.b32.xlu1 %v598_v10, %s3386_s17  ;;  %3152 = vpow2.f32 %v2762_v13 }
 0x91a   :  { %v3153_v3 = vpop.eup %3152 }
 0x91b   :  { %v604_v17 = vadd.f32 1.0, %v3153_v3 }
 0x91d   :  { %3154 = vrcp.f32 %v604_v17 }
 0x927   :  { %v3155_v19 = vpop.eup %3154 }
 0x928   :  { %v618_v43 = vsub.f32 1.0, %v3155_v19  ;;  %v624_v45 = vmul.f32 %v3155_v19, %v3630_v52 }
 0x97e   :  { %v627_v22 = vpop.permute.xlu0 %626  ;;  %v609_v23 = vpop.permute.xlu1 %608 }
 0x97f   :  { %v629_v25 = vadd.f32 %v2760_v18, %v627_v22  ;;  %v611_v26 = vmul.f32 %v3155_v19, %v609_v23 }
 0x981   :  { %v2763_v28 = vmul.f32 -1.442695, %v629_v25  ;;  %613 = vrot.lane.b32.xlu0 %v611_v26, %s3385_s16 }
 0x982   :  { %v648_v35 = vpop.permute.xlu1 %647 }
 0x983   :  { %3156 = vpow2.f32 %v2763_v28 }
 0x98d   :  { %v3157_v32 = vpop.eup %3156 }
 0x98e   :  { %v633_v33 = vadd.f32 1.0, %v3157_v32 }
 0x990   :  { %3158 = vrcp.f32 %v633_v33 }
 0x99a   :  { %v3159_v34 = vpop.eup %3158 }
 0x99b   :  { %v650_v36 = vmul.f32 %v3159_v34, %v648_v35 }
 0x99d   :  { %652 = vrot.lane.b32.xlu1 %v650_v36, %s3385_s16 }
 0x9a1   :  { %637 = vrot.lane.b32.xlu1 %v598_v10, %s3387_s3 }
 0x9f3   :  { %v614_v37 = vpop.permute.xlu0 %613 }
 0x9f4   :  { %v616_v38 = vadd.f32 %v2759_v11, %v614_v37 }
 0x9f6   :  { %3160 = vtanh.f32 %v616_v38 }
 0xa00   :  { %v3161_v39 = vpop.eup %3160 }
 0xa01   :  { %620 = vrot.lane.b32.xlu0 %v3161_v39, %s3386_s17 }
 0xa0f   :  { %v653_v40 = vpop.permute.xlu1 %652 }
 0xa10   :  { %v655_v41 = vadd.f32 %v2760_v18, %v653_v40 }
 0xa12   :  { %3162 = vtanh.f32 %v655_v41 }
 0xa13   :  { %v638_v48 = vpop.permute.xlu1 %637 }
 0xa14   :  { %v640_v49 = vadd.f32 %v2760_v18, %v638_v48 }
 0xa16   :  { %v2764_v50 = vmul.f32 -1.442695, %v640_v49 }
 0xa18   :  { %3164 = vpow2.f32 %v2764_v50 }
 0xa1c   :  { %v3163_v42 = vpop.eup %3162 }
 0xa1d   :  { %659 = vrot.lane.b32.xlu0 %v3163_v42, %s3386_s17 }
 0xa22   :  { %v3165_v51 = vpop.eup %3164 }
 0xa23   :  { %v644_v53 = vadd.f32 1.0, %v3165_v51 }
 0xa25   :  { %3166 = vrcp.f32 %v644_v53 }
 0xa2f   :  { %v3167_v54 = vpop.eup %3166 }
 0xa30   :  { %v657_v56 = vsub.f32 1.0, %v3167_v54  ;;  %v663_v59 = vmul.f32 %v3167_v54, %v3635_v57 }
 0xa73   :  { %v621_v44 = vpop.permute.xlu0 %620 }
 0xa74   :  { %v623_v46 = vmul.f32 %v621_v44, %v618_v43 }
 0xa76   :  { %v3667_v47 = vadd.f32 %v624_v45, %v623_v46 }
 0xa78   :  { %666 = vrot.lane.b32.xlu1 %v3667_v47, %s3386_s17 }
 0xa8f   :  { %v660_v55 = vpop.permute.xlu0 %659 }
 0xa90   :  { %v662_v58 = vmul.f32 %v660_v55, %v657_v56 }
 0xa92   :  { %v3672_v52 = vadd.f32 %v663_v59, %v662_v58 }
 0xaea   :  { %v667_v60 = vpop.permute.xlu1 %666 }
 0xaeb   :  { %669 = vst.msk [vmem:[#allocation2 + $0x6] sm:$0x3] %vm205_vm0, %v667_v60  ;;  %v679_v61 = vsel %vm216_vm1, %v667_v60, %v3672_v52 }
 0xaec   :  { %2767 = vmatmul.mubr.msk.f32.vlgmr.msra.gmra.mrb[4].mxu0 %vm61_vm2, %v679_v61 }
 0xaed   :  { %2922 = vmatpush1.bf16.msra.mxu0 %v3456_v8  ;;  %1055 = vmatprep.mubr.f32.mxu0 %v3384_v7 }
 0xaee   :  { %2924 = vmatprep.subr.bf16.mxu0 %v3458_v9 }
 0xaf1   :  { %2926 = vmatpush1.bf16.msra.mxu0 %v3475_v14 }
 0xaf2   :  { %2928 = vmatprep.subr.bf16.mxu0 %v3479_v15 }
 0xaf5   :  { %2930 = vmatpush1.bf16.msra.mxu0 %v3495_v20 }
 0xaf6   :  { %2932 = vmatprep.subr.bf16.mxu0 %v3499_v21 }
 0xaf9   :  { %2934 = vmatpush1.bf16.msra.mxu0 %v3509_v24 }
 0xbbf   :  { %v749_v62 = vpop.f32.mrb[4].mxu0 }
 0xbc0   :  { %v750_v0 = vadd.f32 %v749_v62, %v3536_v30  ;;  %v751_v1 = vpop.f32.mrb[5].mxu0 }
 0xbc1   :  { %v752_v2 = vadd.f32 %v751_v1, %v3539_v31 }
 0xbc2   :  { %780 = vrot.lane.b32.xlu1 %v750_v0, %s3387_s3  ;;  %762 = vrot.lane.b32.xlu0 %v750_v0, %s3385_s16  ;;  %v754_v5 = vadd.f32 %v2765_v4, %v750_v0 }
 0xbc4   :  { %v2768_v6 = vmul.f32 -1.442695, %v754_v5 }
 0xbc6   :  { %801 = vrot.lane.b32.xlu0 %v752_v2, %s3386_s17  ;;  %3168 = vpow2.f32 %v2768_v6 }
 0xbd0   :  { %v3169_v10 = vpop.eup %3168 }
 0xbd1   :  { %v758_v11 = vadd.f32 1.0, %v3169_v10 }
 0xbd3   :  { %3170 = vrcp.f32 %v758_v11 }
 0xbdd   :  { %v3171_v13 = vpop.eup %3170 }
 0xbde   :  { %v772_v39 = vsub.f32 1.0, %v3171_v13  ;;  %v778_v41 = vmul.f32 %v3171_v13, %v3667_v47 }
 0xc34   :  { %v781_v3 = vpop.permute.xlu1 %780  ;;  %v763_v17 = vpop.permute.xlu0 %762 }
 0xc35   :  { %v783_v18 = vadd.f32 %v2766_v12, %v781_v3  ;;  %v765_v19 = vmul.f32 %v3171_v13, %v763_v17 }
 0xc37   :  { %v2769_v22 = vmul.f32 -1.442695, %v783_v18  ;;  %767 = vrot.lane.b32.xlu1 %v765_v19, %s3385_s16 }
 0xc38   :  { %v802_v28 = vpop.permute.xlu0 %801 }
 0xc39   :  { %3172 = vpow2.f32 %v2769_v22 }
 0xc43   :  { %v3173_v23 = vpop.eup %3172 }
 0xc44   :  { %v787_v25 = vadd.f32 1.0, %v3173_v23 }
 0xc46   :  { %3174 = vrcp.f32 %v787_v25  ;;  %v1291_v25 = vld [vmem:[%s4239_s4 + $0x8] sm:$0xff] }
 0xc50   :  { %v3175_v26 = vpop.eup %3174 }
 0xc51   :  { %v804_v32 = vmul.f32 %v3175_v26, %v802_v28  ;;  %v1293_v26 = vld [vmem:[%s4239_s4 + $0x18] sm:$0xff] }
 0xc52   :  { %v2959_v28 = vpack.c.bf16 %v1293_v26, %v1291_v25 }
 0xc53   :  { %806 = vrot.lane.b32.xlu0 %v804_v32, %s3385_s16 }
 0xc54   :  { %2960 = vmatprep.subr.bf16.mxu0 %v2959_v28 }
 0xc57   :  { %791 = vrot.lane.b32.xlu0 %v752_v2, %s3387_s3 }
 0xca9   :  { %v768_v33 = vpop.permute.xlu1 %767 }
 0xcaa   :  { %v770_v34 = vadd.f32 %v2765_v4, %v768_v33 }
 0xcac   :  { %3176 = vtanh.f32 %v770_v34 }
 0xcb6   :  { %v3177_v35 = vpop.eup %3176 }
 0xcb7   :  { %774 = vrot.lane.b32.xlu1 %v3177_v35, %s3386_s17 }
 0xcc5   :  { %v807_v36 = vpop.permute.xlu0 %806 }
 0xcc6   :  { %v809_v37 = vadd.f32 %v2766_v12, %v807_v36 }
 0xcc8   :  { %3178 = vtanh.f32 %v809_v37 }
 0xcc9   :  { %v792_v44 = vpop.permute.xlu0 %791 }
 0xcca   :  { %v794_v45 = vadd.f32 %v2766_v12, %v792_v44 }
 0xccc   :  { %v2770_v46 = vmul.f32 -1.442695, %v794_v45 }
 0xcce   :  { %3180 = vpow2.f32 %v2770_v46 }
 0xcd2   :  { %v3179_v38 = vpop.eup %3178 }
 0xcd3   :  { %813 = vrot.lane.b32.xlu1 %v3179_v38, %s3386_s17 }
 0xcd8   :  { %v3181_v48 = vpop.eup %3180 }
 0xcd9   :  { %v798_v49 = vadd.f32 1.0, %v3181_v48  ;;  %v1292_v48 = vld [vmem:[%s4239_s4 + $0x10] sm:$0xff] }
 0xcdb   :  { %3182 = vrcp.f32 %v798_v49 }
 0xce5   :  { %v3183_v50 = vpop.eup %3182 }
 0xce6   :  { %v811_v53 = vsub.f32 1.0, %v3183_v50  ;;  %v817_v55 = vmul.f32 %v3183_v50, %v3672_v52  ;;  %v1295_v50 = vld [vmem:[%s4239_s4 + $0x28] sm:$0xff] }
 0xd29   :  { %v775_v40 = vpop.permute.xlu1 %774 }
 0xd2a   :  { %v777_v42 = vmul.f32 %v775_v40, %v772_v39 }
 0xd2c   :  { %v3703_v43 = vadd.f32 %v778_v41, %v777_v42 }
 0xd2e   :  { %820 = vrot.lane.b32.xlu0 %v3703_v43, %s3386_s17 }
 0xd45   :  { %v814_v51 = vpop.permute.xlu1 %813 }
 0xd46   :  { %v816_v54 = vmul.f32 %v814_v51, %v811_v53  ;;  %v1297_v51 = vld [vmem:[%s4239_s4 + $0x38] sm:$0xff] }
 0xd48   :  { %v3708_v47 = vadd.f32 %v817_v55, %v816_v54 }
 0xda0   :  { %v821_v56 = vpop.permute.xlu0 %820 }
 0xda1   :  { %823 = vst.msk [vmem:[#allocation2 + $0x8] sm:$0x3] %vm205_vm0, %v821_v56  ;;  %v833_v58 = vsel %vm216_vm1, %v821_v56, %v3708_v47  ;;  %v2963_v56 = vpack.c.bf16 %v1297_v51, %v1295_v50 }
 0xda2   :  { %2773 = vmatmul.mubr.msk.f32.vlgmr.msra.gmra.mrb[4].mxu1 %vm61_vm2, %v833_v58  ;;  %v1294_v58 = vld [vmem:[%s4239_s4 + $0x20] sm:$0xff] }
 0xda3   :  { %2938 = vmatpush1.bf16.msra.mxu1 %v3456_v8  ;;  %1208 = vmatprep.mubr.f32.mxu1 %v3384_v7 }
 0xda4   :  { %2940 = vmatprep.subr.bf16.mxu1 %v3458_v9  ;;  %v2771_v9 = vld [vmem:[%s4235_s0 + $0xa] sm:$0x3] }
 0xda7   :  { %2942 = vmatpush1.bf16.msra.mxu1 %v3475_v14 }
 0xda8   :  { %2944 = vmatprep.subr.bf16.mxu1 %v3479_v15 }
 0xdab   :  { %2946 = vmatpush1.bf16.msra.mxu1 %v3495_v20 }
 0xdac   :  { %2948 = vmatprep.subr.bf16.mxu1 %v3499_v21 }
 0xdaf   :  { %2950 = vmatpush1.bf16.msra.mxu1 %v3509_v24  ;;  %v2772_v24 = vld [vmem:[%s4236_s1 + $0x4] sm:$0x3] }
 0xe75   :  { %v903_v59 = vpop.f32.mrb[4].mxu1 }
 0xe76   :  { %v904_v60 = vadd.f32 %v903_v59, %v3536_v30  ;;  %v905_v61 = vpop.f32.mrb[5].mxu1  ;;  %v1296_v59 = vld [vmem:[%s4239_s4 + $0x30] sm:$0xff] }
 0xe77   :  { %v906_v8 = vadd.f32 %v905_v61, %v3539_v31  ;;  %v2965_v61 = vpack.c.bf16 %v1296_v59, %v1294_v58 }
 0xe78   :  { %934 = vrot.lane.b32.xlu0 %v904_v60, %s3387_s3  ;;  %916 = vrot.lane.b32.xlu1 %v904_v60, %s3385_s16  ;;  %v908_v14 = vadd.f32 %v2771_v9, %v904_v60 }
 0xe7a   :  { %v2774_v15 = vmul.f32 -1.442695, %v908_v14 }
 0xe7c   :  { %955 = vrot.lane.b32.xlu1 %v906_v8, %s3386_s17  ;;  %3184 = vpow2.f32 %v2774_v15 }
 0xe86   :  { %v3185_v20 = vpop.eup %3184 }
 0xe87   :  { %v912_v21 = vadd.f32 1.0, %v3185_v20 }
 0xe89   :  { %3186 = vrcp.f32 %v912_v21 }
 0xe93   :  { %v3187_v62 = vpop.eup %3186 }
 0xe94   :  { %v926_v32 = vsub.f32 1.0, %v3187_v62  ;;  %v932_v34 = vmul.f32 %v3187_v62, %v3703_v43  ;;  %v1290_v43 = vld [vmem:[%s4239_s4] sm:$0xff] }
 0xe95   :  { %v2961_v54 = vpack.c.bf16 %v1292_v48, %v1290_v43 }
 0xeea   :  { %v935_v0 = vpop.permute.xlu0 %934  ;;  %v917_v1 = vpop.permute.xlu1 %916 }
 0xeeb   :  { %v937_v2 = vadd.f32 %v2772_v24, %v935_v0  ;;  %v919_v4 = vmul.f32 %v3187_v62, %v917_v1  ;;  %v2777_v62 = vld [vmem:[%s4235_s0 + $0xc] sm:$0x3] }
 0xeed   :  { %v2775_v5 = vmul.f32 -1.442695, %v937_v2  ;;  %921 = vrot.lane.b32.xlu0 %v919_v4, %s3385_s16 }
 0xeee   :  { %v956_v12 = vpop.permute.xlu1 %955 }
 0xeef   :  { %3188 = vpow2.f32 %v2775_v5  ;;  %v2778_v5 = vld [vmem:[%s4236_s1 + $0x2] sm:$0x3] }
 0xef9   :  { %v3189_v6 = vpop.eup %3188 }
 0xefa   :  { %v941_v10 = vadd.f32 1.0, %v3189_v6 }
 0xefc   :  { %3190 = vrcp.f32 %v941_v10 }
 0xf06   :  { %v3191_v11 = vpop.eup %3190 }
 0xf07   :  { %v958_v13 = vmul.f32 %v3191_v11, %v956_v12 }
 0xf09   :  { %960 = vrot.lane.b32.xlu1 %v958_v13, %s3385_s16 }
 0xf0d   :  { %945 = vrot.lane.b32.xlu1 %v906_v8, %s3387_s3  ;;  %v1306_v8 = vld [vmem:[#allocation2] sm:$0xff] }
 0xf5f   :  { %v922_v3 = vpop.permute.xlu0 %921 }
 0xf60   :  { %v924_v17 = vadd.f32 %v2771_v9, %v922_v3 }
 0xf62   :  { %3192 = vtanh.f32 %v924_v17 }
 0xf6c   :  { %v3193_v18 = vpop.eup %3192 }
 0xf6d   :  { %928 = vrot.lane.b32.xlu0 %v3193_v18, %s3386_s17 }
 0xf7b   :  { %v961_v19 = vpop.permute.xlu1 %960 }
 0xf7c   :  { %v963_v22 = vadd.f32 %v2772_v24, %v961_v19 }
 0xf7e   :  { %3194 = vtanh.f32 %v963_v22 }
 0xf7f   :  { %v946_v37 = vpop.permute.xlu1 %945 }
 0xf80   :  { %v948_v38 = vadd.f32 %v2772_v24, %v946_v37 }
 0xf82   :  { %v2776_v39 = vmul.f32 -1.442695, %v948_v38 }
 0xf84   :  { %3196 = vpow2.f32 %v2776_v39 }
 0xf88   :  { %v3195_v23 = vpop.eup %3194 }
 0xf89   :  { %967 = vrot.lane.b32.xlu0 %v3195_v23, %s3386_s17 }
 0xf8e   :  { %v3197_v40 = vpop.eup %3196 }
 0xf8f   :  { %v952_v41 = vadd.f32 1.0, %v3197_v40 }
 0xf91   :  { %3198 = vrcp.f32 %v952_v41 }
 0xf9b   :  { %v3199_v42 = vpop.eup %3198 }
 0xf9c   :  { %v965_v45 = vsub.f32 1.0, %v3199_v42  ;;  %v971_v49 = vmul.f32 %v3199_v42, %v3708_v47 }
 0xfdf   :  { %v929_v33 = vpop.permute.xlu0 %928 }
 0xfe0   :  { %v931_v35 = vmul.f32 %v929_v33, %v926_v32 }
 0xfe2   :  { %v3745_v36 = vadd.f32 %v932_v34, %v931_v35 }
 0xfe4   :  { %974 = vrot.lane.b32.xlu1 %v3745_v36, %s3386_s17 }
 0xffb   :  { %v968_v44 = vpop.permute.xlu0 %967 }
 0xffc   :  { %v970_v46 = vmul.f32 %v968_v44, %v965_v45 }
 0xffe   :  { %v3762_v53 = vadd.f32 %v971_v49, %v970_v46 }
0x1056   :  { %v975_v55 = vpop.permute.xlu1 %974 }
0x1057   :  { %977 = vst.msk [vmem:[#allocation2 + $0xa] sm:$0x3] %vm205_vm0, %v975_v55  ;;  %v987_v60 = vsel %vm216_vm1, %v975_v55, %v3762_v53 }
0x1058   :  { %2779 = vmatmul.mubr.msk.f32.vlgmr.msra.gmra.mrb[6].mxu0 %vm61_vm2, %v987_v60 }
0x1059   :  { %2962 = vmatpush1.bf16.msra.mxu0 %v2961_v54  ;;  %1463 = vmatprep.mubr.f32.mxu0 %v3384_v7 }
0x105a   :  { %2964 = vmatprep.subr.bf16.mxu0 %v2963_v56 }
0x105d   :  { %2966 = vmatpush1.bf16.msra.mxu0 %v2965_v61  ;;  %v2783_v61 = vld [vmem:[%s4235_s0 + $0xe] sm:$0x3] }
0x1060   :  { %2790 = vmatmul.mubr.msk.f32.vlgmr.msra.gmra.mrb[8].mxu0 %vm216_vm1, %v1306_v8 }
0x1061   :  { %1469 = vmatprep.mubr.f32.mxu0 %v3384_v7 }
0x112b   :  { %v1057_v9 = vpop.f32.mrb[6].mxu0 }
0x112c   :  { %v1058_v14 = vadd.f32 %v1057_v9, %v3536_v30  ;;  %v1059_v15 = vpop.f32.mrb[7].mxu0 }
0x112d   :  { %v1060_v20 = vadd.f32 %v1059_v15, %v3539_v31 }
0x112e   :  { %1088 = vrot.lane.b32.xlu1 %v1058_v14, %s3387_s3  ;;  %1070 = vrot.lane.b32.xlu0 %v1058_v14, %s3385_s16  ;;  %v1062_v0 = vadd.f32 %v2777_v62, %v1058_v14 }
0x1130   :  { %v2780_v1 = vmul.f32 -1.442695, %v1062_v0 }
0x1132   :  { %1109 = vrot.lane.b32.xlu0 %v1060_v20, %s3386_s17  ;;  %3200 = vpow2.f32 %v2780_v1 }
0x1133   :  { %v3782_v21 = vpop.f32.mrb[8].mxu0 }
0x1134   :  { %v3784_v24 = vpop.f32.mrb[9].mxu0 }
0x113c   :  { %v3201_v2 = vpop.eup %3200 }
0x113d   :  { %v1066_v4 = vadd.f32 1.0, %v3201_v2 }
0x113f   :  { %3202 = vrcp.f32 %v1066_v4 }
0x1149   :  { %v3203_v6 = vpop.eup %3202 }
0x114a   :  { %v1080_v35 = vsub.f32 1.0, %v3203_v6  ;;  %v1086_v38 = vmul.f32 %v3203_v6, %v3745_v36 }
0x11a0   :  { %v1089_v10 = vpop.permute.xlu1 %1088  ;;  %v1071_v11 = vpop.permute.xlu0 %1070 }
0x11a1   :  { %v1091_v12 = vadd.f32 %v2778_v5, %v1089_v10  ;;  %v1073_v13 = vmul.f32 %v3203_v6, %v1071_v11 }
0x11a3   :  { %v2781_v3 = vmul.f32 -1.442695, %v1091_v12  ;;  %1075 = vrot.lane.b32.xlu1 %v1073_v13, %s3385_s16 }
0x11a4   :  { %v1110_v22 = vpop.permute.xlu0 %1109 }
0x11a5   :  { %3204 = vpow2.f32 %v2781_v3 }
0x11af   :  { %v3205_v17 = vpop.eup %3204 }
0x11b0   :  { %v1095_v18 = vadd.f32 1.0, %v3205_v17 }
0x11b2   :  { %3206 = vrcp.f32 %v1095_v18 }
0x11bc   :  { %v3207_v19 = vpop.eup %3206 }
0x11bd   :  { %v1112_v23 = vmul.f32 %v3207_v19, %v1110_v22  ;;  %v1299_v22 = vld [vmem:[%s4239_s4 + $0x48] sm:$0xff] }
0x11bf   :  { %1114 = vrot.lane.b32.xlu0 %v1112_v23, %s3385_s16  ;;  %v1301_v23 = vld [vmem:[%s4239_s4 + $0x58] sm:$0xff] }
0x11c3   :  { %1099 = vrot.lane.b32.xlu0 %v1060_v20, %s3387_s3 }
0x1215   :  { %v1076_v25 = vpop.permute.xlu1 %1075 }
0x1216   :  { %v1078_v26 = vadd.f32 %v2777_v62, %v1076_v25  ;;  %v2951_v25 = vpack.c.bf16 %v1301_v23, %v1299_v22 }
0x1218   :  { %3208 = vtanh.f32 %v1078_v26  ;;  %2952 = vmatprep.subr.bf16.mxu1 %v2951_v25 }
0x1222   :  { %v3209_v28 = vpop.eup %3208 }
0x1223   :  { %1082 = vrot.lane.b32.xlu1 %v3209_v28, %s3386_s17 }
0x1231   :  { %v1115_v32 = vpop.permute.xlu0 %1114 }
0x1232   :  { %v1117_v33 = vadd.f32 %v2778_v5, %v1115_v32 }
0x1234   :  { %3210 = vtanh.f32 %v1117_v33 }
0x1235   :  { %v1100_v41 = vpop.permute.xlu0 %1099 }
0x1236   :  { %v1102_v42 = vadd.f32 %v2778_v5, %v1100_v41 }
0x1238   :  { %v2782_v44 = vmul.f32 -1.442695, %v1102_v42 }
0x123a   :  { %3212 = vpow2.f32 %v2782_v44  ;;  %v1493_v44 = vld [vmem:[%s4241_s6 + $0x8] sm:$0xff] }
0x123e   :  { %v3211_v34 = vpop.eup %3210 }
0x123f   :  { %1121 = vrot.lane.b32.xlu1 %v3211_v34, %s3386_s17  ;;  %v1298_v34 = vld [vmem:[%s4239_s4 + $0x40] sm:$0xff] }
0x1244   :  { %v3213_v45 = vpop.eup %3212 }
0x1245   :  { %v1106_v46 = vadd.f32 1.0, %v3213_v45  ;;  %v1495_v45 = vld [vmem:[%s4241_s6 + $0x18] sm:$0xff] }
0x1247   :  { %3214 = vrcp.f32 %v1106_v46  ;;  %v3869_v46 = vpack.c.bf16 %v1495_v45, %v1493_v44  ;;  %v1508_v44 = vld [vmem:[%s4242_s7] sm:$0x3] }
0x1249   :  { %2984 = vmatprep.subr.bf16.mxu0 %v3869_v46 }
0x1251   :  { %v3215_v43 = vpop.eup %3214 }
0x1252   :  { %v1119_v49 = vsub.f32 1.0, %v3215_v43  ;;  %v1125_v51 = vmul.f32 %v3215_v43, %v3762_v53  ;;  %v1492_v43 = vld [vmem:[%s4241_s6] sm:$0xff] }
0x1295   :  { %v1083_v37 = vpop.permute.xlu1 %1082 }
0x1296   :  { %v1085_v39 = vmul.f32 %v1083_v37, %v1080_v35 }
0x1298   :  { %v3798_v40 = vadd.f32 %v1086_v38, %v1085_v39  ;;  %v1302_v38 = vld [vmem:[%s4239_s4 + $0x60] sm:$0xff]  ;;  %v1304_v39 = vld [vmem:[%s4239_s4 + $0x70] sm:$0xff] }
0x1299   :  { %v2957_v41 = vpack.c.bf16 %v1304_v39, %v1302_v38 }
0x129a   :  { %1128 = vrot.lane.b32.xlu0 %v3798_v40, %s3386_s17 }
0x12b1   :  { %v1122_v48 = vpop.permute.xlu1 %1121 }
0x12b2   :  { %v1124_v50 = vmul.f32 %v1122_v48, %v1119_v49  ;;  %v1494_v48 = vld [vmem:[%s4241_s6 + $0x10] sm:$0xff] }
0x12b4   :  { %v3803_v36 = vadd.f32 %v1125_v51, %v1124_v50  ;;  %v3878_v50 = vpack.c.bf16 %v1494_v48, %v1492_v43  ;;  %v3994_v43 = vrot.slane %v1508_v44, %v3528_v27 }
0x12b6   :  { %2986 = vmatpush1.bf16.msra.mxu0 %v3878_v50 }
0x130c   :  { %v1129_v54 = vpop.permute.xlu0 %1128 }
0x130d   :  { %1131 = vst.msk [vmem:[#allocation2 + $0xc] sm:$0x3] %vm205_vm0, %v1129_v54  ;;  %v1140_v55 = vsel %vm216_vm1, %v1129_v54, %v3803_v36 }
0x130e   :  { %2784 = vmatmul.mubr.msk.f32.vlgmr.msra.gmra.mrb[6].mxu1 %vm61_vm2, %v1140_v55 }
0x130f   :  { %1380 = vmatprep.mubr.f32.mxu1 %v3384_v7 }
0x13e1   :  { %v1210_v56 = vpop.f32.mrb[6].mxu1 }
0x13e2   :  { %v1211_v58 = vadd.f32 %v1210_v56, %v3536_v30  ;;  %v1212_v59 = vpop.f32.mrb[7].mxu1  ;;  %v1139_v30 = vld [vmem:[%s4236_s1] sm:$0x3]  ;;  %v1497_v56 = vld [vmem:[%s4241_s6 + $0x28] sm:$0xff] }
0x13e3   :  { %v1213_v60 = vadd.f32 %v1212_v59, %v3539_v31 }
0x13e4   :  { %1241 = vrot.lane.b32.xlu1 %v1211_v58, %s3387_s3  ;;  %v1215_v8 = vadd.f32 %v2783_v61, %v1211_v58 }
0x13e5   :  { %1262 = vrot.lane.b32.xlu0 %v1213_v60, %s3386_s17 }
0x13e6   :  { %v2785_v9 = vmul.f32 -1.442695, %v1215_v8 }
0x13e8   :  { %1223 = vrot.lane.b32.xlu1 %v1211_v58, %s3385_s16  ;;  %3216 = vpow2.f32 %v2785_v9  ;;  %v1499_v58 = vld [vmem:[%s4241_s6 + $0x38] sm:$0xff] }
0x13e9   :  { %v3889_v59 = vpack.c.bf16 %v1499_v58, %v1497_v56 }
0x13eb   :  { %2988 = vmatprep.subr.bf16.mxu0 %v3889_v59 }
0x13ec   :  { %1252 = vrot.lane.b32.xlu1 %v1213_v60, %s3387_s3  ;;  %v1496_v60 = vld [vmem:[%s4241_s6 + $0x20] sm:$0xff] }
0x13f2   :  { %v3217_v20 = vpop.eup %3216 }
0x13f3   :  { %v1219_v1 = vadd.f32 1.0, %v3217_v20  ;;  %v1501_v20 = vld [vmem:[%s4241_s6 + $0x48] sm:$0xff] }
0x1456   :  { %v1242_v14 = vpop.permute.xlu1 %1241 }
0x1457   :  { %v1244_v31 = vadd.f32 %v1242_v14, %v1139_v30  ;;  %v1263_v4 = vpop.permute.xlu0 %1262 }
0x1459   :  { %v2786_v15 = vmul.f32 -1.442695, %v1244_v31 }
0x145a   :  { %v1224_v6 = vpop.permute.xlu1 %1223 }
0x145b   :  { %3218 = vpow2.f32 %v2786_v15 }
0x145e   :  { %v1253_v26 = vpop.permute.xlu1 %1252 }
0x145f   :  { %v1255_v28 = vadd.f32 %v1253_v26, %v1139_v30 }
0x1461   :  { %v2787_v32 = vmul.f32 -1.442695, %v1255_v28 }
0x1465   :  { %v3219_v62 = vpop.eup %3218 }
0x1466   :  { %v1248_v0 = vadd.f32 1.0, %v3219_v62  ;;  %v1503_v62 = vld [vmem:[%s4241_s6 + $0x58] sm:$0xff] }
0x1468   :  { %3220 = vrcp.f32 %v1248_v0  ;;  %v3912_v0 = vpack.c.bf16 %v1503_v62, %v1501_v20 }
0x1469   :  { %3222 = vrcp.f32 %v1219_v1  ;;  %v1500_v1 = vld [vmem:[%s4241_s6 + $0x40] sm:$0xff] }
0x1472   :  { %v3221_v2 = vpop.eup %3220 }
0x1473   :  { %v1265_v5 = vmul.f32 %v3221_v2, %v1263_v4  ;;  %v3823_v10 = vpop.eup %3222 }
0x1474   :  { %v1226_v11 = vmul.f32 %v3823_v10, %v1224_v6  ;;  %v1233_v8 = vsub.f32 1.0, %v3823_v10  ;;  %v1239_v31 = vmul.f32 %v3823_v10, %v3798_v40  ;;  %v1502_v40 = vld [vmem:[%s4241_s6 + $0x50] sm:$0xff]  ;;  %v1505_v10 = vld [vmem:[%s4241_s6 + $0x68] sm:$0xff] }
0x1475   :  { %1267 = vrot.lane.b32.xlu0 %v1265_v5, %s3385_s16  ;;  %v3920_v6 = vpack.c.bf16 %v1502_v40, %v1500_v1 }
0x1479   :  { %1228 = vrot.lane.b32.xlu0 %v1226_v11, %s3385_s16  ;;  %v1507_v11 = vld [vmem:[%s4241_s6 + $0x78] sm:$0xff] }
0x14e7   :  { %v1268_v12 = vpop.permute.xlu0 %1267 }
0x14e8   :  { %v1270_v13 = vadd.f32 %v1268_v12, %v1139_v30  ;;  %v3934_v12 = vpack.c.bf16 %v1507_v11, %v1505_v10 }
0x14ea   :  { %3224 = vtanh.f32 %v1270_v13  ;;  %v1504_v13 = vld [vmem:[%s4241_s6 + $0x60] sm:$0xff] }
0x14eb   :  { %v1229_v3 = vpop.permute.xlu0 %1228 }
0x14ec   :  { %v1231_v17 = vadd.f32 %v2783_v61, %v1229_v3 }
0x14ee   :  { %3226 = vtanh.f32 %v1231_v17 }
0x14ef   :  { %3228 = vpow2.f32 %v2787_v32  ;;  %v1476_v32 = vld [vmem:[%s4240_s5] sm:$0x3]  ;;  %s3388_s5 = smov [#allocation4]  }
0x14f0   :  { %s2735_s7 = sshll.u32 %s3388_s5, 4  ;;  %s2736_s7 = int_to_ptr.vmem [resolvable:$true] %s2735_s7 }
0x14f1   :  { %p3365_p1 = scmp.lt.s32.totalorder %s2736_s7, %s2736_s7 }
0x14f4   :  { %v3225_v18 = vpop.eup %3224 }
0x14f5   :  { %1274 = vrot.lane.b32.xlu1 %v3225_v18, %s3386_s17 }
0x14f8   :  { %v3227_v19 = vpop.eup %3226 }
0x14f9   :  { %825 = vrot.lane.b32.xlu1 %v3708_v47, %s3386_s17  ;;  %1235 = vrot.lane.b32.xlu0 %v3227_v19, %s3386_s17  ;;  %v3229_v47 = vpop.eup %3228 }
0x14fa   :  { %v1259_v33 = vadd.f32 1.0, %v3229_v47 }
0x14fc   :  { %3230 = vrcp.f32 %v1259_v33  ;;  %v1485_v33 = vrot.slane %v1476_v32, %v3533_v29 }
0x14fd   :  { %1133 = vrot.lane.b32.xlu1 %v3803_v36, %s3386_s17  ;;  %979 = vrot.lane.b32.xlu0 %v3762_v53, %s3386_s17  ;;  %v1300_v53 = vld [vmem:[%s4239_s4 + $0x50] sm:$0xff] }
0x14fe   :  { %v2953_v35 = vpack.c.bf16 %v1300_v53, %v1298_v34 }
0x1500   :  { %2954 = vmatpush1.bf16.msra.mxu1 %v2953_v35 }
0x1501   :  { %208 = vrot.lane.b32.xlu1 %v3561_v16, %s3386_s17  ;;  %v1303_v16 = vld [vmem:[%s4239_s4 + $0x68] sm:$0xff] }
0x1505   :  { %517 = vrot.lane.b32.xlu1 %v3635_v57, %s3386_s17  ;;  %v1305_v57 = vld [vmem:[%s4239_s4 + $0x78] sm:$0xff] }
0x1506   :  { %v2955_v37 = vpack.c.bf16 %v1305_v57, %v1303_v16  ;;  %v3231_v42 = vpop.eup %3230 }
0x1507   :  { %v1272_v49 = vsub.f32 1.0, %v3231_v42  ;;  %v1278_v54 = vmul.f32 %v3231_v42, %v3803_v36  ;;  %v1498_v36 = vld [vmem:[%s4241_s6 + $0x30] sm:$0xff] }
0x1508   :  { %2956 = vmatprep.subr.bf16.mxu1 %v2955_v37  ;;  %v3898_v30 = vpack.c.bf16 %v1498_v36, %v1496_v60 }
0x1509   :  { %2958 = vmatpush1.bf16.msra.mxu1 %v2957_v41 }
0x150a   :  { %2968 = vmatprep.subr.bf16.mxu1 %v3869_v46  ;;  %2990 = vmatpush1.bf16.msra.mxu0 %v3898_v30 }
0x150b   :  { %2992 = vmatprep.subr.bf16.mxu0 %v3912_v0 }
0x150e   :  { %2994 = vmatpush1.bf16.msra.mxu0 %v3920_v6 }
0x150f   :  { %2996 = vmatprep.subr.bf16.mxu0 %v3934_v12 }
0x1567   :  { %v1275_v51 = vpop.permute.xlu1 %1274 }
0x1568   :  { %v1277_v55 = vmul.f32 %v1275_v51, %v1272_v49 }
0x156a   :  { %v1279_v61 = vadd.f32 %v1278_v54, %v1277_v55  ;;  %v1481_v55 = vrot.slane %v1476_v32, %v3528_v27 }
0x156b   :  { %v826_v9 = vpop.permute.xlu1 %825  ;;  %v1236_v14 = vpop.permute.xlu0 %1235 }
0x156c   :  { %828 = vst.msk [vmem:[#allocation3 + $0x6] sm:$0x3] %vm205_vm0, %v826_v9  ;;  %v1238_v15 = vmul.f32 %v1236_v14, %v1233_v8  ;;  %1286 = vrot.lane.b32.xlu0 %v1279_v61, %s3386_s17 }
0x156e   :  { %v1240_v2 = vadd.f32 %v1239_v31, %v1238_v15 }
0x156f   :  { %v1134_v4 = vpop.permute.xlu1 %1133  ;;  %v980_v5 = vpop.permute.xlu0 %979 }
0x1570   :  { %1136 = vst.msk [vmem:[#allocation3 + $0x2] sm:$0x3] %vm205_vm0, %v1134_v4  ;;  %982 = vst.msk [vmem:[#allocation3 + $0x4] sm:$0x3] %vm205_vm0, %v980_v5  ;;  %363 = vrot.lane.b32.xlu0 %v3598_v63, %s3386_s17  ;;  %1281 = vrot.lane.b32.xlu1 %v1240_v2, %s3386_s17  ;;  %v1506_v63 = vld [vmem:[%s4241_s6 + $0x70] sm:$0xff] }
0x1571   :  { %v3943_v17 = vpack.c.bf16 %v1506_v63, %v1504_v13 }
0x1573   :  { %v209_v3 = vpop.permute.xlu1 %208  ;;  %2998 = vmatpush1.bf16.msra.mxu0 %v3943_v17 }
0x1574   :  { %211 = vst.msk [vmem:[#allocation3 + $0xe] sm:$0x3] %vm205_vm0, %v209_v3  ;;  %671 = vrot.lane.b32.xlu0 %v3672_v52, %s3386_s17  ;;  %3016 = vmatprep.subr.bf16.mxu0 %v3869_v46 }
0x1577   :  { %v518_v18 = vpop.permute.xlu1 %517 }
0x1578   :  { %520 = vst.msk [vmem:[#allocation3 + $0xa] sm:$0x3] %vm205_vm0, %v518_v18 }
0x15de   :  { %v1287_v19 = vpop.permute.xlu0 %1286 }
0x15df   :  { %1289 = vst.msk [vmem:[#allocation3] sm:$0x3] %vm205_vm0, %v1287_v19 }
0x15e2   :  { %v1282_v22 = vpop.permute.xlu1 %1281  ;;  %v364_v23 = vpop.permute.xlu0 %363 }
0x15e3   :  { %1284 = vst.msk [vmem:[#allocation2 + $0xe] sm:$0x3] %vm205_vm0, %v1282_v22  ;;  %366 = vst.msk [vmem:[#allocation3 + $0xc] sm:$0x3] %vm205_vm0, %v364_v23 }
0x15e6   :  { %v672_v25 = vpop.permute.xlu0 %671  ;;  %v1308_v26 = vld [vmem:[#allocation3] sm:$0xff] }
0x15e7   :  { %674 = vst.msk [vmem:[#allocation3 + $0x8] sm:$0x3] %vm205_vm0, %v672_v25  ;;  %2788 = vmatmul.mubr.msk.f32.vlgmr.msra.gmra.mrb[8].mxu1 %vm216_vm1, %v1308_v26 }
0x15e8   :  { %2970 = vmatpush1.bf16.msra.mxu1 %v3878_v50  ;;  %1386 = vmatprep.mubr.f32.mxu1 %v3384_v7 }
0x15e9   :  { %2972 = vmatprep.subr.bf16.mxu1 %v3889_v59 }
0x15ea   :  { %v1307_v52 = vld [vmem:[#allocation2 + $0x8] sm:$0xff] }
0x15eb   :  { %2791 = vmatmul.mubr.msk.f32.gmra.mrb[10].mxu0 %vm216_vm1, %v1307_v52 }
0x15ec   :  { %2974 = vmatpush1.bf16.msra.mxu1 %v3898_v30  ;;  %1731 = vmatprep.mubr.f32.mxu0 %v3384_v7 }
0x15ed   :  { %2976 = vmatprep.subr.bf16.mxu1 %v3912_v0 }
0x15ee   :  { %v1309_v28 = vld [vmem:[#allocation3 + $0x8] sm:$0xff] }
0x15ef   :  { %2789 = vmatmul.mubr.msk.f32.gmra.mrb[10].mxu1 %vm216_vm1, %v1309_v28 }
0x15f0   :  { %2978 = vmatpush1.bf16.msra.mxu1 %v3920_v6  ;;  %1584 = vmatprep.mubr.f32.mxu1 %v3384_v7 }
0x15f1   :  { %2980 = vmatprep.subr.bf16.mxu1 %v3934_v12 }
0x15f4   :  { %2982 = vmatpush1.bf16.msra.mxu1 %v3943_v17 }
0x15f5   :  { %3000 = vmatprep.subr.bf16.mxu1 %v3869_v46 }
0x15f7   :  { %1585 = vmatmul.mubr.f32.vlgmr.msra.gmra.mrb[12].mxu1 %v3384_v7 }
0x15f8   :  { %3002 = vmatpush1.bf16.msra.mxu1 %v3878_v50  ;;  %1885 = vmatprep.mubr.f32.mxu1 %v3384_v7 }
0x15f9   :  { %3004 = vmatprep.subr.bf16.mxu1 %v3889_v59 }
0x15fc   :  { %3006 = vmatpush1.bf16.msra.mxu1 %v3898_v30 }
0x15fd   :  { %3008 = vmatprep.subr.bf16.mxu1 %v3912_v0 }
0x1600   :  { %3010 = vmatpush1.bf16.msra.mxu1 %v3920_v6 }
0x1601   :  { %3012 = vmatprep.subr.bf16.mxu1 %v3934_v12 }
0x1604   :  { %3014 = vmatpush1.bf16.msra.mxu1 %v3943_v17 }
0x1605   :  { %3032 = vmatprep.subr.bf16.mxu1 %v3869_v46 }
0x16ba   :  { %v1382_v47 = vpop.f32.mrb[8].mxu1 }
0x16bb   :  { %v1466_v34 = vadd.f32 %v3782_v21, %v1382_v47  ;;  %v1384_v53 = vpop.f32.mrb[9].mxu1  ;;  %v3997_v21 = vrot.slane %v1508_v44, %v3533_v29 }
0x16bc   :  { %v1468_v35 = vadd.f32 %v3784_v24, %v1384_v53 }
0x16bd   :  { %v4004_v56 = vadd.f32 %v1481_v55, %v1466_v34 }
0x16be   :  { %v3986_v16 = vadd.f32 %v1485_v33, %v1468_v35  ;;  %v1471_v57 = vpop.f32.mrb[10].mxu0 }
0x16bf   :  { %v1473_v37 = vpop.f32.mrb[11].mxu0 }
0x16c2   :  { %v1388_v38 = vpop.f32.mrb[10].mxu1 }
0x16c3   :  { %v1472_v39 = vadd.f32 %v1471_v57, %v1388_v38  ;;  %v1390_v41 = vpop.f32.mrb[11].mxu1 }
0x16c4   :  { %v1474_v42 = vadd.f32 %v1473_v37, %v1390_v41 }
0x16c5   :  { %v4007_v29 = vadd.f32 %v1481_v55, %v1472_v39 }
0x16c6   :  { %v3991_v45 = vadd.f32 %v1485_v33, %v1474_v42 }
0x16ca   :  { %v1586_v24 = vpop.f32.mrb[12].mxu1 }
0x16cb   :  { %v1587_v48 = vadd.f32 %v1586_v24, %v3994_v43  ;;  %v1588_v49 = vpop.f32.mrb[13].mxu1 }
0x16cc   :  { %v1589_v51 = vadd.f32 %v1588_v49, %v3997_v21 }
0x16cd   :  { %1599 = vrot.lane.b32.xlu1 %v1587_v48, %s3385_s16  ;;  %v1617_v58 = vrot.slane %v1587_v48, 2  ;;  %v1591_v60 = vadd.f32 %v1587_v48, %v4004_v56 }
0x16ce   :  { %v1627_v54 = vrot.slane %v1589_v51, 2 }
0x16cf   :  { %v1619_v36 = vadd.f32 %v1617_v58, %v4007_v29  ;;  %v2792_v61 = vmul.f32 -1.442695, %v1591_v60 }
0x16d0   :  { %1636 = vrot.lane.b32.xlu0 %v1627_v54, %s3385_s16  ;;  %v1629_v3 = vadd.f32 %v1627_v54, %v3991_v45 }
0x16d1   :  { %v2793_v8 = vmul.f32 -1.442695, %v1619_v36  ;;  %3232 = vpow2.f32 %v2792_v61 }
0x16d2   :  { %v2794_v18 = vmul.f32 -1.442695, %v1629_v3 }
0x16d3   :  { %3234 = vpow2.f32 %v2793_v8 }
0x16db   :  { %v3233_v9 = vpop.eup %3232 }
0x16dc   :  { %v1595_v31 = vadd.f32 1.0, %v3233_v9 }
0x16dd   :  { %v3235_v14 = vpop.eup %3234 }
0x16de   :  { %v1623_v15 = vadd.f32 1.0, %v3235_v14  ;;  %3236 = vrcp.f32 %v1595_v31 }
0x16e0   :  { %3238 = vrcp.f32 %v1623_v15 }
0x16e8   :  { %v3237_v27 = vpop.eup %3236 }
0x16e9   :  { %v1609_v25 = vsub.f32 1.0, %v3237_v27  ;;  %v1615_v52 = vmul.f32 0.0, %v3237_v27 }
0x16ea   :  { %v3239_v1 = vpop.eup %3238 }
0x173f   :  { %v1600_v20 = vpop.permute.xlu1 %1599 }
0x1740   :  { %v1602_v62 = vmul.f32 %v3237_v27, %v1600_v20 }
0x1742   :  { %v1637_v40 = vpop.permute.xlu0 %1636  ;;  %1604 = vrot.lane.b32.xlu1 %v1602_v62, %s3385_s16 }
0x1743   :  { %v1639_v2 = vmul.f32 %v3239_v1, %v1637_v40 }
0x1745   :  { %1641 = vrot.lane.b32.xlu0 %v1639_v2, %s3385_s16 }
0x17b4   :  { %v1605_v4 = vpop.permute.xlu1 %1604 }
0x17b5   :  { %v1607_v5 = vadd.f32 %v1605_v4, %v4004_v56 }
0x17b7   :  { %3240 = vtanh.f32 %v1607_v5  ;;  %v1642_v10 = vpop.permute.xlu0 %1641 }
0x17b8   :  { %v1644_v11 = vadd.f32 %v1642_v10, %v3991_v45 }
0x17ba   :  { %3242 = vtanh.f32 %v1644_v11 }
0x17bb   :  { %3244 = vpow2.f32 %v2794_v18 }
0x17c1   :  { %v3241_v13 = vpop.eup %3240 }
0x17c2   :  { %1611 = vrot.lane.b32.xlu1 %v3241_v13, %s3386_s17 }
0x17c4   :  { %v3243_v63 = vpop.eup %3242 }
0x17c5   :  { %1648 = vrot.lane.b32.xlu0 %v3243_v63, %s3386_s17  ;;  %v3245_v19 = vpop.eup %3244 }
0x17c6   :  { %v1633_v22 = vadd.f32 1.0, %v3245_v19 }
0x17c8   :  { %3246 = vrcp.f32 %v1633_v22 }
0x17d2   :  { %v3247_v23 = vpop.eup %3246 }
0x17d3   :  { %v1646_v32 = vsub.f32 1.0, %v3247_v23  ;;  %v1652_v53 = vmul.f32 0.0, %v3247_v23 }
0x1834   :  { %v1612_v26 = vpop.permute.xlu1 %1611 }
0x1835   :  { %v1614_v28 = vmul.f32 %v1612_v26, %v1609_v25 }
0x1837   :  { %v4017_v47 = vadd.f32 %v1615_v52, %v1614_v28  ;;  %v1649_v33 = vpop.permute.xlu0 %1648 }
0x1838   :  { %v1651_v34 = vmul.f32 %v1649_v33, %v1646_v32 }
0x1839   :  { %1655 = vrot.lane.b32.xlu0 %v4017_v47, %s3386_s17  ;;  %v1764_v23 = vrot.slane %v4017_v47, 6 }
0x183a   :  { %v1653_v35 = vadd.f32 %v1652_v53, %v1651_v34 }
0x183c   :  { %v1659_v57 = vrot.slane %v1653_v35, 6  ;;  %v1803_v60 = vrot.slane %v1653_v35, 2 }
0x183e   :  { %1660 = vrot.lane.b32.xlu1 %v1659_v57, %s3387_s3 }
0x18ab   :  { %v1656_v37 = vpop.permute.xlu0 %1655 }
0x18b0   :  { %v1661_v38 = vpop.permute.xlu1 %1660 }
0x18b1   :  { %v1663_v39 = vsel %vm216_vm1, %v1656_v37, %v1661_v38 }
0x18b2   :  { %2795 = vmatmul.mubr.msk.f32.vlgmr.msra.gmra.mrb[12].mxu0 %vm61_vm2, %v1663_v39 }
0x18b3   :  { %3018 = vmatpush1.bf16.msra.mxu0 %v3878_v50  ;;  %2038 = vmatprep.mubr.f32.mxu0 %v3384_v7 }
0x18b4   :  { %3020 = vmatprep.subr.bf16.mxu0 %v3889_v59 }
0x18b7   :  { %3022 = vmatpush1.bf16.msra.mxu0 %v3898_v30 }
0x18b8   :  { %3024 = vmatprep.subr.bf16.mxu0 %v3912_v0 }
0x18bb   :  { %3026 = vmatpush1.bf16.msra.mxu0 %v3920_v6 }
0x18bc   :  { %3028 = vmatprep.subr.bf16.mxu0 %v3934_v12 }
0x18bf   :  { %3030 = vmatpush1.bf16.msra.mxu0 %v3943_v17 }
0x18c0   :  { %3048 = vmatprep.subr.bf16.mxu0 %v3869_v46 }
0x1985   :  { %v1733_v41 = vpop.f32.mrb[12].mxu0 }
0x1986   :  { %v1734_v42 = vadd.f32 %v1733_v41, %v3994_v43  ;;  %v1735_v44 = vpop.f32.mrb[13].mxu0 }
0x1987   :  { %v1736_v24 = vadd.f32 %v1735_v44, %v3997_v21 }
0x1988   :  { %v1739_v48 = vrot.slane %v1734_v42, 6  ;;  %v1768_v8 = vrot.slane %v1734_v42, 4 }
0x1989   :  { %v1778_v49 = vrot.slane %v1736_v24, 4 }
0x198a   :  { %1748 = vrot.lane.b32.xlu1 %v1739_v48, %s3385_s16  ;;  %v1741_v9 = vadd.f32 %v1739_v48, %v4004_v56  ;;  %v1770_v14 = vadd.f32 %v1768_v8, %v4007_v29 }
0x198b   :  { %v1780_v51 = vadd.f32 %v1778_v49, %v3991_v45  ;;  %1787 = vrot.lane.b32.xlu0 %v1778_v49, %s3385_s16 }
0x198c   :  { %v2796_v31 = vmul.f32 -1.442695, %v1741_v9  ;;  %v2797_v15 = vmul.f32 -1.442695, %v1770_v14 }
0x198d   :  { %v2798_v54 = vmul.f32 -1.442695, %v1780_v51 }
0x198f   :  { %3248 = vpow2.f32 %v2798_v54 }
0x1999   :  { %v3249_v55 = vpop.eup %3248 }
0x199a   :  { %v1784_v58 = vadd.f32 1.0, %v3249_v55 }
0x199c   :  { %3250 = vrcp.f32 %v1784_v58 }
0x199d   :  { %3252 = vpow2.f32 %v2796_v31 }
0x199e   :  { %3254 = vpow2.f32 %v2797_v15 }
0x19a6   :  { %v3251_v36 = vpop.eup %3250 }
0x19a7   :  { %v1805_v61 = vmul.f32 %v3251_v36, %v1803_v60  ;;  %v3253_v27 = vpop.eup %3252  ;;  %v1797_v52 = vsub.f32 1.0, %v3251_v36 }
0x19a8   :  { %v3255_v20 = vpop.eup %3254  ;;  %v1745_v62 = vadd.f32 1.0, %v3253_v27 }
0x19a9   :  { %v1774_v1 = vadd.f32 1.0, %v3255_v20 }
0x19aa   :  { %3256 = vrcp.f32 %v1745_v62 }
0x19ab   :  { %3258 = vrcp.f32 %v1774_v1 }
0x19b4   :  { %v3257_v40 = vpop.eup %3256 }
0x19b5   :  { %v3259_v4 = vpop.eup %3258  ;;  %v1758_v25 = vsub.f32 1.0, %v3257_v40  ;;  %v1766_v28 = vmul.f32 %v3257_v40, %v1764_v23 }
0x19fc   :  { %v1749_v2 = vpop.permute.xlu1 %1748 }
0x19fd   :  { %v1751_v5 = vmul.f32 %v3257_v40, %v1749_v2  ;;  %v1788_v10 = vpop.permute.xlu0 %1787 }
0x19fe   :  { %v1790_v11 = vmul.f32 %v3259_v4, %v1788_v10 }
0x19ff   :  { %1753 = vrot.lane.b32.xlu1 %v1751_v5, %s3385_s16 }
0x1a00   :  { %1792 = vrot.lane.b32.xlu0 %v1790_v11, %s3385_s16 }
0x1a71   :  { %v1754_v13 = vpop.permute.xlu1 %1753 }
0x1a72   :  { %v1756_v63 = vadd.f32 %v1754_v13, %v4004_v56  ;;  %v1793_v3 = vpop.permute.xlu0 %1792 }
0x1a73   :  { %v1795_v18 = vadd.f32 %v1793_v3, %v3991_v45 }
0x1a74   :  { %3260 = vtanh.f32 %v1756_v63 }
0x1a75   :  { %3262 = vtanh.f32 %v1795_v18 }
0x1a7e   :  { %v3261_v19 = vpop.eup %3260 }
0x1a7f   :  { %v3263_v22 = vpop.eup %3262  ;;  %1760 = vrot.lane.b32.xlu1 %v3261_v19, %s3386_s17 }
0x1a80   :  { %1799 = vrot.lane.b32.xlu0 %v3263_v22, %s3386_s17 }
0x1af1   :  { %v1761_v26 = vpop.permute.xlu1 %1760 }
0x1af2   :  { %v1763_v32 = vmul.f32 %v1761_v26, %v1758_v25  ;;  %v1800_v33 = vpop.permute.xlu0 %1799 }
0x1af3   :  { %v1802_v34 = vmul.f32 %v1800_v33, %v1797_v52 }
0x1af4   :  { %v4047_v53 = vadd.f32 %v1766_v28, %v1763_v32 }
0x1af5   :  { %v4049_v35 = vadd.f32 %v1805_v61, %v1802_v34 }
0x1af6   :  { %1808 = vrot.lane.b32.xlu0 %v4047_v53, %s3386_s17  ;;  %v1918_v19 = vrot.slane %v4047_v53, 6 }
0x1af7   :  { %v1812_v57 = vrot.slane %v4049_v35, 2 }
0x1af9   :  { %1813 = vrot.lane.b32.xlu1 %v1812_v57, %s3387_s3 }
0x1b68   :  { %v1809_v47 = vpop.permute.xlu0 %1808 }
0x1b6b   :  { %v1814_v37 = vpop.permute.xlu1 %1813 }
0x1b6c   :  { %v1816_v38 = vsel %vm216_vm1, %v1809_v47, %v1814_v37 }
0x1b6d   :  { %v1818_v39 = vrot.slane %v1816_v38, 2 }
0x1b6f   :  { %2799 = vmatmul.mubr.msk.f32.vlgmr.msra.gmra.mrb[14].mxu1 %vm61_vm2, %v1818_v39 }
0x1b70   :  { %3034 = vmatpush1.bf16.msra.mxu1 %v3878_v50  ;;  %2188 = vmatprep.mubr.f32.mxu1 %v3384_v7 }
0x1b71   :  { %3036 = vmatprep.subr.bf16.mxu1 %v3889_v59 }
0x1b74   :  { %3038 = vmatpush1.bf16.msra.mxu1 %v3898_v30 }
0x1b75   :  { %3040 = vmatprep.subr.bf16.mxu1 %v3912_v0 }
0x1b78   :  { %3042 = vmatpush1.bf16.msra.mxu1 %v3920_v6 }
0x1b79   :  { %3044 = vmatprep.subr.bf16.mxu1 %v3934_v12 }
0x1b7c   :  { %3046 = vmatpush1.bf16.msra.mxu1 %v3943_v17 }
0x1b7d   :  { %3064 = vmatprep.subr.bf16.mxu1 %v3869_v46 }
0x1c42   :  { %v1887_v41 = vpop.f32.mrb[14].mxu1 }
0x1c43   :  { %v1888_v42 = vadd.f32 %v1887_v41, %v3994_v43  ;;  %v1889_v44 = vpop.f32.mrb[15].mxu1 }
0x1c44   :  { %v1890_v24 = vadd.f32 %v1889_v44, %v3997_v21 }
0x1c45   :  { %v1893_v48 = vrot.slane %v1888_v42, 4  ;;  %v1922_v51 = vrot.slane %v1888_v42, 6 }
0x1c46   :  { %v1932_v49 = vrot.slane %v1890_v24, 6 }
0x1c47   :  { %1902 = vrot.lane.b32.xlu1 %v1893_v48, %s3385_s16  ;;  %v1895_v54 = vadd.f32 %v1893_v48, %v4004_v56  ;;  %v1924_v55 = vadd.f32 %v1922_v51, %v4007_v29 }
0x1c48   :  { %1941 = vrot.lane.b32.xlu0 %v1932_v49, %s3385_s16  ;;  %v1934_v11 = vadd.f32 %v1932_v49, %v3991_v45 }
0x1c49   :  { %v2800_v58 = vmul.f32 -1.442695, %v1895_v54  ;;  %v2801_v60 = vmul.f32 -1.442695, %v1924_v55 }
0x1c4a   :  { %v2802_v13 = vmul.f32 -1.442695, %v1934_v11 }
0x1c4b   :  { %3264 = vpow2.f32 %v2800_v58 }
0x1c4c   :  { %3266 = vpow2.f32 %v2801_v60 }
0x1c55   :  { %v3265_v36 = vpop.eup %3264 }
0x1c56   :  { %v3267_v61 = vpop.eup %3266  ;;  %v1899_v8 = vadd.f32 1.0, %v3265_v36 }
0x1c57   :  { %v1928_v9 = vadd.f32 1.0, %v3267_v61 }
0x1c58   :  { %3268 = vrcp.f32 %v1899_v8 }
0x1c59   :  { %3270 = vrcp.f32 %v1928_v9 }
0x1c62   :  { %v3269_v14 = vpop.eup %3268 }
0x1c63   :  { %v3271_v15 = vpop.eup %3270  ;;  %v1912_v22 = vsub.f32 1.0, %v3269_v14  ;;  %v1920_v26 = vmul.f32 %v3269_v14, %v1918_v19 }
0x1cb9   :  { %v1903_v31 = vpop.permute.xlu1 %1902 }
0x1cba   :  { %v1905_v27 = vmul.f32 %v3269_v14, %v1903_v31  ;;  %v1942_v20 = vpop.permute.xlu0 %1941 }
0x1cbb   :  { %v1944_v62 = vmul.f32 %v3271_v15, %v1942_v20 }
0x1cbc   :  { %1907 = vrot.lane.b32.xlu1 %v1905_v27, %s3385_s16 }
0x1cbd   :  { %1946 = vrot.lane.b32.xlu0 %v1944_v62, %s3385_s16 }
0x1d2e   :  { %v1908_v1 = vpop.permute.xlu1 %1907 }
0x1d2f   :  { %v1910_v40 = vadd.f32 %v1908_v1, %v4004_v56  ;;  %v1947_v2 = vpop.permute.xlu0 %1946 }
0x1d30   :  { %v1949_v4 = vadd.f32 %v1947_v2, %v3991_v45 }
0x1d31   :  { %3272 = vtanh.f32 %v1910_v40 }
0x1d32   :  { %3274 = vtanh.f32 %v1949_v4 }
0x1d33   :  { %3276 = vpow2.f32 %v2802_v13 }
0x1d3b   :  { %v3273_v5 = vpop.eup %3272 }
0x1d3c   :  { %v3275_v10 = vpop.eup %3274  ;;  %1914 = vrot.lane.b32.xlu1 %v3273_v5, %s3386_s17 }
0x1d3d   :  { %1953 = vrot.lane.b32.xlu0 %v3275_v10, %s3386_s17  ;;  %v3277_v63 = vpop.eup %3276 }
0x1d3e   :  { %v1938_v3 = vadd.f32 1.0, %v3277_v63 }
0x1d40   :  { %3278 = vrcp.f32 %v1938_v3 }
0x1d4a   :  { %v3279_v18 = vpop.eup %3278 }
0x1d4b   :  { %v1951_v25 = vsub.f32 1.0, %v3279_v18  ;;  %v1958_v32 = vmul.f32 %v3279_v18, %v1812_v57 }
0x1dae   :  { %v1915_v23 = vpop.permute.xlu1 %1914 }
0x1daf   :  { %v1917_v52 = vmul.f32 %v1915_v23, %v1912_v22  ;;  %v1954_v28 = vpop.permute.xlu0 %1953 }
0x1db0   :  { %v1956_v33 = vmul.f32 %v1954_v28, %v1951_v25 }
0x1db1   :  { %v4084_v34 = vadd.f32 %v1920_v26, %v1917_v52 }
0x1db2   :  { %v1959_v47 = vadd.f32 %v1958_v32, %v1956_v33 }
0x1db3   :  { %1961 = vrot.lane.b32.xlu0 %v4084_v34, %s3386_s17  ;;  %v2071_v18 = vrot.slane %v4084_v34, 6 }
0x1db4   :  { %v1965_v37 = vrot.slane %v1959_v47, 6  ;;  %v2106_v55 = vrot.slane %v1959_v47, 2 }
0x1db6   :  { %1966 = vrot.lane.b32.xlu1 %v1965_v37, %s3387_s3 }
0x1e25   :  { %v1962_v53 = vpop.permute.xlu0 %1961 }
0x1e28   :  { %v1967_v38 = vpop.permute.xlu1 %1966 }
0x1e29   :  { %v1969_v39 = vsel %vm216_vm1, %v1962_v53, %v1967_v38 }
0x1e2a   :  { %v1971_v41 = vrot.slane %v1969_v39, 4 }
0x1e2c   :  { %2803 = vmatmul.mubr.msk.f32.vlgmr.msra.gmra.mrb[14].mxu0 %vm61_vm2, %v1971_v41 }
0x1e2d   :  { %3050 = vmatpush1.bf16.msra.mxu0 %v3878_v50  ;;  %2338 = vmatprep.mubr.f32.mxu0 %v3384_v7 }
0x1e2e   :  { %3052 = vmatprep.subr.bf16.mxu0 %v3889_v59 }
0x1e31   :  { %3054 = vmatpush1.bf16.msra.mxu0 %v3898_v30 }
0x1e32   :  { %3056 = vmatprep.subr.bf16.mxu0 %v3912_v0 }
0x1e35   :  { %3058 = vmatpush1.bf16.msra.mxu0 %v3920_v6 }
0x1e36   :  { %3060 = vmatprep.subr.bf16.mxu0 %v3934_v12 }
0x1e39   :  { %3062 = vmatpush1.bf16.msra.mxu0 %v3943_v17 }
0x1e3a   :  { %3080 = vmatprep.subr.bf16.mxu0 %v3869_v46 }
0x1eff   :  { %v2040_v35 = vpop.f32.mrb[14].mxu0 }
0x1f00   :  { %v2041_v57 = vadd.f32 %v2040_v35, %v3994_v43  ;;  %v2042_v42 = vpop.f32.mrb[15].mxu0 }
0x1f01   :  { %v2043_v44 = vadd.f32 %v2042_v42, %v3997_v21 }
0x1f02   :  { %v2046_v24 = vrot.slane %v2041_v57, 2  ;;  %v2075_v60 = vadd.f32 %v2041_v57, %v4007_v29 }
0x1f03   :  { %v2082_v48 = vadd.f32 %v2043_v44, %v3991_v45  ;;  %2090 = vrot.lane.b32.xlu0 %v2043_v44, %s3385_s16 }
0x1f04   :  { %2055 = vrot.lane.b32.xlu1 %v2046_v24, %s3385_s16  ;;  %v2048_v36 = vadd.f32 %v2046_v24, %v4004_v56  ;;  %v2805_v61 = vmul.f32 -1.442695, %v2075_v60 }
0x1f05   :  { %v2806_v49 = vmul.f32 -1.442695, %v2082_v48 }
0x1f06   :  { %v2804_v8 = vmul.f32 -1.442695, %v2048_v36 }
0x1f07   :  { %3280 = vpow2.f32 %v2806_v49 }
0x1f11   :  { %v3281_v51 = vpop.eup %3280 }
0x1f12   :  { %v2086_v54 = vadd.f32 1.0, %v3281_v51 }
0x1f14   :  { %3282 = vrcp.f32 %v2086_v54 }
0x1f15   :  { %3284 = vpow2.f32 %v2805_v61 }
0x1f16   :  { %3286 = vpow2.f32 %v2804_v8 }
0x1f1e   :  { %v3283_v46 = vpop.eup %3282 }
0x1f1f   :  { %v2108_v58 = vmul.f32 %v3283_v46, %v2106_v55  ;;  %v3285_v9 = vpop.eup %3284  ;;  %v2100_v3 = vsub.f32 1.0, %v3283_v46 }
0x1f20   :  { %v3287_v14 = vpop.eup %3286  ;;  %v2079_v31 = vadd.f32 1.0, %v3285_v9 }
0x1f21   :  { %v2052_v15 = vadd.f32 1.0, %v3287_v14 }
0x1f22   :  { %3288 = vrcp.f32 %v2079_v31 }
0x1f23   :  { %3290 = vrcp.f32 %v2052_v15 }
0x1f2c   :  { %v3289_v27 = vpop.eup %3288 }
0x1f2d   :  { %v3291_v62 = vpop.eup %3290 }
0x1f2e   :  { %v2065_v22 = vsub.f32 1.0, %v3291_v62  ;;  %v2073_v26 = vmul.f32 %v3291_v62, %v2071_v18 }
0x1f75   :  { %v2091_v20 = vpop.permute.xlu0 %2090 }
0x1f76   :  { %v2093_v1 = vmul.f32 %v3289_v27, %v2091_v20  ;;  %v2056_v40 = vpop.permute.xlu1 %2055 }
0x1f77   :  { %v2058_v2 = vmul.f32 %v3291_v62, %v2056_v40 }
0x1f78   :  { %2095 = vrot.lane.b32.xlu0 %v2093_v1, %s3385_s16 }
0x1f79   :  { %2060 = vrot.lane.b32.xlu1 %v2058_v2, %s3385_s16 }
0x1fea   :  { %v2096_v4 = vpop.permute.xlu0 %2095 }
0x1feb   :  { %v2098_v5 = vadd.f32 %v2096_v4, %v3991_v45  ;;  %v2061_v10 = vpop.permute.xlu1 %2060 }
0x1fec   :  { %v2063_v11 = vadd.f32 %v2061_v10, %v4004_v56 }
0x1fed   :  { %3292 = vtanh.f32 %v2098_v5 }
0x1fee   :  { %3294 = vtanh.f32 %v2063_v11 }
0x1ff7   :  { %v3293_v13 = vpop.eup %3292 }
0x1ff8   :  { %v3295_v63 = vpop.eup %3294  ;;  %2102 = vrot.lane.b32.xlu0 %v3293_v13, %s3386_s17 }
0x1ff9   :  { %2067 = vrot.lane.b32.xlu1 %v3295_v63, %s3386_s17 }
0x206a   :  { %v2103_v19 = vpop.permute.xlu0 %2102 }
0x206b   :  { %v2105_v23 = vmul.f32 %v2103_v19, %v2100_v3  ;;  %v2068_v25 = vpop.permute.xlu1 %2067 }
0x206c   :  { %v2070_v45 = vmul.f32 %v2068_v25, %v2065_v22 }
0x206d   :  { %v4114_v52 = vadd.f32 %v2108_v58, %v2105_v23 }
0x206e   :  { %v4116_v28 = vadd.f32 %v2073_v26, %v2070_v45 }
0x206f   :  { %v2115_v32 = vrot.slane %v4114_v52, 2 }
0x2070   :  { %2111 = vrot.lane.b32.xlu0 %v4116_v28, %s3386_s17  ;;  %v2219_v5 = vrot.slane %v4116_v28, 6 }
0x2071   :  { %2116 = vrot.lane.b32.xlu1 %v2115_v32, %s3387_s3 }
0x20e2   :  { %v2112_v33 = vpop.permute.xlu0 %2111 }
0x20e3   :  { %v2117_v34 = vpop.permute.xlu1 %2116 }
0x20e4   :  { %v2119_v47 = vsel %vm216_vm1, %v2112_v33, %v2117_v34 }
0x20e5   :  { %v2121_v37 = vrot.slane %v2119_v47, 6 }
0x20e7   :  { %2807 = vmatmul.mubr.msk.f32.vlgmr.msra.gmra.mrb[16].mxu1 %vm61_vm2, %v2121_v37 }
0x20e8   :  { %3066 = vmatpush1.bf16.msra.mxu1 %v3878_v50  ;;  %2492 = vmatprep.mubr.f32.mxu1 %v3384_v7 }
0x20e9   :  { %3068 = vmatprep.subr.bf16.mxu1 %v3889_v59 }
0x20ec   :  { %3070 = vmatpush1.bf16.msra.mxu1 %v3898_v30 }
0x20ed   :  { %3072 = vmatprep.subr.bf16.mxu1 %v3912_v0 }
0x20f0   :  { %3074 = vmatpush1.bf16.msra.mxu1 %v3920_v6 }
0x20f1   :  { %3076 = vmatprep.subr.bf16.mxu1 %v3934_v12 }
0x20f4   :  { %3078 = vmatpush1.bf16.msra.mxu1 %v3943_v17 }
0x21ba   :  { %v2190_v53 = vpop.f32.mrb[16].mxu1 }
0x21bb   :  { %v2191_v38 = vadd.f32 %v2190_v53, %v3994_v43  ;;  %v2192_v39 = vpop.f32.mrb[17].mxu1 }
0x21bc   :  { %v2193_v41 = vadd.f32 %v2192_v39, %v3997_v21 }
0x21bd   :  { %2203 = vrot.lane.b32.xlu1 %v2191_v38, %s3385_s16  ;;  %v2223_v57 = vrot.slane %v2191_v38, 2  ;;  %v2195_v42 = vadd.f32 %v2191_v38, %v4007_v29 }
0x21be   :  { %v2233_v35 = vrot.slane %v2193_v41, 2 }
0x21bf   :  { %v2225_v44 = vadd.f32 %v2223_v57, %v4004_v56  ;;  %v2808_v24 = vmul.f32 -1.442695, %v2195_v42 }
0x21c0   :  { %2242 = vrot.lane.b32.xlu0 %v2233_v35, %s3385_s16  ;;  %v2235_v62 = vadd.f32 %v2233_v35, %v3986_v16 }
0x21c1   :  { %v2809_v48 = vmul.f32 -1.442695, %v2225_v44  ;;  %3296 = vpow2.f32 %v2808_v24 }
0x21c2   :  { %v2810_v1 = vmul.f32 -1.442695, %v2235_v62 }
0x21c3   :  { %3298 = vpow2.f32 %v2809_v48 }
0x21cb   :  { %v3297_v49 = vpop.eup %3296 }
0x21cc   :  { %v2199_v54 = vadd.f32 1.0, %v3297_v49 }
0x21cd   :  { %v3299_v51 = vpop.eup %3298 }
0x21ce   :  { %v2229_v55 = vadd.f32 1.0, %v3299_v51  ;;  %3300 = vrcp.f32 %v2199_v54 }
0x21d0   :  { %3302 = vrcp.f32 %v2229_v55 }
0x21d8   :  { %v3301_v46 = vpop.eup %3300 }
0x21d9   :  { %v2213_v10 = vsub.f32 1.0, %v3301_v46  ;;  %v2221_v13 = vmul.f32 %v3301_v46, %v2219_v5 }
0x21da   :  { %v3303_v36 = vpop.eup %3302 }
0x222f   :  { %v2204_v58 = vpop.permute.xlu1 %2203 }
0x2230   :  { %v2206_v60 = vmul.f32 %v3301_v46, %v2204_v58 }
0x2232   :  { %v2243_v61 = vpop.permute.xlu0 %2242  ;;  %2208 = vrot.lane.b32.xlu1 %v2206_v60, %s3385_s16 }
0x2233   :  { %v2245_v8 = vmul.f32 %v3303_v36, %v2243_v61 }
0x2235   :  { %2247 = vrot.lane.b32.xlu0 %v2245_v8, %s3385_s16 }
0x22a4   :  { %v2209_v9 = vpop.permute.xlu1 %2208 }
0x22a5   :  { %v2211_v14 = vadd.f32 %v2209_v9, %v4007_v29 }
0x22a7   :  { %3304 = vtanh.f32 %v2211_v14  ;;  %v2248_v31 = vpop.permute.xlu0 %2247 }
0x22a8   :  { %v2250_v15 = vadd.f32 %v2248_v31, %v3986_v16 }
0x22aa   :  { %3306 = vtanh.f32 %v2250_v15 }
0x22ab   :  { %3308 = vpow2.f32 %v2810_v1 }
0x22b1   :  { %v3305_v27 = vpop.eup %3304 }
0x22b2   :  { %2215 = vrot.lane.b32.xlu1 %v3305_v27, %s3386_s17 }
0x22b4   :  { %v3307_v20 = vpop.eup %3306 }
0x22b5   :  { %2254 = vrot.lane.b32.xlu0 %v3307_v20, %s3386_s17  ;;  %v3309_v40 = vpop.eup %3308 }
0x22b6   :  { %v2239_v2 = vadd.f32 1.0, %v3309_v40 }
0x22b8   :  { %3310 = vrcp.f32 %v2239_v2 }
0x22c2   :  { %v3311_v4 = vpop.eup %3310 }
0x22c3   :  { %v2252_v3 = vsub.f32 1.0, %v3311_v4  ;;  %v2259_v22 = vmul.f32 %v3311_v4, %v2115_v32 }
0x2324   :  { %v2216_v11 = vpop.permute.xlu1 %2215 }
0x2325   :  { %v2218_v63 = vmul.f32 %v2216_v11, %v2213_v10 }
0x2327   :  { %v4148_v18 = vadd.f32 %v2221_v13, %v2218_v63  ;;  %v2255_v19 = vpop.permute.xlu0 %2254 }
0x2328   :  { %v2257_v23 = vmul.f32 %v2255_v19, %v2252_v3 }
0x2329   :  { %2262 = vrot.lane.b32.xlu0 %v4148_v18, %s3386_s17  ;;  %v2371_v14 = vrot.slane %v4148_v18, 6 }
0x232a   :  { %v2260_v25 = vadd.f32 %v2259_v22, %v2257_v23 }
0x232c   :  { %v2266_v26 = vrot.slane %v2260_v25, 6 }
0x232e   :  { %2267 = vrot.lane.b32.xlu1 %v2266_v26, %s3387_s3 }
0x239b   :  { %v2263_v45 = vpop.permute.xlu0 %2262 }
0x23a0   :  { %v2268_v28 = vpop.permute.xlu1 %2267 }
0x23a1   :  { %v2270_v33 = vsel %vm216_vm1, %v2263_v45, %v2268_v28 }
0x23a2   :  { %2811 = vmatmul.mubr.msk.f32.vlgmr.msra.gmra.mrb[16].mxu0 %vm61_vm2, %v2270_v33 }
0x23a3   :  { %3082 = vmatpush1.bf16.msra.mxu0 %v3878_v50  ;;  %2645 = vmatprep.mubr.f32.mxu0 %v3384_v7 }
0x23a4   :  { %3084 = vmatprep.subr.bf16.mxu0 %v3889_v59 }
0x23a7   :  { %3086 = vmatpush1.bf16.msra.mxu0 %v3898_v30 }
0x23a8   :  { %3088 = vmatprep.subr.bf16.mxu0 %v3912_v0 }
0x23ab   :  { %3090 = vmatpush1.bf16.msra.mxu0 %v3920_v6 }
0x23ac   :  { %3092 = vmatprep.subr.bf16.mxu0 %v3934_v12  ;;  %v2410_v12 = vrot.slane %v2260_v25, 2 }
0x23af   :  { %3094 = vmatpush1.bf16.msra.mxu0 %v3943_v17 }
0x2475   :  { %v2340_v52 = vpop.f32.mrb[16].mxu0 }
0x2476   :  { %v2341_v32 = vadd.f32 %v2340_v52, %v3994_v43  ;;  %v2342_v34 = vpop.f32.mrb[17].mxu0 }
0x2477   :  { %v2343_v50 = vadd.f32 %v2342_v34, %v3997_v21 }
0x2478   :  { %v2346_v47 = vrot.slane %v2341_v32, 6  ;;  %v2375_v53 = vrot.slane %v2341_v32, 4 }
0x2479   :  { %v2385_v7 = vrot.slane %v2343_v50, 4 }
0x247a   :  { %2355 = vrot.lane.b32.xlu1 %v2346_v47, %s3385_s16  ;;  %v2348_v38 = vadd.f32 %v2346_v47, %v4007_v29  ;;  %v2377_v39 = vadd.f32 %v2375_v53, %v4004_v56 }
0x247b   :  { %v2387_v59 = vadd.f32 %v2385_v7, %v3986_v16  ;;  %2394 = vrot.lane.b32.xlu0 %v2385_v7, %s3385_s16 }
0x247c   :  { %v2812_v41 = vmul.f32 -1.442695, %v2348_v38  ;;  %v2813_v35 = vmul.f32 -1.442695, %v2377_v39 }
0x247d   :  { %v2814_v30 = vmul.f32 -1.442695, %v2387_v59 }
0x247f   :  { %3312 = vpow2.f32 %v2814_v30 }
0x2489   :  { %v3313_v0 = vpop.eup %3312 }
0x248a   :  { %v2391_v6 = vadd.f32 1.0, %v3313_v0 }
0x248c   :  { %3314 = vrcp.f32 %v2391_v6 }
0x248d   :  { %3316 = vpow2.f32 %v2812_v41 }
0x248e   :  { %3318 = vpow2.f32 %v2813_v35 }
0x2496   :  { %v3315_v17 = vpop.eup %3314 }
0x2497   :  { %v2412_v37 = vmul.f32 %v3315_v17, %v2410_v12  ;;  %v3317_v57 = vpop.eup %3316  ;;  %v2404_v27 = vsub.f32 1.0, %v3315_v17 }
0x2498   :  { %v3319_v42 = vpop.eup %3318  ;;  %v2352_v44 = vadd.f32 1.0, %v3317_v57 }
0x2499   :  { %v2381_v24 = vadd.f32 1.0, %v3319_v42 }
0x249a   :  { %3320 = vrcp.f32 %v2352_v44 }
0x249b   :  { %3322 = vrcp.f32 %v2381_v24 }
0x24a4   :  { %v3321_v48 = vpop.eup %3320 }
0x24a5   :  { %v3323_v51 = vpop.eup %3322  ;;  %v2365_v31 = vsub.f32 1.0, %v3321_v48  ;;  %v2373_v20 = vmul.f32 %v3321_v48, %v2371_v14 }
0x24ec   :  { %v2356_v49 = vpop.permute.xlu1 %2355 }
0x24ed   :  { %v2358_v54 = vmul.f32 %v3321_v48, %v2356_v49  ;;  %v2395_v55 = vpop.permute.xlu0 %2394 }
0x24ee   :  { %v2397_v46 = vmul.f32 %v3323_v51, %v2395_v55 }
0x24ef   :  { %2360 = vrot.lane.b32.xlu1 %v2358_v54, %s3385_s16 }
0x24f0   :  { %2399 = vrot.lane.b32.xlu0 %v2397_v46, %s3385_s16 }
0x2561   :  { %v2361_v58 = vpop.permute.xlu1 %2360 }
0x2562   :  { %v2363_v60 = vadd.f32 %v2361_v58, %v4007_v29  ;;  %v2400_v36 = vpop.permute.xlu0 %2399 }
0x2563   :  { %v2402_v61 = vadd.f32 %v2400_v36, %v3986_v16 }
0x2564   :  { %3324 = vtanh.f32 %v2363_v60 }
0x2565   :  { %3326 = vtanh.f32 %v2402_v61 }
0x256e   :  { %v3325_v8 = vpop.eup %3324 }
0x256f   :  { %v3327_v9 = vpop.eup %3326  ;;  %2367 = vrot.lane.b32.xlu1 %v3325_v8, %s3386_s17 }
0x2570   :  { %2406 = vrot.lane.b32.xlu0 %v3327_v9, %s3386_s17 }
0x25e1   :  { %v2368_v15 = vpop.permute.xlu1 %2367 }
0x25e2   :  { %v2370_v62 = vmul.f32 %v2368_v15, %v2365_v31  ;;  %v2407_v1 = vpop.permute.xlu0 %2406 }
0x25e3   :  { %v2409_v40 = vmul.f32 %v2407_v1, %v2404_v27 }
0x25e4   :  { %v2374_v2 = vadd.f32 %v2373_v20, %v2370_v62 }
0x25e5   :  { %v4179_v4 = vadd.f32 %v2412_v37, %v2409_v40 }
0x25e6   :  { %2415 = vrot.lane.b32.xlu0 %v2374_v2, %s3386_s17  ;;  %v2525_v48 = vrot.slane %v2374_v2, 6 }
0x25e7   :  { %v2419_v5 = vrot.slane %v4179_v4, 2 }
0x25e9   :  { %2420 = vrot.lane.b32.xlu1 %v2419_v5, %s3387_s3 }
0x2658   :  { %v2416_v10 = vpop.permute.xlu0 %2415 }
0x265b   :  { %v2421_v11 = vpop.permute.xlu1 %2420 }
0x265c   :  { %v2423_v13 = vsel %vm216_vm1, %v2416_v10, %v2421_v11 }
0x265d   :  { %v2425_v63 = vrot.slane %v2423_v13, 2 }
0x265f   :  { %2815 = vmatmul.mubr.msk.f32.vlgmr.msra.gmra.mrb[18].mxu1 %vm61_vm2, %v2425_v63 }
0x2732   :  { %v2494_v3 = vpop.f32.mrb[18].mxu1 }
0x2733   :  { %v2495_v18 = vadd.f32 %v2494_v3, %v3994_v43  ;;  %v2496_v19 = vpop.f32.mrb[19].mxu1 }
0x2734   :  { %v2497_v22 = vadd.f32 %v2496_v19, %v3997_v21 }
0x2735   :  { %v2500_v23 = vrot.slane %v2495_v18, 4  ;;  %v2529_v26 = vrot.slane %v2495_v18, 6 }
0x2736   :  { %v2539_v25 = vrot.slane %v2497_v22, 6 }
0x2737   :  { %2509 = vrot.lane.b32.xlu1 %v2500_v23, %s3385_s16  ;;  %v2502_v45 = vadd.f32 %v2500_v23, %v4007_v29  ;;  %v2531_v28 = vadd.f32 %v2529_v26, %v4004_v56 }
0x2738   :  { %2548 = vrot.lane.b32.xlu0 %v2539_v25, %s3385_s16  ;;  %v2541_v35 = vadd.f32 %v2539_v25, %v3986_v16 }
0x2739   :  { %v2816_v33 = vmul.f32 -1.442695, %v2502_v45  ;;  %v2817_v52 = vmul.f32 -1.442695, %v2531_v28 }
0x273a   :  { %v2818_v57 = vmul.f32 -1.442695, %v2541_v35 }
0x273b   :  { %3328 = vpow2.f32 %v2816_v33 }
0x273c   :  { %3330 = vpow2.f32 %v2817_v52 }
0x2745   :  { %v3329_v32 = vpop.eup %3328 }
0x2746   :  { %v3331_v34 = vpop.eup %3330  ;;  %v2506_v50 = vadd.f32 1.0, %v3329_v32 }
0x2747   :  { %v2535_v47 = vadd.f32 1.0, %v3331_v34 }
0x2748   :  { %3332 = vrcp.f32 %v2506_v50 }
0x2749   :  { %3334 = vrcp.f32 %v2535_v47 }
0x2752   :  { %v3333_v7 = vpop.eup %3332 }
0x2753   :  { %v3335_v30 = vpop.eup %3334  ;;  %v2519_v49 = vsub.f32 1.0, %v3333_v7  ;;  %v2527_v55 = vmul.f32 %v3333_v7, %v2525_v48 }
0x27a9   :  { %v2510_v59 = vpop.permute.xlu1 %2509 }
0x27aa   :  { %v2512_v0 = vmul.f32 %v3333_v7, %v2510_v59  ;;  %v2549_v6 = vpop.permute.xlu0 %2548 }
0x27ab   :  { %v2551_v12 = vmul.f32 %v3335_v30, %v2549_v6 }
0x27ac   :  { %2514 = vrot.lane.b32.xlu1 %v2512_v0, %s3385_s16 }
0x27ad   :  { %2553 = vrot.lane.b32.xlu0 %v2551_v12, %s3385_s16 }
0x281e   :  { %v2515_v17 = vpop.permute.xlu1 %2514 }
0x281f   :  { %v2517_v37 = vadd.f32 %v2515_v17, %v4007_v29  ;;  %v2554_v53 = vpop.permute.xlu0 %2553 }
0x2820   :  { %v2556_v38 = vadd.f32 %v2554_v53, %v3986_v16 }
0x2821   :  { %3336 = vtanh.f32 %v2517_v37 }
0x2822   :  { %3338 = vtanh.f32 %v2556_v38 }
0x2823   :  { %3340 = vpow2.f32 %v2818_v57 }
0x282b   :  { %v3337_v39 = vpop.eup %3336 }
0x282c   :  { %v3339_v41 = vpop.eup %3338  ;;  %2521 = vrot.lane.b32.xlu1 %v3337_v39, %s3386_s17 }
0x282d   :  { %2560 = vrot.lane.b32.xlu0 %v3339_v41, %s3386_s17  ;;  %v3341_v42 = vpop.eup %3340 }
0x282e   :  { %v2545_v44 = vadd.f32 1.0, %v3341_v42 }
0x2830   :  { %3342 = vrcp.f32 %v2545_v44 }
0x283a   :  { %v3343_v24 = vpop.eup %3342 }
0x283b   :  { %v2558_v54 = vsub.f32 1.0, %v3343_v24  ;;  %v2565_v60 = vmul.f32 %v3343_v24, %v2419_v5 }
0x289e   :  { %v2522_v51 = vpop.permute.xlu1 %2521 }
0x289f   :  { %v2524_v46 = vmul.f32 %v2522_v51, %v2519_v49  ;;  %v2561_v58 = vpop.permute.xlu0 %2560 }
0x28a0   :  { %v2563_v36 = vmul.f32 %v2561_v58, %v2558_v54 }
0x28a1   :  { %v4199_v61 = vadd.f32 %v2527_v55, %v2524_v46 }
0x28a2   :  { %v2566_v8 = vadd.f32 %v2565_v60, %v2563_v36 }
0x28a3   :  { %2568 = vrot.lane.b32.xlu0 %v4199_v61, %s3386_s17  ;;  %v2678_v6 = vrot.slane %v4199_v61, 6 }
0x28a4   :  { %v2572_v9 = vrot.slane %v2566_v8, 6  ;;  %v2713_v13 = vrot.slane %v2566_v8, 2 }
0x28a6   :  { %2573 = vrot.lane.b32.xlu1 %v2572_v9, %s3387_s3 }
0x2915   :  { %v2569_v14 = vpop.permute.xlu0 %2568 }
0x2918   :  { %v2574_v31 = vpop.permute.xlu1 %2573 }
0x2919   :  { %v2576_v15 = vsel %vm216_vm1, %v2569_v14, %v2574_v31 }
0x291a   :  { %v2578_v27 = vrot.slane %v2576_v15, 4 }
0x291c   :  { %2819 = vmatmul.mubr.msk.f32.vlgmr.msra.gmra.mrb[18].mxu0 %vm61_vm2, %v2578_v27 }
0x29ef   :  { %v2647_v20 = vpop.f32.mrb[18].mxu0 }
0x29f0   :  { %v2648_v62 = vadd.f32 %v2647_v20, %v3994_v43  ;;  %v2649_v1 = vpop.f32.mrb[19].mxu0 }
0x29f1   :  { %v2650_v40 = vadd.f32 %v2649_v1, %v3997_v21 }
0x29f2   :  { %v2653_v2 = vrot.slane %v2648_v62, 2  ;;  %v2682_v43 = vadd.f32 %v2648_v62, %v4004_v56 }
0x29f3   :  { %v2689_v4 = vadd.f32 %v2650_v40, %v3986_v16  ;;  %2697 = vrot.lane.b32.xlu0 %v2650_v40, %s3385_s16 }
0x29f4   :  { %2662 = vrot.lane.b32.xlu1 %v2653_v2, %s3385_s16  ;;  %v2655_v18 = vadd.f32 %v2653_v2, %v4007_v29  ;;  %v2821_v21 = vmul.f32 -1.442695, %v2682_v43 }
0x29f5   :  { %v2822_v5 = vmul.f32 -1.442695, %v2689_v4 }
0x29f6   :  { %v2820_v19 = vmul.f32 -1.442695, %v2655_v18 }
0x29f7   :  { %3344 = vpow2.f32 %v2822_v5 }
0x2a01   :  { %v3345_v10 = vpop.eup %3344 }
0x2a02   :  { %v2693_v11 = vadd.f32 1.0, %v3345_v10 }
0x2a04   :  { %3346 = vrcp.f32 %v2693_v11 }
0x2a05   :  { %3348 = vpow2.f32 %v2821_v21 }
0x2a06   :  { %3350 = vpow2.f32 %v2820_v19 }
0x2a0e   :  { %v3347_v63 = vpop.eup %3346 }
0x2a0f   :  { %v2715_v3 = vmul.f32 %v3347_v63, %v2713_v13  ;;  %v3349_v22 = vpop.eup %3348  ;;  %v2707_v0 = vsub.f32 1.0, %v3347_v63 }
0x2a10   :  { %v3351_v23 = vpop.eup %3350  ;;  %v2686_v25 = vadd.f32 1.0, %v3349_v22 }
0x2a11   :  { %v2659_v26 = vadd.f32 1.0, %v3351_v23 }
0x2a12   :  { %3352 = vrcp.f32 %v2686_v25 }
0x2a13   :  { %3354 = vrcp.f32 %v2659_v26 }
0x2a1c   :  { %v3353_v45 = vpop.eup %3352 }
0x2a1d   :  { %v3355_v33 = vpop.eup %3354 }
0x2a1e   :  { %v2672_v17 = vsub.f32 1.0, %v3355_v33  ;;  %v2680_v38 = vmul.f32 %v3355_v33, %v2678_v6 }
0x2a65   :  { %v2698_v28 = vpop.permute.xlu0 %2697 }
0x2a66   :  { %v2700_v52 = vmul.f32 %v3353_v45, %v2698_v28  ;;  %v2663_v32 = vpop.permute.xlu1 %2662 }
0x2a67   :  { %v2665_v34 = vmul.f32 %v3355_v33, %v2663_v32 }
0x2a68   :  { %2702 = vrot.lane.b32.xlu0 %v2700_v52, %s3385_s16 }
0x2a69   :  { %2667 = vrot.lane.b32.xlu1 %v2665_v34, %s3385_s16  ;;  %s3360_s16 = scalar_lea.vmem %s2736_s7, 32 }
0x2a6a   :  { %p3361_p0 = scmp.ne.s32.totalorder %s2736_s7, %s3360_s16  ;;  %p3366_p2 = scmp.lt.s32.totalorder %s3360_s16, %s3360_s16 }
0x2a6c   :  { %p3367_p3 = por %p3366_p2, %p3365_p1 }
0x2a6e   :  { %p3368_p4 = pnand %p3367_p3, %p3361_p0 }
0x2ada   :  { %v2703_v56 = vpop.permute.xlu0 %2702 }
0x2adb   :  { %v2705_v50 = vadd.f32 %v2703_v56, %v3986_v16  ;;  %v2668_v47 = vpop.permute.xlu1 %2667 }
0x2adc   :  { %v2670_v7 = vadd.f32 %v2668_v47, %v4007_v29 }
0x2add   :  { %3356 = vtanh.f32 %v2705_v50 }
0x2ade   :  { %3358 = vtanh.f32 %v2670_v7 }
0x2ae7   :  { %v3357_v59 = vpop.eup %3356 }
0x2ae8   :  { %v3359_v30 = vpop.eup %3358  ;;  %2709 = vrot.lane.b32.xlu0 %v3357_v59, %s3386_s17 }
0x2ae9   :  { %2674 = vrot.lane.b32.xlu1 %v3359_v30, %s3386_s17 }
0x2b5a   :  { %v2710_v12 = vpop.permute.xlu0 %2709 }
0x2b5b   :  { %v2712_v37 = vmul.f32 %v2710_v12, %v2707_v0  ;;  %v2675_v53 = vpop.permute.xlu1 %2674 }
0x2b5c   :  { %v2677_v16 = vmul.f32 %v2675_v53, %v2672_v17 }
0x2b5d   :  { %v2716_v39 = vadd.f32 %v2715_v3, %v2712_v37 }
0x2b5e   :  { %v2681_v41 = vadd.f32 %v2680_v38, %v2677_v16 }
0x2b5f   :  { %v2722_v29 = vrot.slane %v2716_v39, 2 }
0x2b60   :  { %2718 = vrot.lane.b32.xlu0 %v2681_v41, %s3386_s17 }
0x2b61   :  { %2723 = vrot.lane.b32.xlu1 %v2722_v29, %s3387_s3 }
0x2bd2   :  { %v2719_v35 = vpop.permute.xlu0 %2718 }
0x2bd3   :  { %v2724_v57 = vpop.permute.xlu1 %2723 }
0x2bd4   :  { %v2726_v42 = vsel %vm216_vm1, %v2719_v35, %v2724_v57 }
0x2bd5   :  { %2728 = vst.msk [vmem:[#allocation4 - $0x6] sm:$0xc0] %vm2727_vm3, %v2726_v42 }
0x2bd6   :  { %3371 = shalt.err (!%p3368_p4)
}
0x2bd7   :  { %s3372_s3 = scalar_lea.hbm %s4243_s8, 32 }
0x2bd8   :  { %p3373_p5 = scmp.ne.s32.totalorder %s4243_s8, %s3372_s3  ;;  %p3376_p6 = scmp.lt.u32.totalorder %s3372_s3, %s4243_s8 }
0x2bda   :  { %p3378_p7 = pnand %p3376_p6, %p3373_p5 }
0x2bdc   :  { %3381 = shalt.err (!%p3378_p7)
}
0x2bdd   :  { %2738 = dma.vmem_to_hbm [thread:$0]  %s2736_s7, 32, %s4243_s8, [#allocation5]  }
0x2bde   :  { %3382 = dma.done.wait [#allocation5], 32  }
0x2bdf   :  { %3383 = vsyncadd [#allocation5], 4294967264 }
0x2be0   :  { %2742 = vsyncpa [#allocation5], 1 }

</bundles_post_ra>
